<compile_context>
chip_gen: v6e
topology: v6e:2x2x1
jax: 0.10.0
libtpu: 0.0.40
codegen_flags: <defaults>
</compile_context>

<pallas_src>
import jax
import jax.numpy as jnp
from jax import lax
from jax.experimental import pallas as pl
from jax.experimental.pallas import tpu as pltpu

# ---- model hyper-params (small, consistent with the module's structure) ----
N_EMBD = 128          # module hard-codes 384; scaled down for a small test
N_HEADS = 4
HEAD_SIZE = N_EMBD // N_HEADS
FF_HIDDEN = 4 * N_EMBD
LN_EPS = 1e-5


def _layer_norm(v, g_ref, b_ref):
    """LayerNorm over the last dim of a 2-D (M, C) f32 activation."""
    mu = jnp.mean(v, axis=-1, keepdims=True)
    var = jnp.mean((v - mu) ** 2, axis=-1, keepdims=True)
    return (v - mu) * lax.rsqrt(var + LN_EPS) * g_ref[...] + b_ref[...]


def decoder_layer_kernel(
    x_ref, enc_ref, tmask_ref, smask_ref,
    # masked (self) attention params: (C, C) x4, (1, C)
    wq_s, wk_s, wv_s, wp_s, bp_s,
    # cross attention params
    wq_c, wk_c, wv_c, wp_c, bp_c,
    # layer norms
    g1, be1, g2, be2, g3, be3,
    # feed-forward
    w_ff1, b_ff1, w_ff2, b_ff2,
    out_ref,
):
    Bt, T, C = x_ref.shape
    Te = enc_ref.shape[1]
    H, D = N_HEADS, HEAD_SIZE

    # Fold the batch tile into the matmul M dimension.
    x2 = x_ref[...].reshape(Bt * T, C)          # (M, C) f32
    enc2 = enc_ref[...].reshape(Bt * Te, C)     # (Me, C) f32

    # ---- masks: built ONCE per kernel body, broadcast over heads (no tile) ---
    neg = jnp.float32(-1e30)                    # finite fill: no NaN on fully-masked rows
    ri = lax.broadcasted_iota(jnp.int32, (T, T), 0)
    ci = lax.broadcasted_iota(jnp.int32, (T, T), 1)
    causal_bad = ci > ri                                                      # (T, T)
    self_bad = (tmask_ref[...][:, None, :] == 0.0) | causal_bad[None, :, :]   # (Bt, T, T)
    cross_bad = jnp.broadcast_to(smask_ref[...][:, None, :] == 0.0, (Bt, T, Te))

    scale = C ** (-0.5)   # reference scales by the *embedding* dim, not head dim

    def split_heads(y, Tn):
        # y: (Bt*Tn, C) bf16.  Static, 32-lane-aligned column slices per head,
        # stacked on a (cheap) major axis -> (H*Bt, Tn, D); batch order = (h, b).
        hs = [y[:, h * D:(h + 1) * D] for h in range(H)]
        return jnp.stack(hs, axis=0).reshape(H * Bt, Tn, D)

    def merge_heads(o, Tq):
        # o: (H*Bt, Tq, D) bf16 -> lane-concat of heads -> (Bt*Tq, H*D) = (M, C)
        o = o.reshape(H, Bt * Tq, D)
        return jnp.concatenate([o[h] for h in range(H)], axis=-1)

    def mha(q_src, kv_src, Tq, Tk, wq, wk, wv, wp, bp, bad):
        """Multi-head attention on a flattened batch tile.

        q_src: (Bt*Tq, C) f32, kv_src: (Bt*Tk, C) f32, bad: (Bt, Tq, Tk) bool.
        """
        qb = q_src.astype(jnp.bfloat16)
        kb = kv_src.astype(jnp.bfloat16)

        # Full-width projections: one (M, C)@(C, C) MXU pass each, then cheap
        # per-head relayout (no N=32 matmuls, no per-head dot loop).
        q = split_heads(
            jnp.dot(qb, wq[...], preferred_element_type=jnp.float32).astype(jnp.bfloat16), Tq)
        k = split_heads(
            jnp.dot(kb, wk[...], preferred_element_type=jnp.float32).astype(jnp.bfloat16), Tk)
        v = split_heads(
            jnp.dot(kb, wv[...], preferred_element_type=jnp.float32).astype(jnp.bfloat16), Tk)

        # Single batched score contraction for ALL heads / batch elements.
        s = jnp.einsum('bqd,bkd->bqk', q, k,
                       preferred_element_type=jnp.float32) * scale          # (H*Bt, Tq, Tk)

        # Apply the (Bt, Tq, Tk) mask broadcast across the head axis (no tile).
        s = s.reshape(H, Bt, Tq, Tk)
        s = jnp.where(bad[None, :, :, :], neg, s)
        s = s.reshape(H * Bt, Tq, Tk)

        # Softmax in f32; divide moved to the (otherwise idle) EUP.
        m = jnp.max(s, axis=-1, keepdims=True)
        e = jnp.exp(s - m)
        p = e * pl.reciprocal(jnp.sum(e, axis=-1, keepdims=True), approx=True)

        o = jnp.einsum('bqk,bkd->bqd', p.astype(jnp.bfloat16), v,
                       preferred_element_type=jnp.float32)                  # (H*Bt, Tq, D)

        # Lane-concat heads back to (M, C) and do ONE full-depth projection.
        o = merge_heads(o.astype(jnp.bfloat16), Tq)                         # (M, C)
        return jnp.dot(o, wp[...], preferred_element_type=jnp.float32) + bp[...]

    # x = ln1(x + self_attn(x, mask=trgt_mask, causal))
    y = mha(x2, x2, T, T, wq_s, wk_s, wv_s, wp_s, bp_s, self_bad)
    x2 = _layer_norm(x2 + y, g1, be1)

    # x = ln2(x + cross_attn(x, encoded_x, mask=src_mask))
    y = mha(x2, enc2, T, Te, wq_c, wk_c, wv_c, wp_c, bp_c, cross_bad)
    x2 = _layer_norm(x2 + y, g2, be2)

    # x = ln3(x + ffwd(x))
    hdn = jnp.maximum(
        jnp.dot(x2.astype(jnp.bfloat16), w_ff1[...],
                preferred_element_type=jnp.float32) + b_ff1[...], 0.0)
    ff = jnp.dot(hdn.astype(jnp.bfloat16), w_ff2[...],
                 preferred_element_type=jnp.float32) + b_ff2[...]
    x2 = _layer_norm(x2 + ff, g3, be3)

    out_ref[...] = x2.reshape(Bt, T, C).astype(out_ref.dtype)


def decoder_layer(x, encoded_x, src_mask, trgt_mask, params, *, b_tile=None):
    B, T, C = x.shape
    Te = encoded_x.shape[1]

    if b_tile is None:
        # Whole batch in one grid step by default (B*T folded into the MXU M
        # dim).  At production scale, split the batch across the (up to) two
        # TensorCores (v7x) when each half still keeps (8,128)-tileable 2-D
        # mask blocks (multiple of 8) and a folded M dimension >= 256; this
        # also halves the per-step VMEM footprint for v7x's 64 MiB budget.
        b_tile = B
        if B % 16 == 0 and (B // 2) * T >= 256:
            b_tile = B // 2
    assert B % b_tile == 0

    # Cast MXU operands to bf16 (f32 accumulation inside the kernel); weights
    # stay unsplit — per-head views are formed with aligned slices in-kernel.
    param_arrays = [
        params["wq_s"].astype(jnp.bfloat16), params["wk_s"].astype(jnp.bfloat16),
        params["wv_s"].astype(jnp.bfloat16), params["wp_s"].astype(jnp.bfloat16),
        params["bp_s"],
        params["wq_c"].astype(jnp.bfloat16), params["wk_c"].astype(jnp.bfloat16),
        params["wv_c"].astype(jnp.bfloat16), params["wp_c"].astype(jnp.bfloat16),
        params["bp_c"],
        params["g1"], params["be1"], params["g2"], params["be2"],
        params["g3"], params["be3"],
        params["w_ff1"].astype(jnp.bfloat16), params["b_ff1"],
        params["w_ff2"].astype(jnp.bfloat16), params["b_ff2"],
    ]

    def rep_spec(a):
        zeros = (0,) * a.ndim
        return pl.BlockSpec(a.shape, lambda i: zeros)

    in_specs = [
        pl.BlockSpec((b_tile, T, C), lambda i: (i, 0, 0)),    # x
        pl.BlockSpec((b_tile, Te, C), lambda i: (i, 0, 0)),   # encoded_x
        pl.BlockSpec((b_tile, T), lambda i: (i, 0)),          # trgt_mask (key mask, self)
        pl.BlockSpec((b_tile, Te), lambda i: (i, 0)),         # src_mask  (key mask, cross)
    ] + [rep_spec(p) for p in param_arrays]

    return pl.pallas_call(
        decoder_layer_kernel,
        out_shape=jax.ShapeDtypeStruct((B, T, C), x.dtype),
        grid_spec=pltpu.PrefetchScalarGridSpec(
            num_scalar_prefetch=0,
            grid=(B // b_tile,),
            in_specs=in_specs,
            out_specs=pl.BlockSpec((b_tile, T, C), lambda i: (i, 0, 0)),
        ),
        compiler_params=pltpu.CompilerParams(
            dimension_semantics=("parallel",),
            # 48 MiB: under v7x's 64 MiB/TC, leaves headroom; allows larger
            # batch tiles than the 16/32 MiB scoped defaults on v5e/v6e.
            vmem_limit_bytes=48 * 1024 * 1024,
        ),
    )(x, encoded_x, trgt_mask, src_mask, *param_arrays)


def init_params(key):
    """Deterministic synthetic parameters (shapes follow the PyTorch module)."""
    ks = jax.random.split(key, 16)
    k = iter(ks)

    def w(shape, kk, scale=0.02):
        return (scale * jax.random.normal(kk, shape)).astype(jnp.float32)

    C, Hd = N_EMBD, FF_HIDDEN
    p = {
        # self (masked) attention: per-head q/k/v stacked column-wise -> (C, C)
        "wq_s": w((C, C), next(k)), "wk_s": w((C, C), next(k)), "wv_s": w((C, C), next(k)),
        "wp_s": w((C, C), next(k)), "bp_s": jnp.zeros((1, C), jnp.float32),
        # cross attention
        "wq_c": w((C, C), next(k)), "wk_c": w((C, C), next(k)), "wv_c": w((C, C), next(k)),
        "wp_c": w((C, C), next(k)), "bp_c": jnp.zeros((1, C), jnp.float32),
        # layer norms
        "g1": jnp.ones((1, C), jnp.float32), "be1": jnp.zeros((1, C), jnp.float32),
        "g2": jnp.ones((1, C), jnp.float32), "be2": jnp.zeros((1, C), jnp.float32),
        "g3": jnp.ones((1, C), jnp.float32), "be3": jnp.zeros((1, C), jnp.float32),
        # feed-forward
        "w_ff1": w((C, Hd), next(k)), "b_ff1": jnp.zeros((1, Hd), jnp.float32),
        "w_ff2": w((Hd, C), next(k)), "b_ff2": jnp.zeros((1, C), jnp.float32),
    }
    return p


if __name__ == "__main__":
    B, T, Te = 2, 16, 16
    key = jax.random.PRNGKey(0)
    k_x, k_e, k_p = jax.random.split(key, 3)

    x = jax.random.normal(k_x, (B, T, N_EMBD), dtype=jnp.float32)
    encoded_x = jax.random.normal(k_e, (B, Te, N_EMBD), dtype=jnp.float32)

    # key-padding masks (1 = keep, 0 = masked); mask the tail of batch 1
    trgt_mask = jnp.ones((B, T), jnp.float32).at[1, T - 2:].set(0.0)
    src_mask = jnp.ones((B, Te), jnp.float32).at[1, Te - 3:].set(0.0)

    params = init_params(k_p)

    out = decoder_layer(x, encoded_x, src_mask, trgt_mask, params)
    out = jax.block_until_ready(out)
    assert out.shape == (B, T, N_EMBD)
    assert bool(jnp.all(jnp.isfinite(out)))
    print("KERNEL_OK")
</pallas_src>

<mosaic_0001>
module attributes {stable_mosaic.version = 11 : i64} {
  func.func @decoder_layer_kernel(%arg0: i32, %arg1: memref<2x16x128xf32, #tpu.memory_space<vmem>>, %arg2: memref<2x16x128xf32, #tpu.memory_space<vmem>>, %arg3: memref<2x16xf32, #tpu.memory_space<vmem>>, %arg4: memref<2x16xf32, #tpu.memory_space<vmem>>, %arg5: memref<128x128xbf16, #tpu.memory_space<vmem>>, %arg6: memref<128x128xbf16, #tpu.memory_space<vmem>>, %arg7: memref<128x128xbf16, #tpu.memory_space<vmem>>, %arg8: memref<128x128xbf16, #tpu.memory_space<vmem>>, %arg9: memref<1x128xf32, #tpu.memory_space<vmem>>, %arg10: memref<128x128xbf16, #tpu.memory_space<vmem>>, %arg11: memref<128x128xbf16, #tpu.memory_space<vmem>>, %arg12: memref<128x128xbf16, #tpu.memory_space<vmem>>, %arg13: memref<128x128xbf16, #tpu.memory_space<vmem>>, %arg14: memref<1x128xf32, #tpu.memory_space<vmem>>, %arg15: memref<1x128xf32, #tpu.memory_space<vmem>>, %arg16: memref<1x128xf32, #tpu.memory_space<vmem>>, %arg17: memref<1x128xf32, #tpu.memory_space<vmem>>, %arg18: memref<1x128xf32, #tpu.memory_space<vmem>>, %arg19: memref<1x128xf32, #tpu.memory_space<vmem>>, %arg20: memref<1x128xf32, #tpu.memory_space<vmem>>, %arg21: memref<128x512xbf16, #tpu.memory_space<vmem>>, %arg22: memref<1x512xf32, #tpu.memory_space<vmem>>, %arg23: memref<512x128xbf16, #tpu.memory_space<vmem>>, %arg24: memref<1x128xf32, #tpu.memory_space<vmem>>, %arg25: memref<2x16x128xf32, #tpu.memory_space<vmem>>) attributes {dimension_semantics = [#tpu.dimension_semantics<parallel>], iteration_bounds = array<i64: 1>, scalar_prefetch = 0 : i64, scratch_operands = 0 : i64, tpu.core_type = #tpu.core_type<tc>, window_params = [{transform_indices = @transform_0, window_bounds = array<i64: 2, 16, 128>}, {transform_indices = @transform_1, window_bounds = array<i64: 2, 16, 128>}, {transform_indices = @transform_2, window_bounds = array<i64: 2, 16>}, {transform_indices = @transform_3, window_bounds = array<i64: 2, 16>}, {pipeline_mode = #tpu.pipeline_mode<synchronous>, transform_indices = @transform_4, window_bounds = array<i64: 128, 128>}, {pipeline_mode = #tpu.pipeline_mode<synchronous>, transform_indices = @transform_5, window_bounds = array<i64: 128, 128>}, {pipeline_mode = #tpu.pipeline_mode<synchronous>, transform_indices = @transform_6, window_bounds = array<i64: 128, 128>}, {pipeline_mode = #tpu.pipeline_mode<synchronous>, transform_indices = @transform_7, window_bounds = array<i64: 128, 128>}, {pipeline_mode = #tpu.pipeline_mode<synchronous>, transform_indices = @transform_8, window_bounds = array<i64: 1, 128>}, {pipeline_mode = #tpu.pipeline_mode<synchronous>, transform_indices = @transform_9, window_bounds = array<i64: 128, 128>}, {pipeline_mode = #tpu.pipeline_mode<synchronous>, transform_indices = @transform_10, window_bounds = array<i64: 128, 128>}, {pipeline_mode = #tpu.pipeline_mode<synchronous>, transform_indices = @transform_11, window_bounds = array<i64: 128, 128>}, {pipeline_mode = #tpu.pipeline_mode<synchronous>, transform_indices = @transform_12, window_bounds = array<i64: 128, 128>}, {pipeline_mode = #tpu.pipeline_mode<synchronous>, transform_indices = @transform_13, window_bounds = array<i64: 1, 128>}, {pipeline_mode = #tpu.pipeline_mode<synchronous>, transform_indices = @transform_14, window_bounds = array<i64: 1, 128>}, {pipeline_mode = #tpu.pipeline_mode<synchronous>, transform_indices = @transform_15, window_bounds = array<i64: 1, 128>}, {pipeline_mode = #tpu.pipeline_mode<synchronous>, transform_indices = @transform_16, window_bounds = array<i64: 1, 128>}, {pipeline_mode = #tpu.pipeline_mode<synchronous>, transform_indices = @transform_17, window_bounds = array<i64: 1, 128>}, {pipeline_mode = #tpu.pipeline_mode<synchronous>, transform_indices = @transform_18, window_bounds = array<i64: 1, 128>}, {pipeline_mode = #tpu.pipeline_mode<synchronous>, transform_indices = @transform_19, window_bounds = array<i64: 1, 128>}, {pipeline_mode = #tpu.pipeline_mode<synchronous>, transform_indices = @transform_20, window_bounds = array<i64: 128, 512>}, {pipeline_mode = #tpu.pipeline_mode<synchronous>, transform_indices = @transform_21, window_bounds = array<i64: 1, 512>}, {pipeline_mode = #tpu.pipeline_mode<synchronous>, transform_indices = @transform_22, window_bounds = array<i64: 512, 128>}, {pipeline_mode = #tpu.pipeline_mode<synchronous>, transform_indices = @transform_23, window_bounds = array<i64: 1, 128>}, {transform_indices = @transform_24, window_bounds = array<i64: 2, 16, 128>}]} {
    %c0 = arith.constant 0 : index
    %c0_0 = arith.constant 0 : index
    %c0_1 = arith.constant 0 : index
    %0 = vector.load %arg1[%c0, %c0_0, %c0_1] : memref<2x16x128xf32, #tpu.memory_space<vmem>>, vector<2x16x128xf32>
    %1 = vector.shape_cast %0 : vector<2x16x128xf32> to vector<32x128xf32>
    %c0_2 = arith.constant 0 : index
    %c0_3 = arith.constant 0 : index
    %c0_4 = arith.constant 0 : index
    %2 = vector.load %arg2[%c0_2, %c0_3, %c0_4] : memref<2x16x128xf32, #tpu.memory_space<vmem>>, vector<2x16x128xf32>
    %3 = vector.shape_cast %2 : vector<2x16x128xf32> to vector<32x128xf32>
    %4 = tpu.iota {dimensions = array<i32: 0>} : vector<16x16xi32>
    %5 = tpu.iota {dimensions = array<i32: 1>} : vector<16x16xi32>
    %6 = arith.cmpi sgt, %5, %4 : vector<16x16xi32>
    %c0_5 = arith.constant 0 : index
    %c0_6 = arith.constant 0 : index
    %7 = vector.load %arg3[%c0_5, %c0_6] : memref<2x16xf32, #tpu.memory_space<vmem>>, vector<2x16xf32>
    %8 = vector.shape_cast %7 : vector<2x16xf32> to vector<2x1x16xf32>
    %cst = arith.constant 0.000000e+00 : f32
    %9 = vector.broadcast %cst : f32 to vector<2x1x16xf32>
    %10 = arith.cmpf oeq, %8, %9 : vector<2x1x16xf32>
    %11 = vector.shape_cast %6 : vector<16x16xi1> to vector<1x16x16xi1>
    %12 = vector.broadcast %10 : vector<2x1x16xi1> to vector<2x16x16xi1>
    %13 = vector.broadcast %11 : vector<1x16x16xi1> to vector<2x16x16xi1>
    %14 = arith.ori %12, %13 : vector<2x16x16xi1>
    %c0_7 = arith.constant 0 : index
    %c0_8 = arith.constant 0 : index
    %15 = vector.load %arg4[%c0_7, %c0_8] : memref<2x16xf32, #tpu.memory_space<vmem>>, vector<2x16xf32>
    %16 = vector.shape_cast %15 : vector<2x16xf32> to vector<2x1x16xf32>
    %cst_9 = arith.constant 0.000000e+00 : f32
    %17 = vector.broadcast %cst_9 : f32 to vector<2x1x16xf32>
    %18 = arith.cmpf oeq, %16, %17 : vector<2x1x16xf32>
    %19 = vector.shape_cast %18 : vector<2x1x16xi1> to vector<2x1x16xi1>
    %20 = vector.broadcast %19 : vector<2x1x16xi1> to vector<2x16x16xi1>
    %21 = arith.truncf %1 : vector<32x128xf32> to vector<32x128xbf16>
    %22 = arith.truncf %1 : vector<32x128xf32> to vector<32x128xbf16>
    %c0_10 = arith.constant 0 : index
    %c0_11 = arith.constant 0 : index
    %23 = vector.load %arg5[%c0_10, %c0_11] : memref<128x128xbf16, #tpu.memory_space<vmem>>, vector<128x128xbf16>
    %cst_12 = arith.constant dense<0.000000e+00> : vector<32x128xf32>
    %24 = tpu.matmul %21, %23, %cst_12 {dimension_numbers = #tpu.dot_dimension_numbers<[1], [0], [0], [1], [0, 0, 1, 1], [], []>} : vector<32x128xbf16>, vector<128x128xbf16>, vector<32x128xf32> -> vector<32x128xf32>
    %25 = arith.truncf %24 : vector<32x128xf32> to vector<32x128xbf16>
    %26 = vector.extract_strided_slice %25 {offsets = [0, 0], sizes = [32, 32], strides = [1, 1]} : vector<32x128xbf16> to vector<32x32xbf16>
    %27 = vector.extract_strided_slice %25 {offsets = [0, 32], sizes = [32, 32], strides = [1, 1]} : vector<32x128xbf16> to vector<32x32xbf16>
    %28 = vector.extract_strided_slice %25 {offsets = [0, 64], sizes = [32, 32], strides = [1, 1]} : vector<32x128xbf16> to vector<32x32xbf16>
    %29 = vector.extract_strided_slice %25 {offsets = [0, 96], sizes = [32, 32], strides = [1, 1]} : vector<32x128xbf16> to vector<32x32xbf16>
    %30 = vector.shape_cast %26 : vector<32x32xbf16> to vector<1x32x32xbf16>
    %31 = vector.shape_cast %27 : vector<32x32xbf16> to vector<1x32x32xbf16>
    %32 = vector.shape_cast %28 : vector<32x32xbf16> to vector<1x32x32xbf16>
    %33 = vector.shape_cast %29 : vector<32x32xbf16> to vector<1x32x32xbf16>
    %34 = tpu.concatenate %30, %31, %32, %33 in 0 : vector<1x32x32xbf16>, vector<1x32x32xbf16>, vector<1x32x32xbf16>, vector<1x32x32xbf16> -> vector<4x32x32xbf16>
    %35 = vector.shape_cast %34 : vector<4x32x32xbf16> to vector<8x16x32xbf16>
    %c0_13 = arith.constant 0 : index
    %c0_14 = arith.constant 0 : index
    %36 = vector.load %arg6[%c0_13, %c0_14] : memref<128x128xbf16, #tpu.memory_space<vmem>>, vector<128x128xbf16>
    %cst_15 = arith.constant dense<0.000000e+00> : vector<32x128xf32>
    %37 = tpu.matmul %22, %36, %cst_15 {dimension_numbers = #tpu.dot_dimension_numbers<[1], [0], [0], [1], [0, 0, 1, 1], [], []>} : vector<32x128xbf16>, vector<128x128xbf16>, vector<32x128xf32> -> vector<32x128xf32>
    %38 = arith.truncf %37 : vector<32x128xf32> to vector<32x128xbf16>
    %39 = vector.extract_strided_slice %38 {offsets = [0, 0], sizes = [32, 32], strides = [1, 1]} : vector<32x128xbf16> to vector<32x32xbf16>
    %40 = vector.extract_strided_slice %38 {offsets = [0, 32], sizes = [32, 32], strides = [1, 1]} : vector<32x128xbf16> to vector<32x32xbf16>
    %41 = vector.extract_strided_slice %38 {offsets = [0, 64], sizes = [32, 32], strides = [1, 1]} : vector<32x128xbf16> to vector<32x32xbf16>
    %42 = vector.extract_strided_slice %38 {offsets = [0, 96], sizes = [32, 32], strides = [1, 1]} : vector<32x128xbf16> to vector<32x32xbf16>
    %43 = vector.shape_cast %39 : vector<32x32xbf16> to vector<1x32x32xbf16>
    %44 = vector.shape_cast %40 : vector<32x32xbf16> to vector<1x32x32xbf16>
    %45 = vector.shape_cast %41 : vector<32x32xbf16> to vector<1x32x32xbf16>
    %46 = vector.shape_cast %42 : vector<32x32xbf16> to vector<1x32x32xbf16>
    %47 = tpu.concatenate %43, %44, %45, %46 in 0 : vector<1x32x32xbf16>, vector<1x32x32xbf16>, vector<1x32x32xbf16>, vector<1x32x32xbf16> -> vector<4x32x32xbf16>
    %48 = vector.shape_cast %47 : vector<4x32x32xbf16> to vector<8x16x32xbf16>
    %c0_16 = arith.constant 0 : index
    %c0_17 = arith.constant 0 : index
    %49 = vector.load %arg7[%c0_16, %c0_17] : memref<128x128xbf16, #tpu.memory_space<vmem>>, vector<128x128xbf16>
    %cst_18 = arith.constant dense<0.000000e+00> : vector<32x128xf32>
    %50 = tpu.matmul %22, %49, %cst_18 {dimension_numbers = #tpu.dot_dimension_numbers<[1], [0], [0], [1], [0, 0, 1, 1], [], []>} : vector<32x128xbf16>, vector<128x128xbf16>, vector<32x128xf32> -> vector<32x128xf32>
    %51 = arith.truncf %50 : vector<32x128xf32> to vector<32x128xbf16>
    %52 = vector.extract_strided_slice %51 {offsets = [0, 0], sizes = [32, 32], strides = [1, 1]} : vector<32x128xbf16> to vector<32x32xbf16>
    %53 = vector.extract_strided_slice %51 {offsets = [0, 32], sizes = [32, 32], strides = [1, 1]} : vector<32x128xbf16> to vector<32x32xbf16>
    %54 = vector.extract_strided_slice %51 {offsets = [0, 64], sizes = [32, 32], strides = [1, 1]} : vector<32x128xbf16> to vector<32x32xbf16>
    %55 = vector.extract_strided_slice %51 {offsets = [0, 96], sizes = [32, 32], strides = [1, 1]} : vector<32x128xbf16> to vector<32x32xbf16>
    %56 = vector.shape_cast %52 : vector<32x32xbf16> to vector<1x32x32xbf16>
    %57 = vector.shape_cast %53 : vector<32x32xbf16> to vector<1x32x32xbf16>
    %58 = vector.shape_cast %54 : vector<32x32xbf16> to vector<1x32x32xbf16>
    %59 = vector.shape_cast %55 : vector<32x32xbf16> to vector<1x32x32xbf16>
    %60 = tpu.concatenate %56, %57, %58, %59 in 0 : vector<1x32x32xbf16>, vector<1x32x32xbf16>, vector<1x32x32xbf16>, vector<1x32x32xbf16> -> vector<4x32x32xbf16>
    %61 = vector.shape_cast %60 : vector<4x32x32xbf16> to vector<8x16x32xbf16>
    "tpu.trace_start"() <{level = 10 : i32, message = "bqd,bkd->bqk"}> : () -> ()
    %cst_19 = arith.constant dense<0.000000e+00> : vector<8x16x16xf32>
    %62 = tpu.matmul %35, %48, %cst_19 {dimension_numbers = #tpu.dot_dimension_numbers<[2], [2], [1], [1], [0, 0, 0, 1, 1, 1], [0], [0]>} : vector<8x16x32xbf16>, vector<8x16x32xbf16>, vector<8x16x16xf32> -> vector<8x16x16xf32>
    "tpu.trace_stop"() : () -> ()
    %cst_20 = arith.constant 0.0883883461 : f32
    %63 = vector.broadcast %cst_20 : f32 to vector<8x16x16xf32>
    %64 = arith.mulf %62, %63 : vector<8x16x16xf32>
    %65 = vector.shape_cast %64 : vector<8x16x16xf32> to vector<4x2x16x16xf32>
    %66 = vector.shape_cast %14 : vector<2x16x16xi1> to vector<1x2x16x16xi1>
    %cst_21 = arith.constant -1.000000e+30 : f32
    %67 = vector.shape_cast %66 : vector<1x2x16x16xi1> to vector<1x2x16x16xi1>
    %68 = vector.broadcast %67 : vector<1x2x16x16xi1> to vector<4x2x16x16xi1>
    %69 = vector.broadcast %cst_21 : f32 to vector<4x2x16x16xf32>
    %70 = arith.select %68, %69, %65 : vector<4x2x16x16xi1>, vector<4x2x16x16xf32>
    %71 = vector.shape_cast %70 : vector<4x2x16x16xf32> to vector<8x16x16xf32>
    %cst_22 = arith.constant dense<0xFF800000> : vector<8x16xf32>
    %72 = vector.multi_reduction <maximumf>, %71, %cst_22 [2] : vector<8x16x16xf32> to vector<8x16xf32>
    %73 = vector.shape_cast %72 : vector<8x16xf32> to vector<8x16x1xf32>
    %74 = vector.broadcast %73 : vector<8x16x1xf32> to vector<8x16x16xf32>
    %75 = arith.subf %71, %74 : vector<8x16x16xf32>
    %76 = math.exp %75 : vector<8x16x16xf32>
    %cst_23 = arith.constant dense<0.000000e+00> : vector<8x16xf32>
    %77 = vector.multi_reduction <add>, %76, %cst_23 [2] : vector<8x16x16xf32> to vector<8x16xf32>
    %78 = vector.shape_cast %77 : vector<8x16xf32> to vector<8x16x1xf32>
    %79 = tpu.reciprocal %78 {approx = true} : vector<8x16x1xf32> -> vector<8x16x1xf32>
    %80 = vector.broadcast %79 : vector<8x16x1xf32> to vector<8x16x16xf32>
    %81 = arith.mulf %76, %80 : vector<8x16x16xf32>
    %82 = arith.truncf %81 : vector<8x16x16xf32> to vector<8x16x16xbf16>
    "tpu.trace_start"() <{level = 10 : i32, message = "bqk,bkd->bqd"}> : () -> ()
    %cst_24 = arith.constant dense<0.000000e+00> : vector<8x16x32xf32>
    %83 = tpu.matmul %82, %61, %cst_24 {dimension_numbers = #tpu.dot_dimension_numbers<[2], [1], [1], [2], [0, 0, 0, 1, 1, 2], [0], [0]>} : vector<8x16x16xbf16>, vector<8x16x32xbf16>, vector<8x16x32xf32> -> vector<8x16x32xf32>
    "tpu.trace_stop"() : () -> ()
    %84 = arith.truncf %83 : vector<8x16x32xf32> to vector<8x16x32xbf16>
    %85 = vector.shape_cast %84 : vector<8x16x32xbf16> to vector<4x32x32xbf16>
    %86 = vector.extract_strided_slice %85 {offsets = [0, 0, 0], sizes = [1, 32, 32], strides = [1, 1, 1]} : vector<4x32x32xbf16> to vector<1x32x32xbf16>
    %87 = vector.shape_cast %86 : vector<1x32x32xbf16> to vector<32x32xbf16>
    %88 = vector.extract_strided_slice %85 {offsets = [1, 0, 0], sizes = [1, 32, 32], strides = [1, 1, 1]} : vector<4x32x32xbf16> to vector<1x32x32xbf16>
    %89 = vector.shape_cast %88 : vector<1x32x32xbf16> to vector<32x32xbf16>
    %90 = vector.extract_strided_slice %85 {offsets = [2, 0, 0], sizes = [1, 32, 32], strides = [1, 1, 1]} : vector<4x32x32xbf16> to vector<1x32x32xbf16>
    %91 = vector.shape_cast %90 : vector<1x32x32xbf16> to vector<32x32xbf16>
    %92 = vector.extract_strided_slice %85 {offsets = [3, 0, 0], sizes = [1, 32, 32], strides = [1, 1, 1]} : vector<4x32x32xbf16> to vector<1x32x32xbf16>
    %93 = vector.shape_cast %92 : vector<1x32x32xbf16> to vector<32x32xbf16>
    %94 = tpu.concatenate %87, %89, %91, %93 in 1 : vector<32x32xbf16>, vector<32x32xbf16>, vector<32x32xbf16>, vector<32x32xbf16> -> vector<32x128xbf16>
    %c0_25 = arith.constant 0 : index
    %c0_26 = arith.constant 0 : index
    %95 = vector.load %arg8[%c0_25, %c0_26] : memref<128x128xbf16, #tpu.memory_space<vmem>>, vector<128x128xbf16>
    %cst_27 = arith.constant dense<0.000000e+00> : vector<32x128xf32>
    %96 = tpu.matmul %94, %95, %cst_27 {dimension_numbers = #tpu.dot_dimension_numbers<[1], [0], [0], [1], [0, 0, 1, 1], [], []>} : vector<32x128xbf16>, vector<128x128xbf16>, vector<32x128xf32> -> vector<32x128xf32>
    %c0_28 = arith.constant 0 : index
    %c0_29 = arith.constant 0 : index
    %97 = vector.load %arg9[%c0_28, %c0_29] : memref<1x128xf32, #tpu.memory_space<vmem>>, vector<1x128xf32>
    %98 = vector.broadcast %97 : vector<1x128xf32> to vector<32x128xf32>
    %99 = arith.addf %96, %98 : vector<32x128xf32>
    %100 = arith.addf %1, %99 : vector<32x128xf32>
    %cst_30 = arith.constant dense<0.000000e+00> : vector<32xf32>
    %101 = vector.multi_reduction <add>, %100, %cst_30 [1] : vector<32x128xf32> to vector<32xf32>
    %102 = vector.shape_cast %101 : vector<32xf32> to vector<32x1xf32>
    %cst_31 = arith.constant 1.280000e+02 : f32
    %103 = vector.broadcast %cst_31 : f32 to vector<32x1xf32>
    %104 = arith.divf %102, %103 : vector<32x1xf32>
    %105 = vector.broadcast %104 : vector<32x1xf32> to vector<32x128xf32>
    %106 = arith.subf %100, %105 : vector<32x128xf32>
    %107 = arith.mulf %106, %106 : vector<32x128xf32>
    %cst_32 = arith.constant dense<0.000000e+00> : vector<32xf32>
    %108 = vector.multi_reduction <add>, %107, %cst_32 [1] : vector<32x128xf32> to vector<32xf32>
    %109 = vector.shape_cast %108 : vector<32xf32> to vector<32x1xf32>
    %cst_33 = arith.constant 1.280000e+02 : f32
    %110 = vector.broadcast %cst_33 : f32 to vector<32x1xf32>
    %111 = arith.divf %109, %110 : vector<32x1xf32>
    %112 = vector.broadcast %104 : vector<32x1xf32> to vector<32x128xf32>
    %113 = arith.subf %100, %112 : vector<32x128xf32>
    %cst_34 = arith.constant 9.99999974E-6 : f32
    %114 = vector.broadcast %cst_34 : f32 to vector<32x1xf32>
    %115 = arith.addf %111, %114 : vector<32x1xf32>
    %116 = math.rsqrt %115 : vector<32x1xf32>
    %117 = vector.broadcast %116 : vector<32x1xf32> to vector<32x128xf32>
    %118 = arith.mulf %113, %117 : vector<32x128xf32>
    %c0_35 = arith.constant 0 : index
    %c0_36 = arith.constant 0 : index
    %119 = vector.load %arg15[%c0_35, %c0_36] : memref<1x128xf32, #tpu.memory_space<vmem>>, vector<1x128xf32>
    %120 = vector.broadcast %119 : vector<1x128xf32> to vector<32x128xf32>
    %121 = arith.mulf %118, %120 : vector<32x128xf32>
    %c0_37 = arith.constant 0 : index
    %c0_38 = arith.constant 0 : index
    %122 = vector.load %arg16[%c0_37, %c0_38] : memref<1x128xf32, #tpu.memory_space<vmem>>, vector<1x128xf32>
    %123 = vector.broadcast %122 : vector<1x128xf32> to vector<32x128xf32>
    %124 = arith.addf %121, %123 : vector<32x128xf32>
    %125 = arith.truncf %124 : vector<32x128xf32> to vector<32x128xbf16>
    %126 = arith.truncf %3 : vector<32x128xf32> to vector<32x128xbf16>
    %c0_39 = arith.constant 0 : index
    %c0_40 = arith.constant 0 : index
    %127 = vector.load %arg10[%c0_39, %c0_40] : memref<128x128xbf16, #tpu.memory_space<vmem>>, vector<128x128xbf16>
    %cst_41 = arith.constant dense<0.000000e+00> : vector<32x128xf32>
    %128 = tpu.matmul %125, %127, %cst_41 {dimension_numbers = #tpu.dot_dimension_numbers<[1], [0], [0], [1], [0, 0, 1, 1], [], []>} : vector<32x128xbf16>, vector<128x128xbf16>, vector<32x128xf32> -> vector<32x128xf32>
    %129 = arith.truncf %128 : vector<32x128xf32> to vector<32x128xbf16>
    %130 = vector.extract_strided_slice %129 {offsets = [0, 0], sizes = [32, 32], strides = [1, 1]} : vector<32x128xbf16> to vector<32x32xbf16>
    %131 = vector.extract_strided_slice %129 {offsets = [0, 32], sizes = [32, 32], strides = [1, 1]} : vector<32x128xbf16> to vector<32x32xbf16>
    %132 = vector.extract_strided_slice %129 {offsets = [0, 64], sizes = [32, 32], strides = [1, 1]} : vector<32x128xbf16> to vector<32x32xbf16>
    %133 = vector.extract_strided_slice %129 {offsets = [0, 96], sizes = [32, 32], strides = [1, 1]} : vector<32x128xbf16> to vector<32x32xbf16>
    %134 = vector.shape_cast %130 : vector<32x32xbf16> to vector<1x32x32xbf16>
    %135 = vector.shape_cast %131 : vector<32x32xbf16> to vector<1x32x32xbf16>
    %136 = vector.shape_cast %132 : vector<32x32xbf16> to vector<1x32x32xbf16>
    %137 = vector.shape_cast %133 : vector<32x32xbf16> to vector<1x32x32xbf16>
    %138 = tpu.concatenate %134, %135, %136, %137 in 0 : vector<1x32x32xbf16>, vector<1x32x32xbf16>, vector<1x32x32xbf16>, vector<1x32x32xbf16> -> vector<4x32x32xbf16>
    %139 = vector.shape_cast %138 : vector<4x32x32xbf16> to vector<8x16x32xbf16>
    %c0_42 = arith.constant 0 : index
    %c0_43 = arith.constant 0 : index
    %140 = vector.load %arg11[%c0_42, %c0_43] : memref<128x128xbf16, #tpu.memory_space<vmem>>, vector<128x128xbf16>
    %cst_44 = arith.constant dense<0.000000e+00> : vector<32x128xf32>
    %141 = tpu.matmul %126, %140, %cst_44 {dimension_numbers = #tpu.dot_dimension_numbers<[1], [0], [0], [1], [0, 0, 1, 1], [], []>} : vector<32x128xbf16>, vector<128x128xbf16>, vector<32x128xf32> -> vector<32x128xf32>
    %142 = arith.truncf %141 : vector<32x128xf32> to vector<32x128xbf16>
    %143 = vector.extract_strided_slice %142 {offsets = [0, 0], sizes = [32, 32], strides = [1, 1]} : vector<32x128xbf16> to vector<32x32xbf16>
    %144 = vector.extract_strided_slice %142 {offsets = [0, 32], sizes = [32, 32], strides = [1, 1]} : vector<32x128xbf16> to vector<32x32xbf16>
    %145 = vector.extract_strided_slice %142 {offsets = [0, 64], sizes = [32, 32], strides = [1, 1]} : vector<32x128xbf16> to vector<32x32xbf16>
    %146 = vector.extract_strided_slice %142 {offsets = [0, 96], sizes = [32, 32], strides = [1, 1]} : vector<32x128xbf16> to vector<32x32xbf16>
    %147 = vector.shape_cast %143 : vector<32x32xbf16> to vector<1x32x32xbf16>
    %148 = vector.shape_cast %144 : vector<32x32xbf16> to vector<1x32x32xbf16>
    %149 = vector.shape_cast %145 : vector<32x32xbf16> to vector<1x32x32xbf16>
    %150 = vector.shape_cast %146 : vector<32x32xbf16> to vector<1x32x32xbf16>
    %151 = tpu.concatenate %147, %148, %149, %150 in 0 : vector<1x32x32xbf16>, vector<1x32x32xbf16>, vector<1x32x32xbf16>, vector<1x32x32xbf16> -> vector<4x32x32xbf16>
    %152 = vector.shape_cast %151 : vector<4x32x32xbf16> to vector<8x16x32xbf16>
    %c0_45 = arith.constant 0 : index
    %c0_46 = arith.constant 0 : index
    %153 = vector.load %arg12[%c0_45, %c0_46] : memref<128x128xbf16, #tpu.memory_space<vmem>>, vector<128x128xbf16>
    %cst_47 = arith.constant dense<0.000000e+00> : vector<32x128xf32>
    %154 = tpu.matmul %126, %153, %cst_47 {dimension_numbers = #tpu.dot_dimension_numbers<[1], [0], [0], [1], [0, 0, 1, 1], [], []>} : vector<32x128xbf16>, vector<128x128xbf16>, vector<32x128xf32> -> vector<32x128xf32>
    %155 = arith.truncf %154 : vector<32x128xf32> to vector<32x128xbf16>
    %156 = vector.extract_strided_slice %155 {offsets = [0, 0], sizes = [32, 32], strides = [1, 1]} : vector<32x128xbf16> to vector<32x32xbf16>
    %157 = vector.extract_strided_slice %155 {offsets = [0, 32], sizes = [32, 32], strides = [1, 1]} : vector<32x128xbf16> to vector<32x32xbf16>
    %158 = vector.extract_strided_slice %155 {offsets = [0, 64], sizes = [32, 32], strides = [1, 1]} : vector<32x128xbf16> to vector<32x32xbf16>
    %159 = vector.extract_strided_slice %155 {offsets = [0, 96], sizes = [32, 32], strides = [1, 1]} : vector<32x128xbf16> to vector<32x32xbf16>
    %160 = vector.shape_cast %156 : vector<32x32xbf16> to vector<1x32x32xbf16>
    %161 = vector.shape_cast %157 : vector<32x32xbf16> to vector<1x32x32xbf16>
    %162 = vector.shape_cast %158 : vector<32x32xbf16> to vector<1x32x32xbf16>
    %163 = vector.shape_cast %159 : vector<32x32xbf16> to vector<1x32x32xbf16>
    %164 = tpu.concatenate %160, %161, %162, %163 in 0 : vector<1x32x32xbf16>, vector<1x32x32xbf16>, vector<1x32x32xbf16>, vector<1x32x32xbf16> -> vector<4x32x32xbf16>
    %165 = vector.shape_cast %164 : vector<4x32x32xbf16> to vector<8x16x32xbf16>
    "tpu.trace_start"() <{level = 10 : i32, message = "bqd,bkd->bqk"}> : () -> ()
    %cst_48 = arith.constant dense<0.000000e+00> : vector<8x16x16xf32>
    %166 = tpu.matmul %139, %152, %cst_48 {dimension_numbers = #tpu.dot_dimension_numbers<[2], [2], [1], [1], [0, 0, 0, 1, 1, 1], [0], [0]>} : vector<8x16x32xbf16>, vector<8x16x32xbf16>, vector<8x16x16xf32> -> vector<8x16x16xf32>
    "tpu.trace_stop"() : () -> ()
    %cst_49 = arith.constant 0.0883883461 : f32
    %167 = vector.broadcast %cst_49 : f32 to vector<8x16x16xf32>
    %168 = arith.mulf %166, %167 : vector<8x16x16xf32>
    %169 = vector.shape_cast %168 : vector<8x16x16xf32> to vector<4x2x16x16xf32>
    %170 = vector.shape_cast %20 : vector<2x16x16xi1> to vector<1x2x16x16xi1>
    %cst_50 = arith.constant -1.000000e+30 : f32
    %171 = vector.shape_cast %170 : vector<1x2x16x16xi1> to vector<1x2x16x16xi1>
    %172 = vector.broadcast %171 : vector<1x2x16x16xi1> to vector<4x2x16x16xi1>
    %173 = vector.broadcast %cst_50 : f32 to vector<4x2x16x16xf32>
    %174 = arith.select %172, %173, %169 : vector<4x2x16x16xi1>, vector<4x2x16x16xf32>
    %175 = vector.shape_cast %174 : vector<4x2x16x16xf32> to vector<8x16x16xf32>
    %cst_51 = arith.constant dense<0xFF800000> : vector<8x16xf32>
    %176 = vector.multi_reduction <maximumf>, %175, %cst_51 [2] : vector<8x16x16xf32> to vector<8x16xf32>
    %177 = vector.shape_cast %176 : vector<8x16xf32> to vector<8x16x1xf32>
    %178 = vector.broadcast %177 : vector<8x16x1xf32> to vector<8x16x16xf32>
    %179 = arith.subf %175, %178 : vector<8x16x16xf32>
    %180 = math.exp %179 : vector<8x16x16xf32>
    %cst_52 = arith.constant dense<0.000000e+00> : vector<8x16xf32>
    %181 = vector.multi_reduction <add>, %180, %cst_52 [2] : vector<8x16x16xf32> to vector<8x16xf32>
    %182 = vector.shape_cast %181 : vector<8x16xf32> to vector<8x16x1xf32>
    %183 = tpu.reciprocal %182 {approx = true} : vector<8x16x1xf32> -> vector<8x16x1xf32>
    %184 = vector.broadcast %183 : vector<8x16x1xf32> to vector<8x16x16xf32>
    %185 = arith.mulf %180, %184 : vector<8x16x16xf32>
    %186 = arith.truncf %185 : vector<8x16x16xf32> to vector<8x16x16xbf16>
    "tpu.trace_start"() <{level = 10 : i32, message = "bqk,bkd->bqd"}> : () -> ()
    %cst_53 = arith.constant dense<0.000000e+00> : vector<8x16x32xf32>
    %187 = tpu.matmul %186, %165, %cst_53 {dimension_numbers = #tpu.dot_dimension_numbers<[2], [1], [1], [2], [0, 0, 0, 1, 1, 2], [0], [0]>} : vector<8x16x16xbf16>, vector<8x16x32xbf16>, vector<8x16x32xf32> -> vector<8x16x32xf32>
    "tpu.trace_stop"() : () -> ()
    %188 = arith.truncf %187 : vector<8x16x32xf32> to vector<8x16x32xbf16>
    %189 = vector.shape_cast %188 : vector<8x16x32xbf16> to vector<4x32x32xbf16>
    %190 = vector.extract_strided_slice %189 {offsets = [0, 0, 0], sizes = [1, 32, 32], strides = [1, 1, 1]} : vector<4x32x32xbf16> to vector<1x32x32xbf16>
    %191 = vector.shape_cast %190 : vector<1x32x32xbf16> to vector<32x32xbf16>
    %192 = vector.extract_strided_slice %189 {offsets = [1, 0, 0], sizes = [1, 32, 32], strides = [1, 1, 1]} : vector<4x32x32xbf16> to vector<1x32x32xbf16>
    %193 = vector.shape_cast %192 : vector<1x32x32xbf16> to vector<32x32xbf16>
    %194 = vector.extract_strided_slice %189 {offsets = [2, 0, 0], sizes = [1, 32, 32], strides = [1, 1, 1]} : vector<4x32x32xbf16> to vector<1x32x32xbf16>
    %195 = vector.shape_cast %194 : vector<1x32x32xbf16> to vector<32x32xbf16>
    %196 = vector.extract_strided_slice %189 {offsets = [3, 0, 0], sizes = [1, 32, 32], strides = [1, 1, 1]} : vector<4x32x32xbf16> to vector<1x32x32xbf16>
    %197 = vector.shape_cast %196 : vector<1x32x32xbf16> to vector<32x32xbf16>
    %198 = tpu.concatenate %191, %193, %195, %197 in 1 : vector<32x32xbf16>, vector<32x32xbf16>, vector<32x32xbf16>, vector<32x32xbf16> -> vector<32x128xbf16>
    %c0_54 = arith.constant 0 : index
    %c0_55 = arith.constant 0 : index
    %199 = vector.load %arg13[%c0_54, %c0_55] : memref<128x128xbf16, #tpu.memory_space<vmem>>, vector<128x128xbf16>
    %cst_56 = arith.constant dense<0.000000e+00> : vector<32x128xf32>
    %200 = tpu.matmul %198, %199, %cst_56 {dimension_numbers = #tpu.dot_dimension_numbers<[1], [0], [0], [1], [0, 0, 1, 1], [], []>} : vector<32x128xbf16>, vector<128x128xbf16>, vector<32x128xf32> -> vector<32x128xf32>
    %c0_57 = arith.constant 0 : index
    %c0_58 = arith.constant 0 : index
    %201 = vector.load %arg14[%c0_57, %c0_58] : memref<1x128xf32, #tpu.memory_space<vmem>>, vector<1x128xf32>
    %202 = vector.broadcast %201 : vector<1x128xf32> to vector<32x128xf32>
    %203 = arith.addf %200, %202 : vector<32x128xf32>
    %204 = arith.addf %124, %203 : vector<32x128xf32>
    %cst_59 = arith.constant dense<0.000000e+00> : vector<32xf32>
    %205 = vector.multi_reduction <add>, %204, %cst_59 [1] : vector<32x128xf32> to vector<32xf32>
    %206 = vector.shape_cast %205 : vector<32xf32> to vector<32x1xf32>
    %cst_60 = arith.constant 1.280000e+02 : f32
    %207 = vector.broadcast %cst_60 : f32 to vector<32x1xf32>
    %208 = arith.divf %206, %207 : vector<32x1xf32>
    %209 = vector.broadcast %208 : vector<32x1xf32> to vector<32x128xf32>
    %210 = arith.subf %204, %209 : vector<32x128xf32>
    %211 = arith.mulf %210, %210 : vector<32x128xf32>
    %cst_61 = arith.constant dense<0.000000e+00> : vector<32xf32>
    %212 = vector.multi_reduction <add>, %211, %cst_61 [1] : vector<32x128xf32> to vector<32xf32>
    %213 = vector.shape_cast %212 : vector<32xf32> to vector<32x1xf32>
    %cst_62 = arith.constant 1.280000e+02 : f32
    %214 = vector.broadcast %cst_62 : f32 to vector<32x1xf32>
    %215 = arith.divf %213, %214 : vector<32x1xf32>
    %216 = vector.broadcast %208 : vector<32x1xf32> to vector<32x128xf32>
    %217 = arith.subf %204, %216 : vector<32x128xf32>
    %cst_63 = arith.constant 9.99999974E-6 : f32
    %218 = vector.broadcast %cst_63 : f32 to vector<32x1xf32>
    %219 = arith.addf %215, %218 : vector<32x1xf32>
    %220 = math.rsqrt %219 : vector<32x1xf32>
    %221 = vector.broadcast %220 : vector<32x1xf32> to vector<32x128xf32>
    %222 = arith.mulf %217, %221 : vector<32x128xf32>
    %c0_64 = arith.constant 0 : index
    %c0_65 = arith.constant 0 : index
    %223 = vector.load %arg17[%c0_64, %c0_65] : memref<1x128xf32, #tpu.memory_space<vmem>>, vector<1x128xf32>
    %224 = vector.broadcast %223 : vector<1x128xf32> to vector<32x128xf32>
    %225 = arith.mulf %222, %224 : vector<32x128xf32>
    %c0_66 = arith.constant 0 : index
    %c0_67 = arith.constant 0 : index
    %226 = vector.load %arg18[%c0_66, %c0_67] : memref<1x128xf32, #tpu.memory_space<vmem>>, vector<1x128xf32>
    %227 = vector.broadcast %226 : vector<1x128xf32> to vector<32x128xf32>
    %228 = arith.addf %225, %227 : vector<32x128xf32>
    %229 = arith.truncf %228 : vector<32x128xf32> to vector<32x128xbf16>
    %c0_68 = arith.constant 0 : index
    %c0_69 = arith.constant 0 : index
    %230 = vector.load %arg21[%c0_68, %c0_69] : memref<128x512xbf16, #tpu.memory_space<vmem>>, vector<128x512xbf16>
    %cst_70 = arith.constant dense<0.000000e+00> : vector<32x512xf32>
    %231 = tpu.matmul %229, %230, %cst_70 {dimension_numbers = #tpu.dot_dimension_numbers<[1], [0], [0], [1], [0, 0, 1, 1], [], []>} : vector<32x128xbf16>, vector<128x512xbf16>, vector<32x512xf32> -> vector<32x512xf32>
    %c0_71 = arith.constant 0 : index
    %c0_72 = arith.constant 0 : index
    %232 = vector.load %arg22[%c0_71, %c0_72] : memref<1x512xf32, #tpu.memory_space<vmem>>, vector<1x512xf32>
    %233 = vector.broadcast %232 : vector<1x512xf32> to vector<32x512xf32>
    %234 = arith.addf %231, %233 : vector<32x512xf32>
    %cst_73 = arith.constant 0.000000e+00 : f32
    %235 = vector.broadcast %cst_73 : f32 to vector<32x512xf32>
    %236 = arith.maximumf %234, %235 : vector<32x512xf32>
    %237 = arith.truncf %236 : vector<32x512xf32> to vector<32x512xbf16>
    %c0_74 = arith.constant 0 : index
    %c0_75 = arith.constant 0 : index
    %238 = vector.load %arg23[%c0_74, %c0_75] : memref<512x128xbf16, #tpu.memory_space<vmem>>, vector<512x128xbf16>
    %cst_76 = arith.constant dense<0.000000e+00> : vector<32x128xf32>
    %239 = tpu.matmul %237, %238, %cst_76 {dimension_numbers = #tpu.dot_dimension_numbers<[1], [0], [0], [1], [0, 0, 1, 1], [], []>} : vector<32x512xbf16>, vector<512x128xbf16>, vector<32x128xf32> -> vector<32x128xf32>
    %c0_77 = arith.constant 0 : index
    %c0_78 = arith.constant 0 : index
    %240 = vector.load %arg24[%c0_77, %c0_78] : memref<1x128xf32, #tpu.memory_space<vmem>>, vector<1x128xf32>
    %241 = vector.broadcast %240 : vector<1x128xf32> to vector<32x128xf32>
    %242 = arith.addf %239, %241 : vector<32x128xf32>
    %243 = arith.addf %228, %242 : vector<32x128xf32>
    %cst_79 = arith.constant dense<0.000000e+00> : vector<32xf32>
    %244 = vector.multi_reduction <add>, %243, %cst_79 [1] : vector<32x128xf32> to vector<32xf32>
    %245 = vector.shape_cast %244 : vector<32xf32> to vector<32x1xf32>
    %cst_80 = arith.constant 1.280000e+02 : f32
    %246 = vector.broadcast %cst_80 : f32 to vector<32x1xf32>
    %247 = arith.divf %245, %246 : vector<32x1xf32>
    %248 = vector.broadcast %247 : vector<32x1xf32> to vector<32x128xf32>
    %249 = arith.subf %243, %248 : vector<32x128xf32>
    %250 = arith.mulf %249, %249 : vector<32x128xf32>
    %cst_81 = arith.constant dense<0.000000e+00> : vector<32xf32>
    %251 = vector.multi_reduction <add>, %250, %cst_81 [1] : vector<32x128xf32> to vector<32xf32>
    %252 = vector.shape_cast %251 : vector<32xf32> to vector<32x1xf32>
    %cst_82 = arith.constant 1.280000e+02 : f32
    %253 = vector.broadcast %cst_82 : f32 to vector<32x1xf32>
    %254 = arith.divf %252, %253 : vector<32x1xf32>
    %255 = vector.broadcast %247 : vector<32x1xf32> to vector<32x128xf32>
    %256 = arith.subf %243, %255 : vector<32x128xf32>
    %cst_83 = arith.constant 9.99999974E-6 : f32
    %257 = vector.broadcast %cst_83 : f32 to vector<32x1xf32>
    %258 = arith.addf %254, %257 : vector<32x1xf32>
    %259 = math.rsqrt %258 : vector<32x1xf32>
    %260 = vector.broadcast %259 : vector<32x1xf32> to vector<32x128xf32>
    %261 = arith.mulf %256, %260 : vector<32x128xf32>
    %c0_84 = arith.constant 0 : index
    %c0_85 = arith.constant 0 : index
    %262 = vector.load %arg19[%c0_84, %c0_85] : memref<1x128xf32, #tpu.memory_space<vmem>>, vector<1x128xf32>
    %263 = vector.broadcast %262 : vector<1x128xf32> to vector<32x128xf32>
    %264 = arith.mulf %261, %263 : vector<32x128xf32>
    %c0_86 = arith.constant 0 : index
    %c0_87 = arith.constant 0 : index
    %265 = vector.load %arg20[%c0_86, %c0_87] : memref<1x128xf32, #tpu.memory_space<vmem>>, vector<1x128xf32>
    %266 = vector.broadcast %265 : vector<1x128xf32> to vector<32x128xf32>
    %267 = arith.addf %264, %266 : vector<32x128xf32>
    %268 = vector.shape_cast %267 : vector<32x128xf32> to vector<2x16x128xf32>
    %c0_88 = arith.constant 0 : index
    %c0_89 = arith.constant 0 : index
    %c0_90 = arith.constant 0 : index
    %269 = vector.load %arg25[%c0_88, %c0_89, %c0_90] : memref<2x16x128xf32, #tpu.memory_space<vmem>>, vector<2x16x128xf32>
    tpu.vector_store %arg25[%c0_88, %c0_89, %c0_90], %268 {strides = array<i32>} : memref<2x16x128xf32, #tpu.memory_space<vmem>>, vector<2x16x128xf32>,
    return
  }
  func.func @transform_0(%arg0: i32) -> (i32, i32, i32) {
    %c0_i32 = arith.constant 0 : i32
    %c0_i32_0 = arith.constant 0 : i32
    %c0_i32_1 = arith.constant 0 : i32
    return %arg0, %c0_i32, %c0_i32_0 : i32, i32, i32
  }
  func.func @transform_1(%arg0: i32) -> (i32, i32, i32) {
    %c0_i32 = arith.constant 0 : i32
    %c0_i32_0 = arith.constant 0 : i32
    %c0_i32_1 = arith.constant 0 : i32
    return %arg0, %c0_i32, %c0_i32_0 : i32, i32, i32
  }
  func.func @transform_2(%arg0: i32) -> (i32, i32) {
    %c0_i32 = arith.constant 0 : i32
    %c0_i32_0 = arith.constant 0 : i32
    return %arg0, %c0_i32 : i32, i32
  }
  func.func @transform_3(%arg0: i32) -> (i32, i32) {
    %c0_i32 = arith.constant 0 : i32
    %c0_i32_0 = arith.constant 0 : i32
    return %arg0, %c0_i32 : i32, i32
  }
  func.func @transform_4(%arg0: i32) -> (i32, i32) {
    %c0_i32 = arith.constant 0 : i32
    %c0_i32_0 = arith.constant 0 : i32
    %c0_i32_1 = arith.constant 0 : i32
    return %c0_i32, %c0_i32_0 : i32, i32
  }
  func.func @transform_5(%arg0: i32) -> (i32, i32) {
    %c0_i32 = arith.constant 0 : i32
    %c0_i32_0 = arith.constant 0 : i32
    %c0_i32_1 = arith.constant 0 : i32
    return %c0_i32, %c0_i32_0 : i32, i32
  }
  func.func @transform_6(%arg0: i32) -> (i32, i32) {
    %c0_i32 = arith.constant 0 : i32
    %c0_i32_0 = arith.constant 0 : i32
    %c0_i32_1 = arith.constant 0 : i32
    return %c0_i32, %c0_i32_0 : i32, i32
  }
  func.func @transform_7(%arg0: i32) -> (i32, i32) {
    %c0_i32 = arith.constant 0 : i32
    %c0_i32_0 = arith.constant 0 : i32
    %c0_i32_1 = arith.constant 0 : i32
    return %c0_i32, %c0_i32_0 : i32, i32
  }
  func.func @transform_8(%arg0: i32) -> (i32, i32) {
    %c0_i32 = arith.constant 0 : i32
    %c0_i32_0 = arith.constant 0 : i32
    %c0_i32_1 = arith.constant 0 : i32
    return %c0_i32, %c0_i32_0 : i32, i32
  }
  func.func @transform_9(%arg0: i32) -> (i32, i32) {
    %c0_i32 = arith.constant 0 : i32
    %c0_i32_0 = arith.constant 0 : i32
    %c0_i32_1 = arith.constant 0 : i32
    return %c0_i32, %c0_i32_0 : i32, i32
  }
  func.func @transform_10(%arg0: i32) -> (i32, i32) {
    %c0_i32 = arith.constant 0 : i32
    %c0_i32_0 = arith.constant 0 : i32
    %c0_i32_1 = arith.constant 0 : i32
    return %c0_i32, %c0_i32_0 : i32, i32
  }
  func.func @transform_11(%arg0: i32) -> (i32, i32) {
    %c0_i32 = arith.constant 0 : i32
    %c0_i32_0 = arith.constant 0 : i32
    %c0_i32_1 = arith.constant 0 : i32
    return %c0_i32, %c0_i32_0 : i32, i32
  }
  func.func @transform_12(%arg0: i32) -> (i32, i32) {
    %c0_i32 = arith.constant 0 : i32
    %c0_i32_0 = arith.constant 0 : i32
    %c0_i32_1 = arith.constant 0 : i32
    return %c0_i32, %c0_i32_0 : i32, i32
  }
  func.func @transform_13(%arg0: i32) -> (i32, i32) {
    %c0_i32 = arith.constant 0 : i32
    %c0_i32_0 = arith.constant 0 : i32
    %c0_i32_1 = arith.constant 0 : i32
    return %c0_i32, %c0_i32_0 : i32, i32
  }
  func.func @transform_14(%arg0: i32) -> (i32, i32) {
    %c0_i32 = arith.constant 0 : i32
    %c0_i32_0 = arith.constant 0 : i32
    %c0_i32_1 = arith.constant 0 : i32
    return %c0_i32, %c0_i32_0 : i32, i32
  }
  func.func @transform_15(%arg0: i32) -> (i32, i32) {
    %c0_i32 = arith.constant 0 : i32
    %c0_i32_0 = arith.constant 0 : i32
    %c0_i32_1 = arith.constant 0 : i32
    return %c0_i32, %c0_i32_0 : i32, i32
  }
  func.func @transform_16(%arg0: i32) -> (i32, i32) {
    %c0_i32 = arith.constant 0 : i32
    %c0_i32_0 = arith.constant 0 : i32
    %c0_i32_1 = arith.constant 0 : i32
    return %c0_i32, %c0_i32_0 : i32, i32
  }
  func.func @transform_17(%arg0: i32) -> (i32, i32) {
    %c0_i32 = arith.constant 0 : i32
    %c0_i32_0 = arith.constant 0 : i32
    %c0_i32_1 = arith.constant 0 : i32
    return %c0_i32, %c0_i32_0 : i32, i32
  }
  func.func @transform_18(%arg0: i32) -> (i32, i32) {
    %c0_i32 = arith.constant 0 : i32
    %c0_i32_0 = arith.constant 0 : i32
    %c0_i32_1 = arith.constant 0 : i32
    return %c0_i32, %c0_i32_0 : i32, i32
  }
  func.func @transform_19(%arg0: i32) -> (i32, i32) {
    %c0_i32 = arith.constant 0 : i32
    %c0_i32_0 = arith.constant 0 : i32
    %c0_i32_1 = arith.constant 0 : i32
    return %c0_i32, %c0_i32_0 : i32, i32
  }
  func.func @transform_20(%arg0: i32) -> (i32, i32) {
    %c0_i32 = arith.constant 0 : i32
    %c0_i32_0 = arith.constant 0 : i32
    %c0_i32_1 = arith.constant 0 : i32
    return %c0_i32, %c0_i32_0 : i32, i32
  }
  func.func @transform_21(%arg0: i32) -> (i32, i32) {
    %c0_i32 = arith.constant 0 : i32
    %c0_i32_0 = arith.constant 0 : i32
    %c0_i32_1 = arith.constant 0 : i32
    return %c0_i32, %c0_i32_0 : i32, i32
  }
  func.func @transform_22(%arg0: i32) -> (i32, i32) {
    %c0_i32 = arith.constant 0 : i32
    %c0_i32_0 = arith.constant 0 : i32
    %c0_i32_1 = arith.constant 0 : i32
    return %c0_i32, %c0_i32_0 : i32, i32
  }
  func.func @transform_23(%arg0: i32) -> (i32, i32) {
    %c0_i32 = arith.constant 0 : i32
    %c0_i32_0 = arith.constant 0 : i32
    %c0_i32_1 = arith.constant 0 : i32
    return %c0_i32, %c0_i32_0 : i32, i32
  }
  func.func @transform_24(%arg0: i32) -> (i32, i32, i32) {
    %c0_i32 = arith.constant 0 : i32
    %c0_i32_0 = arith.constant 0 : i32
    %c0_i32_1 = arith.constant 0 : i32
    return %arg0, %c0_i32, %c0_i32_0 : i32, i32, i32
  }
}

</mosaic_0001>

<bundles_post_ra>
// kernel: tpu_custom_call.1
= control target key start
LH: loop header
LB: loop body
LE: loop exit
PB: predicated region body
PF: predicated region fallthrough
CT: control target
= control target key end

     0   :  { %s6714_s0 = inlined_call_operand.hbm [shape: f32[2,16,128], index: 0, kind: input, shape index: {}]   ;;  %s6715_s1 = inlined_call_operand.hbm [shape: f32[2,16,128], index: 1, kind: input, shape index: {}]   ;;  %s6716_s2 = inlined_call_operand.vmem [shape: f32[2,16], index: 2, kind: input, shape index: {}]   ;;  %s6717_s3 = inlined_call_operand.hbm [shape: f32[2,16], index: 3, kind: input, shape index: {}]   ;;  %s6718_s4 = inlined_call_operand.hbm [shape: bf16[128,128], index: 4, kind: input, shape index: {}]   ;;  %s6719_s5 = inlined_call_operand.hbm [shape: bf16[128,128], index: 5, kind: input, shape index: {}]   ;;  %s6720_s6 = inlined_call_operand.hbm [shape: bf16[128,128], index: 6, kind: input, shape index: {}]   ;;  %s6721_s7 = inlined_call_operand.hbm [shape: bf16[128,128], index: 7, kind: input, shape index: {}]   ;;  %s6722_s8 = inlined_call_operand.vmem [shape: f32[1,128], index: 8, kind: input, shape index: {}]   ;;  %s6723_s9 = inlined_call_operand.hbm [shape: bf16[128,128], index: 9, kind: input, shape index: {}]   ;;  %s6724_s10 = inlined_call_operand.hbm [shape: bf16[128,128], index: 10, kind: input, shape index: {}]   ;;  %s6725_s11 = inlined_call_operand.hbm [shape: bf16[128,128], index: 11, kind: input, shape index: {}]   ;;  %s6726_s12 = inlined_call_operand.hbm [shape: bf16[128,128], index: 12, kind: input, shape index: {}]   ;;  %s6727_s13 = inlined_call_operand.vmem [shape: f32[1,128], index: 13, kind: input, shape index: {}]   ;;  %s6728_s14 = inlined_call_operand.vmem [shape: f32[1,128], index: 14, kind: input, shape index: {}]   ;;  %s6729_s15 = inlined_call_operand.vmem [shape: f32[1,128], index: 15, kind: input, shape index: {}]   ;;  %s6730_s16 = inlined_call_operand.vmem [shape: f32[1,128], index: 16, kind: input, shape index: {}]   ;;  %s6731_s17 = inlined_call_operand.vmem [shape: f32[1,128], index: 17, kind: input, shape index: {}]   ;;  %s6732_s18 = inlined_call_operand.vmem [shape: f32[1,128], index: 18, kind: input, shape index: {}]   ;;  %s6733_s19 = inlined_call_operand.vmem [shape: f32[1,128], index: 19, kind: input, shape index: {}]   ;;  %s6734_s20 = inlined_call_operand.hbm [shape: bf16[128,512], index: 20, kind: input, shape index: {}]   ;;  %s6735_s21 = inlined_call_operand.vmem [shape: f32[1,512], index: 21, kind: input, shape index: {}]   ;;  %s6736_s22 = inlined_call_operand.hbm [shape: bf16[512,128], index: 22, kind: input, shape index: {}]   ;;  %s6737_s23 = inlined_call_operand.vmem [shape: f32[1,128], index: 23, kind: input, shape index: {}]   ;;  %s6738_s24 = inlined_call_operand.hbm [shape: f32[2,16,128], index: 24, kind: output, shape index: {}]  }
   0x1   :  { %6741 = sst [smem:[#allocation32_spill]] %s6714_s0 }
   0x2   :  { %6742 = sst [smem:[#allocation33_spill]] %s6715_s1 }
   0x3   :  { %6743 = sst [smem:[#allocation34_spill]] %s6716_s2 }
   0x4   :  { %6744 = sst [smem:[#allocation35_spill]] %s6717_s3 }
   0x5   :  { %6745 = sst [smem:[#allocation36_spill]] %s6718_s4 }
   0x6   :  { %6746 = sst [smem:[#allocation37_spill]] %s6719_s5 }
   0x7   :  { %6747 = sst [smem:[#allocation38_spill]] %s6720_s6 }
   0x8   :  { %6748 = sst [smem:[#allocation39_spill]] %s6721_s7 }
   0x9   :  { %6749 = sst [smem:[#allocation40_spill]] %s6722_s8 }
   0xa   :  { %29 = vsyncpa [#allocation3], 0 }
   0xb   :  { %30 = vsyncpa [#allocation6], 0 }
   0xc   :  { %31 = vsyncpa [#allocation9], 0 }
   0xd   :  { %32 = vsyncpa [#allocation12], 0 }
   0xe   :  { %33 = vsyncpa [#allocation15], 0 }
   0xf   :  { %34 = vsyncpa [#allocation18], 0 }
  0x10   :  { %35 = vsyncpa [#allocation21], 0 }
  0x11   :  { %36 = vsyncpa [#allocation4], 0  ;;  %s5662_s5 = smov [#allocation5]   ;;  %s5663_s27 = smov [#allocation8]  }
  0x12   :  { %s54_s26 = sshll.u32 %s5662_s5, 4  ;;  %s78_s28 = sshll.u32 %s5663_s27, 4  ;;  %s55_s26 = int_to_ptr.vmem [resolvable:$true] %s54_s26  ;;  %s79_s28 = int_to_ptr.vmem [resolvable:$true] %s78_s28 }
  0x13   :  { %s5374_s6 = scalar_lea.vmem %s55_s26, 512  ;;  %p5379_p1 = scmp.lt.s32.totalorder %s55_s26, %s55_s26 }
  0x14   :  { %p5375_p0 = scmp.ne.s32.totalorder %s55_s26, %s5374_s6  ;;  %p5380_p2 = scmp.lt.s32.totalorder %s5374_s6, %s5374_s6 }
  0x16   :  { %p5381_p3 = por %p5380_p2, %p5379_p1 }
  0x18   :  { %p5382_p4 = pnand %p5381_p3, %p5375_p0 }
  0x1a   :  { %5385 = shalt.err (!%p5382_p4)
}
  0x1b   :  { %s6739_s2 = smov 128   ;;  %s5665_s29 = smov 8  }
  0x1c   :  { %s6750_s30 = sld [smem:[#allocation33_spill]]  ;;  %s5394_s3 = scalar_lea.vmem %s79_s28, 1024 }
  0x1d   :  { %p5395_p5 = scmp.ne.s32.totalorder %s79_s28, %s5394_s3  ;;  %p5399_p6 = scmp.lt.s32.totalorder %s79_s28, %s79_s28 }
  0x1e   :  { %p5400_p7 = scmp.lt.s32.totalorder %s5394_s3, %s5394_s3 }
  0x20   :  { %p5401_p8 = por %p5400_p7, %p5399_p6 }
  0x22   :  { %60 = dma.hbm_to_vmem [thread:$0]  %s6750_s30, 512, %s55_s26, [#allocation6], %s6739_s2, %s6739_s2, %s5665_s29  }
  0x23   :  { %p5402_p9 = pnand %p5401_p8, %p5395_p5 }
  0x25   :  { %5405 = shalt.err (!%p5402_p9)
}
  0x26   :  { %s5666_s25 = smov 64   ;;  %s5667_s8 = smov 4  }
  0x27   :  { %s6751_s5 = sld [smem:[#allocation36_spill]]  ;;  %s5668_s27 = smov [#allocation11]  }
  0x28   :  { %s102_s6 = sshll.u32 %s5668_s27, 4  ;;  %s5669_s0 = smov [#allocation14]   ;;  %s103_s6 = int_to_ptr.vmem [resolvable:$true] %s102_s6 }
  0x29   :  { %s128_s26 = sshll.u32 %s5669_s0, 4  ;;  %s5414_s7 = scalar_lea.vmem %s103_s6, 1024  ;;  %s129_s26 = int_to_ptr.vmem [resolvable:$true] %s128_s26 }
  0x2a   :  { %p5415_p10 = scmp.ne.s32.totalorder %s103_s6, %s5414_s7  ;;  %p5419_p11 = scmp.lt.s32.totalorder %s103_s6, %s103_s6 }
  0x2b   :  { %p5420_p12 = scmp.lt.s32.totalorder %s5414_s7, %s5414_s7 }
  0x2d   :  { %84 = dma.hbm_to_vmem [thread:$0]  %s6751_s5, 1024, %s79_s28, [#allocation9], %s5666_s25, %s5666_s25, %s5667_s8  }
  0x2e   :  { %p5421_p13 = por %p5420_p12, %p5419_p11 }
  0x30   :  { %p5422_p0 = pnand %p5421_p13, %p5415_p10 }
  0x32   :  { %5425 = shalt.err (!%p5422_p0)
}
  0x33   :  { %s6752_s4 = sld [smem:[#allocation38_spill]]  ;;  %s5434_s28 = scalar_lea.vmem %s129_s26, 1024 }
  0x34   :  { %p5435_p1 = scmp.ne.s32.totalorder %s129_s26, %s5434_s28  ;;  %p5439_p2 = scmp.lt.s32.totalorder %s129_s26, %s129_s26 }
  0x35   :  { %p5440_p3 = scmp.lt.s32.totalorder %s5434_s28, %s5434_s28 }
  0x37   :  { %p5441_p4 = por %p5440_p3, %p5439_p2 }
  0x39   :  { %108 = dma.hbm_to_vmem [thread:$0]  %s6752_s4, 1024, %s103_s6, [#allocation12], %s5666_s25, %s5666_s25, %s5667_s8  }
  0x3a   :  { %p5442_p5 = pnand %p5441_p4, %p5435_p1 }
  0x3c   :  { %5445 = shalt.err (!%p5442_p5)
}
  0x3d   :  { %134 = dma.hbm_to_vmem [thread:$0]  %s6723_s9, 1024, %s129_s26, [#allocation15], %s5666_s25, %s5666_s25, %s5667_s8  }
  0x3e   :  { %s5670_s27 = smov [#allocation17]   ;;  %s5671_s7 = smov [#allocation20]  }
  0x3f   :  { %s152_s0 = sshll.u32 %s5670_s27, 4  ;;  %s190_s2 = sshll.u32 %s5671_s7, 4  ;;  %s153_s0 = int_to_ptr.vmem [resolvable:$true] %s152_s0  ;;  %s191_s2 = int_to_ptr.vmem [resolvable:$true] %s190_s2 }
  0x40   :  { %s5454_s6 = scalar_lea.vmem %s153_s0, 1024  ;;  %p5459_p7 = scmp.lt.s32.totalorder %s153_s0, %s153_s0 }
  0x41   :  { %p5455_p6 = scmp.ne.s32.totalorder %s153_s0, %s5454_s6  ;;  %p5460_p8 = scmp.lt.s32.totalorder %s5454_s6, %s5454_s6 }
  0x43   :  { %p5461_p9 = por %p5460_p8, %p5459_p7 }
  0x45   :  { %p5462_p10 = pnand %p5461_p9, %p5455_p6 }
  0x47   :  { %5465 = shalt.err (!%p5462_p10)
}
  0x48   :  { %158 = dma.hbm_to_vmem [thread:$0]  %s6725_s11, 1024, %s153_s0, [#allocation18], %s5666_s25, %s5666_s25, %s5667_s8  }
  0x49   :  { %s5474_s9 = scalar_lea.vmem %s191_s2, 4096  ;;  %p5479_p12 = scmp.lt.s32.totalorder %s191_s2, %s191_s2 }
  0x4a   :  { %p5475_p11 = scmp.ne.s32.totalorder %s191_s2, %s5474_s9  ;;  %p5480_p13 = scmp.lt.s32.totalorder %s5474_s9, %s5474_s9 }
  0x4c   :  { %p5481_p0 = por %p5480_p13, %p5479_p12 }
  0x4e   :  { %p5482_p1 = pnand %p5481_p0, %p5475_p11 }
  0x50   :  { %5485 = shalt.err (!%p5482_p1)
}
  0x51   :  { %s5672_s26 = smov 256   ;;  %s5673_s4 = smov 16  }
  0x52   :  { %196 = dma.hbm_to_vmem [thread:$0]  %s6734_s20, 4096, %s191_s2, [#allocation21], %s5672_s26, %s5672_s26, %s5673_s4  }
  0x53   :  { %s5674_s5 = smov [#allocation2]   ;;  %s5675_s7 = smov [#allocation7]  }
  0x54   :  { %s42_s27 = sshll.u32 %s5674_s5, 4  ;;  %s69_s6 = sshll.u32 %s5675_s7, 4  ;;  %s43_s27 = int_to_ptr.vmem [resolvable:$true] %s42_s27  ;;  %s70_s6 = int_to_ptr.vmem [resolvable:$true] %s69_s6 }
  0x55   :  { %s5494_s11 = scalar_lea.vmem %s43_s27, 512  ;;  %p5499_p3 = scmp.lt.s32.totalorder %s43_s27, %s43_s27 }
  0x56   :  { %p5495_p2 = scmp.ne.s32.totalorder %s43_s27, %s5494_s11  ;;  %p5500_p4 = scmp.lt.s32.totalorder %s5494_s11, %s5494_s11 }
  0x58   :  { %p5501_p5 = por %p5500_p4, %p5499_p3 }
  0x5a   :  { %p5502_p6 = pnand %p5501_p5, %p5495_p2 }
  0x5c   :  { %5505 = shalt.err (!%p5502_p6)
}
  0x5d   :  { %s6753_s0 = smov 128   ;;  %s6754_s9 = sld [smem:[#allocation32_spill]] }
  0x5e   :  { %s5514_s20 = scalar_lea.vmem %s70_s6, 32  ;;  %p5519_p8 = scmp.lt.s32.totalorder %s70_s6, %s70_s6 }
  0x5f   :  { %p5515_p7 = scmp.ne.s32.totalorder %s70_s6, %s5514_s20  ;;  %p5520_p9 = scmp.lt.s32.totalorder %s5514_s20, %s5514_s20 }
  0x61   :  { %p5521_p10 = por %p5520_p9, %p5519_p8 }
  0x63   :  { %48 = dma.hbm_to_vmem [thread:$0]  %s6754_s9, 512, %s43_s27, [#allocation3], %s6753_s0, %s6753_s0, %s5665_s29  }
  0x64   :  { %p5522_p11 = pnand %p5521_p10, %p5515_p7 }
  0x66   :  { %5525 = shalt.err (!%p5522_p11)
}
  0x67   :  { %s6755_s4 = sld [smem:[#allocation35_spill]]  ;;  %s5676_s28 = smov [#allocation10]  }
  0x68   :  { %s90_s1 = sshll.u32 %s5676_s28, 4  ;;  %s5677_s5 = smov [#allocation13]   ;;  %s91_s1 = int_to_ptr.vmem [resolvable:$true] %s90_s1 }
  0x69   :  { %s114_s7 = sshll.u32 %s5677_s5, 4  ;;  %s5534_s11 = scalar_lea.vmem %s91_s1, 1024  ;;  %s115_s7 = int_to_ptr.vmem [resolvable:$true] %s114_s7 }
  0x6a   :  { %p5535_p12 = scmp.ne.s32.totalorder %s91_s1, %s5534_s11  ;;  %p5539_p13 = scmp.lt.s32.totalorder %s91_s1, %s91_s1 }
  0x6b   :  { %p5540_p0 = scmp.lt.s32.totalorder %s5534_s11, %s5534_s11 }
  0x6d   :  { %72 = dma.hbm_to_vmem [thread:$0]  %s6755_s4, 32, %s70_s6, [#allocation6]  }
  0x6e   :  { %p5541_p1 = por %p5540_p0, %p5539_p13 }
  0x70   :  { %p5542_p2 = pnand %p5541_p1, %p5535_p12 }
  0x72   :  { %5545 = shalt.err (!%p5542_p2)
}
  0x73   :  { %s6756_s3 = sld [smem:[#allocation37_spill]]  ;;  %s5554_s6 = scalar_lea.vmem %s115_s7, 1024 }
  0x74   :  { %p5555_p3 = scmp.ne.s32.totalorder %s115_s7, %s5554_s6  ;;  %p5559_p4 = scmp.lt.s32.totalorder %s115_s7, %s115_s7 }
  0x75   :  { %p5560_p5 = scmp.lt.s32.totalorder %s5554_s6, %s5554_s6 }
  0x77   :  { %p5561_p6 = por %p5560_p5, %p5559_p4 }
  0x79   :  { %96 = dma.hbm_to_vmem [thread:$0]  %s6756_s3, 1024, %s91_s1, [#allocation9], %s5666_s25, %s5666_s25, %s5667_s8  }
  0x7a   :  { %p5562_p7 = pnand %p5561_p6, %p5555_p3 }
  0x7c   :  { %5565 = shalt.err (!%p5562_p7)
}
  0x7d   :  { %s6757_s2 = sld [smem:[#allocation39_spill]]  ;;  %s5678_s26 = smov [#allocation16]  }
  0x7e   :  { %s140_s4 = sshll.u32 %s5678_s26, 4  ;;  %s5679_s28 = smov [#allocation19]   ;;  %s141_s4 = int_to_ptr.vmem [resolvable:$true] %s140_s4 }
  0x7f   :  { %s164_s5 = sshll.u32 %s5679_s28, 4  ;;  %s5574_s1 = scalar_lea.vmem %s141_s4, 1024  ;;  %s165_s5 = int_to_ptr.vmem [resolvable:$true] %s164_s5 }
  0x80   :  { %p5575_p8 = scmp.ne.s32.totalorder %s141_s4, %s5574_s1  ;;  %p5579_p9 = scmp.lt.s32.totalorder %s141_s4, %s141_s4 }
  0x81   :  { %p5580_p10 = scmp.lt.s32.totalorder %s5574_s1, %s5574_s1 }
  0x83   :  { %120 = dma.hbm_to_vmem [thread:$0]  %s6757_s2, 1024, %s115_s7, [#allocation12], %s5666_s25, %s5666_s25, %s5667_s8  }
  0x84   :  { %p5581_p11 = por %p5580_p10, %p5579_p9 }
  0x86   :  { %p5582_p12 = pnand %p5581_p11, %p5575_p8 }
  0x88   :  { %5585 = shalt.err (!%p5582_p12)
}
  0x89   :  { %146 = dma.hbm_to_vmem [thread:$0]  %s6724_s10, 1024, %s141_s4, [#allocation15], %s5666_s25, %s5666_s25, %s5667_s8  }
  0x8a   :  { %s5594_s7 = scalar_lea.vmem %s165_s5, 1024  ;;  %p5599_p0 = scmp.lt.s32.totalorder %s165_s5, %s165_s5 }
  0x8b   :  { %p5595_p13 = scmp.ne.s32.totalorder %s165_s5, %s5594_s7  ;;  %p5600_p1 = scmp.lt.s32.totalorder %s5594_s7, %s5594_s7 }
  0x8d   :  { %p5601_p2 = por %p5600_p1, %p5599_p0 }
  0x8f   :  { %p5602_p3 = pnand %p5601_p2, %p5595_p13 }
  0x91   :  { %5605 = shalt.err (!%p5602_p3)
}
  0x92   :  { %170 = dma.hbm_to_vmem [thread:$0]  %s6726_s12, 1024, %s165_s5, [#allocation18], %s5666_s25, %s5666_s25, %s5667_s8  }
  0x93   :  { %s5680_s6 = smov [#allocation22]  }
  0x94   :  { %s204_s9 = sshll.u32 %s5680_s6, 4  ;;  %s205_s9 = int_to_ptr.vmem [resolvable:$true] %s204_s9 }
  0x95   :  { %s5614_s20 = scalar_lea.vmem %s205_s9, 4096  ;;  %p5619_p5 = scmp.lt.s32.totalorder %s205_s9, %s205_s9 }
  0x96   :  { %p5615_p4 = scmp.ne.s32.totalorder %s205_s9, %s5614_s20  ;;  %p5620_p6 = scmp.lt.s32.totalorder %s5614_s20, %s5614_s20 }
  0x98   :  { %p5621_p7 = por %p5620_p6, %p5619_p5 }
  0x9a   :  { %p5622_p8 = pnand %p5621_p7, %p5615_p4 }
  0x9c   :  { %5625 = shalt.err (!%p5622_p8)
}
  0x9d   :  { %210 = dma.hbm_to_vmem [thread:$0]  %s6736_s22, 4096, %s205_s9, [#allocation21], %s5666_s25, %s5666_s25, %s5667_s8  }
  0x9e   :  { %5646 = dma.done.wait [#allocation3], 512  }
  0x9f   :  { %5647 = vsyncadd [#allocation3], 4294966784 }
  0xa0   :  { %5648 = dma.done.wait [#allocation6], 544  }
  0xa1   :  { %5649 = vsyncadd [#allocation6], 4294966752 }
  0xa2   :  { %5650 = dma.done.wait [#allocation9], 2048  }
  0xa3   :  { %5651 = vsyncadd [#allocation9], 4294965248 }
  0xa4   :  { %5652 = dma.done.wait [#allocation12], 2048  }
  0xa5   :  { %5653 = vsyncadd [#allocation12], 4294965248 }
  0xa6   :  { %5654 = dma.done.wait [#allocation15], 2048  }
  0xa7   :  { %5655 = vsyncadd [#allocation15], 4294965248 }
  0xa8   :  { %5656 = dma.done.wait [#allocation18], 2048  }
  0xa9   :  { %5657 = vsyncadd [#allocation18], 4294965248 }
  0xaa   :  { %5658 = dma.done.wait [#allocation21], 8192  }
  0xab   :  { %5659 = vsyncadd [#allocation21], 4294959104  ;;  %v5066_v0 = vld [vmem:[#allocation10 + $0x38] sm:$0xff]   ;;  %v5068_v2 = vld [vmem:[#allocation10 + $0x30] sm:$0xff]   ;;  %v5681_v22 = vmov 0.0   ;;  %vm5682_vm0 = vmmov 0   ;;  %v261_v63 = vlaneseq }
  0xac   :  { %v5067_v1 = vld [vmem:[#allocation8 + $0x38] sm:$0xff]   ;;  %4708 = vmatprep.subr.bf16.mxu1 %v5066_v0  ;;  %v5069_v3 = vld [vmem:[#allocation8 + $0x30] sm:$0xff]   ;;  %v5070_v4 = vld [vmem:[#allocation10 + $0x28] sm:$0xff]   ;;  %s5683_s12 = smov 96   ;;  %vm739_vm1 = vcmask 261120   ;;  %s5684_s22 = smov 32  }
  0xad   :  { %4709 = vmatpush3.bf16.msra.mxu1 %v5066_v0  ;;  %4688 = vmatprep.subr.bf16.mxu0 %v5067_v1  ;;  %v5071_v5 = vld [vmem:[#allocation8 + $0x28] sm:$0xff]   ;;  %v5072_v6 = vld [vmem:[#allocation10 + $0x20] sm:$0xff]   ;;  %v5074_v8 = vld [vmem:[#allocation10 + $0x18] sm:$0xff]   ;;  %v5685_v0 = vmov 1966171168   ;;  %s6758_s4 = sld [smem:[#allocation34_spill]] }
  0xae   :  { %4689 = vmatpush3.bf16.msra.mxu0 %v5067_v1  ;;  %4710 = vmatprep.subr.bf16.mxu1 %v5068_v2  ;;  %v5073_v7 = vld [vmem:[#allocation8 + $0x20] sm:$0xff]   ;;  %v5075_v9 = vld [vmem:[#allocation8 + $0x18] sm:$0xff]   ;;  %v5076_v10 = vld [vmem:[#allocation10 + $0x10] sm:$0xff]   ;;  %v279_v1 = vunpack.c.l.s4 %v5685_v0  ;;  %vm1156_vm7 = vcmask 130048   ;;  %vm1725_vm13 = vcmask 523264   ;;  %vm1730_vm14 = vcmask 785408  }
  0xaf   :  { %4690 = vmatprep.subr.bf16.mxu0 %v5069_v3  ;;  %v253_v11 = vld [vmem:[#allocation2] sm:$0xff]  ;;  %v254_v12 = vld [vmem:[#allocation2 + $0x8] sm:$0xff]  ;;  %v5077_v13 = vld [vmem:[#allocation8 + $0x10] sm:$0xff]   ;;  %s6767_s1 = sld [smem:[#allocation40_spill]] }
  0xb0   :  { %v344_v14 = vpack.c.bf16 %v254_v12, %v253_v11  ;;  %v5078_v15 = vld [vmem:[#allocation10 + $0x8] sm:$0xff]   ;;  %v5080_v17 = vld [vmem:[#allocation10] sm:$0xff]   ;;  %v256_v20 = vld [vmem:[#allocation2 + $0x18] sm:$0xff]  ;;  %v265_v12 = vand.u32 127, %v261_v63 }
  0xb1   :  { %4711 = vmatpush3.bf16.msra.mxu1 %v5068_v2  ;;  %v5079_v16 = vld [vmem:[#allocation8 + $0x8] sm:$0xff]   ;;  %v5081_v18 = vld [vmem:[#allocation8] sm:$0xff]   ;;  %v5082_v37 = vld [vmem:[#allocation11 + $0x38] sm:$0xff]   ;;  %v5948_v2 = vshrl.u32 %v261_v63, 7 }
  0xb2   :  { %4691 = vmatpush3.bf16.msra.mxu0 %v5069_v3  ;;  %4712 = vmatprep.subr.bf16.mxu1 %v5070_v4  ;;  %v255_v19 = vld [vmem:[#allocation2 + $0x10] sm:$0xff]  ;;  %v5085_v40 = vld [vmem:[#allocation11 + $0x20] sm:$0xff]   ;;  %v5086_v41 = vld [vmem:[#allocation11 + $0x18] sm:$0xff]   ;;  %v280_v3 = vunpack.c.0.s8 %v279_v1 }
  0xb3   :  { %4692 = vmatprep.subr.bf16.mxu0 %v5071_v5  ;;  %4724 = vmatprep.mubr.bf16.mxu1 %v344_v14  ;;  %v5885_v21 = vpack.c.bf16 %v256_v20, %v255_v19  ;;  %v5083_v38 = vld [vmem:[#allocation11 + $0x30] sm:$0xff]   ;;  %v5084_v39 = vld [vmem:[#allocation11 + $0x28] sm:$0xff]   ;;  %v5089_v44 = vld [vmem:[#allocation11] sm:$0xff]   ;;  %vm266_vm4 = vcmp.gt.s32.totalorder %v265_v12, %v5948_v2 }
  0xb4   :  { %4704 = vmatprep.mubr.bf16.mxu0 %v344_v14  ;;  %v5087_v42 = vld [vmem:[#allocation11 + $0x10] sm:$0xff]   ;;  %v5088_v43 = vld [vmem:[#allocation11 + $0x8] sm:$0xff]  }
  0xb5   :  { %4713 = vmatpush3.bf16.msra.mxu1 %v5070_v4  ;;  %v5951_v4 = vsub.s32 %v280_v3, %v5948_v2 }
  0xb6   :  { %4693 = vmatpush3.bf16.msra.mxu0 %v5071_v5  ;;  %4714 = vmatprep.subr.bf16.mxu1 %v5072_v6  ;;  %v4317_v5 = vld.sshfl [vmem:[%s6758_s4] sm:$0x11 pattern:$0x75316420] }
  0xb7   :  { %4694 = vmatprep.subr.bf16.mxu0 %v5073_v7 }
  0xb9   :  { %4715 = vmatpush3.bf16.msra.mxu1 %v5072_v6  ;;  %v284_v6 = vrot.slane %v4317_v5, %v5951_v4 }
  0xba   :  { %4695 = vmatpush3.bf16.msra.mxu0 %v5073_v7  ;;  %4716 = vmatprep.subr.bf16.mxu1 %v5074_v8  ;;  %v277_v7 = vcombine.high %v4317_v5, %v4317_v5 }
  0xbb   :  { %4696 = vmatprep.subr.bf16.mxu0 %v5075_v9  ;;  %vm294_vm2 = vcmp.eq.f32.partialorder %v284_v6, 0.0 }
  0xbc   :  { %v291_v11 = vrot.slane %v277_v7, %v5951_v4 }
  0xbd   :  { %4717 = vmatpush3.bf16.msra.mxu1 %v5074_v8  ;;  %v5958_v8 = vsub.s32 0, %v5948_v2 }
  0xbe   :  { %4697 = vmatpush3.bf16.msra.mxu0 %v5075_v9  ;;  %4718 = vmatprep.subr.bf16.mxu1 %v5076_v10  ;;  %v5686_v9 = vmov 0   ;;  %vm295_vm3 = vcmp.eq.f32.partialorder %v291_v11, 0.0 }
  0xbf   :  { %4698 = vmatprep.subr.bf16.mxu0 %v5077_v13 }
  0xc1   :  { %4719 = vmatpush3.bf16.msra.mxu1 %v5076_v10  ;;  %v296_v10 = vsel %vm294_vm2, 1, %v5686_v9 }
  0xc2   :  { %4699 = vmatpush3.bf16.msra.mxu0 %v5077_v13  ;;  %4720 = vmatprep.subr.bf16.mxu1 %v5078_v15  ;;  %v301_v13 = vrot.slane %v296_v10, %v5958_v8 }
  0xc3   :  { %4700 = vmatprep.subr.bf16.mxu0 %v5079_v16 }
  0xc4   :  { %vm306_vm5 = vcmp.eq.s32.totalorder %v301_v13, 1 }
  0xc5   :  { %4721 = vmatpush3.bf16.msra.mxu1 %v5078_v15  ;;  %v297_v15 = vsel %vm295_vm3, 1, %v5686_v9  ;;  %vm5968_vm6 = vmor %vm306_vm5, %vm266_vm4 }
  0xc6   :  { %4701 = vmatpush3.bf16.msra.mxu0 %v5079_v16  ;;  %4722 = vmatprep.subr.bf16.mxu1 %v5080_v17  ;;  %v305_v19 = vrot.slane %v297_v15, %v5958_v8 }
  0xc7   :  { %4702 = vmatprep.subr.bf16.mxu0 %v5081_v18 }
  0xc8   :  { %vm307_vm10 = vcmp.eq.s32.totalorder %v305_v19, 1 }
  0xc9   :  { %4723 = vmatpush3.bf16.msra.mxu1 %v5080_v17  ;;  %vm5992_vm11 = vmor %vm307_vm10, %vm266_vm4 }
  0xca   :  { %4703 = vmatpush3.bf16.msra.mxu0 %v5081_v18  ;;  %4748 = vmatprep.subr.bf16.mxu1 %v5681_v22 }
  0xcb   :  { %4728 = vmatprep.subr.bf16.mxu0 %v5082_v37 }
  0xcc   :  { %4725 = vmatmul.mubr.bf16.vlgmr.msra.gmra.mxu1 %v5885_v21 }
  0xcd   :  { %4705 = vmatmul.mubr.bf16.vlgmr.msra.gmra.mxu0 %v5885_v21  ;;  %4750 = vmatprep.mubr.msk.bf16.mxu1 %vm5682_vm0, %v5681_v22 }
  0xce   :  { %4744 = vmatprep.mubr.bf16.mxu0 %v344_v14  ;;  %4729 = vmatpush3.bf16.msra.mxu0 %v5082_v37  ;;  %v263_v14 = vadd.s32 8, %v5948_v2 }
  0xcf   :  { %4730 = vmatprep.subr.bf16.mxu0 %v5083_v38 }
  0xd0   :  { %vm267_vm8 = vcmp.gt.s32.totalorder %v265_v12, %v263_v14 }
  0xd1   :  { %vm5980_vm9 = vmor %vm306_vm5, %vm267_vm8 }
  0xd2   :  { %4731 = vmatpush3.bf16.msra.mxu0 %v5083_v38  ;;  %vm6003_vm12 = vmor %vm307_vm10, %vm267_vm8 }
  0xd3   :  { %4732 = vmatprep.subr.bf16.mxu0 %v5084_v39 }
  0xd6   :  { %4733 = vmatpush3.bf16.msra.mxu0 %v5084_v39 }
  0xd7   :  { %4734 = vmatprep.subr.bf16.mxu0 %v5085_v40 }
  0xda   :  { %4735 = vmatpush3.bf16.msra.mxu0 %v5085_v40 }
  0xdb   :  { %4736 = vmatprep.subr.bf16.mxu0 %v5086_v41 }
  0xde   :  { %4737 = vmatpush3.bf16.msra.mxu0 %v5086_v41 }
  0xdf   :  { %4738 = vmatprep.subr.bf16.mxu0 %v5087_v42 }
  0xe2   :  { %4739 = vmatpush3.bf16.msra.mxu0 %v5087_v42 }
  0xe3   :  { %4740 = vmatprep.subr.bf16.mxu0 %v5088_v43 }
  0xe6   :  { %4741 = vmatpush3.bf16.msra.mxu0 %v5088_v43 }
  0xe7   :  { %4742 = vmatprep.subr.bf16.mxu0 %v5089_v44 }
  0xea   :  { %4743 = vmatpush3.bf16.msra.mxu0 %v5089_v44 }
  0xeb   :  { %4796 = vmatprep.subr.bf16.mxu0 %v5681_v22 }
  0xed   :  { %4745 = vmatmul.mubr.bf16.vlgmr.msra.gmra.mxu0 %v5885_v21 }
  0xee   :  { %4798 = vmatprep.mubr.msk.bf16.mxu0 %vm5682_vm0, %v5681_v22 }
 0x18c   :  { %v4726_v23 = vpop.f32.mrf.mxu1 }
 0x18d   :  { %v4706_v24 = vpop.f32.mrf.mxu0 }
 0x18e   :  { %v573_v25 = vpop.f32.mrf.mxu1 }
 0x18f   :  { %v444_v26 = vpop.f32.mrf.mxu0 }
 0x190   :  { %v4727_v27 = vpop.f32.mrf.mxu1 }
 0x191   :  { %v589_v28 = vpack.c.bf16 %v4727_v27, %v4726_v23  ;;  %v4707_v29 = vpop.f32.mrf.mxu0 }
 0x192   :  { %v576_v30 = vpop.f32.mrf.mxu1  ;;  %v460_v31 = vpack.c.bf16 %v4707_v29, %v4706_v24 }
 0x193   :  { %v588_v32 = vpack.c.bf16 %v576_v30, %v573_v25  ;;  %594 = vrot.lane.b32.xlu1 %v589_v28, %s5683_s12  ;;  %v447_v33 = vpop.f32.mrf.mxu0  ;;  %v791_v36 = vsel %vm739_vm1, %v589_v28, 0 }
 0x194   :  { %v459_v35 = vpack.c.bf16 %v447_v33, %v444_v26 }
 0x195   :  { %592 = vrot.lane.b32.xlu0 %v588_v32, %s5683_s12  ;;  %v744_v34 = vsel %vm739_vm1, %v588_v32, 0 }
 0x196   :  { %4749 = vmatpush3.bf16.xpose.msra.mxu1 %v744_v34 }
 0x197   :  { %465 = vrot.lane.b32.xlu1 %v460_v31, %s5683_s12  ;;  %4754 = vmatprep.subr.bf16.mxu1 %v5681_v22 }
 0x199   :  { %463 = vrot.lane.b32.xlu0 %v459_v35, %s5683_s12 }
 0x19b   :  { %467 = vrot.lane.b32.xlu1 %v459_v35, %s5666_s25 }
 0x19d   :  { %596 = vrot.lane.b32.xlu0 %v588_v32, %s5666_s25  ;;  %4751 = vmatmul.mubr.msk.bf16.vlgmr.msra.gmra.mxu1 %vm739_vm1, %v459_v35 }
 0x19e   :  { %4755 = vmatpush3.bf16.xpose.msra.mxu1 %v791_v36  ;;  %4756 = vmatprep.mubr.msk.bf16.mxu1 %vm5682_vm0, %v5681_v22 }
 0x19f   :  { %469 = vrot.lane.b32.xlu1 %v460_v31, %s5666_s25  ;;  %4760 = vmatprep.subr.bf16.mxu1 %v5681_v22 }
 0x1a1   :  { %598 = vrot.lane.b32.xlu0 %v589_v28, %s5666_s25 }
 0x1a3   :  { %471 = vrot.lane.b32.xlu1 %v459_v35, %s5684_s22 }
 0x1a5   :  { %600 = vrot.lane.b32.xlu0 %v588_v32, %s5684_s22  ;;  %4757 = vmatmul.mubr.msk.bf16.vlgmr.msra.gmra.mxu1 %vm739_vm1, %v460_v31 }
 0x1a6   :  { %4762 = vmatprep.mubr.msk.bf16.mxu1 %vm5682_vm0, %v5681_v22 }
 0x1a7   :  { %473 = vrot.lane.b32.xlu1 %v460_v31, %s5684_s22 }
 0x1a9   :  { %602 = vrot.lane.b32.xlu0 %v589_v28, %s5684_s22 }
 0x1ad   :  { %v4746_v42 = vpop.f32.mrf.mxu0 }
 0x1af   :  { %v702_v43 = vpop.f32.mrf.mxu0 }
 0x1b1   :  { %v4747_v44 = vpop.f32.mrf.mxu0 }
 0x205   :  { %v595_v47 = vpop.permute.xlu1 %594 }
 0x206   :  { %v885_v49 = vsel %vm739_vm1, %v595_v47, 0 }
 0x207   :  { %v593_v45 = vpop.permute.xlu0 %592 }
 0x208   :  { %v838_v46 = vsel %vm739_vm1, %v593_v45, 0  ;;  %v6013_v45 = vpack.c.bf16 %v4747_v44, %v4746_v42 }
 0x209   :  { %4761 = vmatpush3.bf16.xpose.msra.mxu1 %v838_v46  ;;  %v466_v51 = vpop.permute.xlu1 %465  ;;  %v705_v46 = vpop.f32.mrf.mxu0 }
 0x20a   :  { %4766 = vmatprep.subr.bf16.mxu1 %v5681_v22  ;;  %v6015_v47 = vpack.c.bf16 %v705_v46, %v702_v43 }
 0x20b   :  { %v464_v48 = vpop.permute.xlu0 %463 }
 0x20c   :  { %4797 = vmatpush3.bf16.msra.mxu0 %v6015_v47 }
 0x20d   :  { %v468_v54 = vpop.permute.xlu1 %467  ;;  %4808 = vmatprep.subr.bf16.mxu0 %v5681_v22 }
 0x20f   :  { %v597_v50 = vpop.permute.xlu0 %596 }
 0x210   :  { %4763 = vmatmul.mubr.msk.bf16.vlgmr.msra.gmra.mxu1 %vm739_vm1, %v464_v48  ;;  %v932_v52 = vsel %vm739_vm1, %v597_v50, 0 }
 0x211   :  { %4767 = vmatpush3.bf16.xpose.msra.mxu1 %v885_v49  ;;  %4768 = vmatprep.mubr.msk.bf16.mxu1 %vm5682_vm0, %v5681_v22  ;;  %v470_v57 = vpop.permute.xlu1 %469 }
 0x212   :  { %4772 = vmatprep.subr.bf16.mxu1 %v5681_v22 }
 0x213   :  { %v599_v53 = vpop.permute.xlu0 %598 }
 0x214   :  { %v979_v55 = vsel %vm739_vm1, %v599_v53, 0 }
 0x215   :  { %v472_v60 = vpop.permute.xlu1 %471 }
 0x217   :  { %v601_v56 = vpop.permute.xlu0 %600 }
 0x218   :  { %4769 = vmatmul.mubr.msk.bf16.vlgmr.msra.gmra.mxu1 %vm739_vm1, %v466_v51  ;;  %v1026_v58 = vsel %vm739_vm1, %v601_v56, 0 }
 0x219   :  { %4773 = vmatpush3.bf16.xpose.msra.mxu1 %v932_v52  ;;  %4774 = vmatprep.mubr.msk.bf16.mxu1 %vm5682_vm0, %v5681_v22  ;;  %v474_v62 = vpop.permute.xlu1 %473 }
 0x21a   :  { %4778 = vmatprep.subr.bf16.mxu1 %v5681_v22 }
 0x21b   :  { %v603_v59 = vpop.permute.xlu0 %602 }
 0x21c   :  { %v1073_v61 = vsel %vm739_vm1, %v603_v59, 0 }
 0x220   :  { %4775 = vmatmul.mubr.msk.bf16.vlgmr.msra.gmra.mxu1 %vm739_vm1, %v468_v54 }
 0x221   :  { %4779 = vmatpush3.bf16.xpose.msra.mxu1 %v979_v55  ;;  %4780 = vmatprep.mubr.msk.bf16.mxu1 %vm5682_vm0, %v5681_v22 }
 0x222   :  { %4784 = vmatprep.subr.bf16.mxu1 %v5681_v22 }
 0x228   :  { %4781 = vmatmul.mubr.msk.bf16.vlgmr.msra.gmra.mxu1 %vm739_vm1, %v470_v57 }
 0x229   :  { %4785 = vmatpush3.bf16.xpose.msra.mxu1 %v1026_v58  ;;  %4786 = vmatprep.mubr.msk.bf16.mxu1 %vm5682_vm0, %v5681_v22 }
 0x22a   :  { %4790 = vmatprep.subr.bf16.mxu1 %v5681_v22 }
 0x230   :  { %4787 = vmatmul.mubr.msk.bf16.vlgmr.msra.gmra.mxu1 %vm739_vm1, %v472_v60 }
 0x231   :  { %4791 = vmatpush3.bf16.xpose.msra.mxu1 %v1073_v61  ;;  %4792 = vmatprep.mubr.msk.bf16.mxu1 %vm5682_vm0, %v5681_v22 }
 0x232   :  { %4802 = vmatprep.subr.bf16.mxu1 %v5681_v22 }
 0x238   :  { %4793 = vmatmul.mubr.msk.bf16.vlgmr.msra.gmra.mxu1 %vm739_vm1, %v474_v62 }
 0x239   :  { %4804 = vmatprep.mubr.msk.bf16.mxu1 %vm5682_vm0, %v5681_v22  ;;  %4803 = vmatpush3.bf16.msra.mxu1 %v6013_v45 }
 0x23a   :  { %4814 = vmatprep.subr.bf16.mxu1 %v5681_v22 }
 0x25d   :  { %v780_v16 = vpop.f32.mrf.mxu1 }
 0x25e   :  { %v1116_v18 = vmul.f32 0.088388346, %v780_v16 }
 0x25f   :  { %v4752_v20 = vpop.f32.mrf.mxu1 }
 0x260   :  { %v5975_v21 = vsel %vm5968_vm6, -1e+30, %v1116_v18 }
 0x261   :  { %v783_v23 = vpop.f32.mrf.mxu1  ;;  %v1157_v24 = vsel %vm1156_vm7, %v5975_v21, -inf }
 0x262   :  { %v1117_v26 = vmul.f32 0.088388346, %v783_v23  ;;  %1158 = vmax.xlane.f32.xlu0 %v1157_v24 }
 0x263   :  { %v4753_v27 = vpop.f32.mrf.mxu1 }
 0x264   :  { %v5986_v28 = vsel %vm5980_vm9, -1e+30, %v1117_v26 }
 0x265   :  { %v827_v29 = vpop.f32.mrf.mxu1  ;;  %v1160_v30 = vsel %vm1156_vm7, %v5986_v28, -inf }
 0x266   :  { %v1118_v32 = vmul.f32 0.088388346, %v827_v29  ;;  %1161 = vmax.xlane.f32.xlu1 %v1160_v30 }
 0x267   :  { %v4758_v33 = vpop.f32.mrf.mxu1 }
 0x268   :  { %v5998_v34 = vsel %vm5992_vm11, -1e+30, %v1118_v32 }
 0x269   :  { %v830_v35 = vpop.f32.mrf.mxu1  ;;  %v1163_v36 = vsel %vm1156_vm7, %v5998_v34, -inf }
 0x26a   :  { %v1119_v38 = vmul.f32 0.088388346, %v830_v35  ;;  %1164 = vmax.xlane.f32.xlu0 %v1163_v36 }
 0x26b   :  { %v4759_v39 = vpop.f32.mrf.mxu1 }
 0x26c   :  { %v6009_v40 = vsel %vm6003_vm12, -1e+30, %v1119_v38 }
 0x26d   :  { %v1166_v41 = vsel %vm1156_vm7, %v6009_v40, -inf }
 0x26e   :  { %1167 = vmax.xlane.f32.xlu0 %v1166_v41 }
 0x2d0   :  { %v874_v48 = vpop.f32.mrf.mxu1 }
 0x2d1   :  { %v1120_v49 = vmul.f32 0.088388346, %v874_v48 }
 0x2d2   :  { %v4764_v50 = vpop.f32.mrf.mxu1 }
 0x2d3   :  { %v6023_v51 = vsel %vm5968_vm6, -1e+30, %v1120_v49 }
 0x2d4   :  { %v877_v52 = vpop.f32.mrf.mxu1  ;;  %v1169_v53 = vsel %vm1156_vm7, %v6023_v51, -inf }
 0x2d5   :  { %v1121_v54 = vmul.f32 0.088388346, %v877_v52  ;;  %1170 = vmax.xlane.f32.xlu1 %v1169_v53 }
 0x2d6   :  { %v4765_v55 = vpop.f32.mrf.mxu1 }
 0x2d7   :  { %v6029_v56 = vsel %vm5980_vm9, -1e+30, %v1121_v54 }
 0x2d8   :  { %v921_v57 = vpop.f32.mrf.mxu1  ;;  %v1172_v58 = vsel %vm1156_vm7, %v6029_v56, -inf }
 0x2d9   :  { %v1122_v59 = vmul.f32 0.088388346, %v921_v57  ;;  %1173 = vmax.xlane.f32.xlu0 %v1172_v58 }
 0x2da   :  { %v4770_v60 = vpop.f32.mrf.mxu1 }
 0x2db   :  { %v6035_v61 = vsel %vm5992_vm11, -1e+30, %v1122_v59 }
 0x2dc   :  { %v924_v62 = vpop.f32.mrf.mxu1  ;;  %v1175_v63 = vsel %vm1156_vm7, %v6035_v61, -inf }
 0x2dd   :  { %v1123_v0 = vmul.f32 0.088388346, %v924_v62  ;;  %1176 = vmax.xlane.f32.xlu1 %v1175_v63 }
 0x2de   :  { %v4771_v1 = vpop.f32.mrf.mxu1 }
 0x2df   :  { %v6041_v3 = vsel %vm6003_vm12, -1e+30, %v1123_v0 }
 0x2e0   :  { %v968_v5 = vpop.f32.mrf.mxu1  ;;  %v1178_v6 = vsel %vm1156_vm7, %v6041_v3, -inf }
 0x2e1   :  { %v1124_v7 = vmul.f32 0.088388346, %v968_v5  ;;  %1179 = vmax.xlane.f32.xlu0 %v1178_v6 }
 0x2e2   :  { %v4776_v10 = vpop.f32.mrf.mxu1 }
 0x2e3   :  { %v6047_v11 = vsel %vm5968_vm6, -1e+30, %v1124_v7 }
 0x2e4   :  { %v971_v12 = vpop.f32.mrf.mxu1  ;;  %v1181_v13 = vsel %vm1156_vm7, %v6047_v11, -inf }
 0x2e5   :  { %v1125_v14 = vmul.f32 0.088388346, %v971_v12  ;;  %1182 = vmax.xlane.f32.xlu1 %v1181_v13 }
 0x2e6   :  { %v4777_v15 = vpop.f32.mrf.mxu1 }
 0x2e7   :  { %v6053_v16 = vsel %vm5980_vm9, -1e+30, %v1125_v14 }
 0x2e8   :  { %v1015_v18 = vpop.f32.mrf.mxu1  ;;  %v1184_v19 = vsel %vm1156_vm7, %v6053_v16, -inf }
 0x2e9   :  { %v1126_v20 = vmul.f32 0.088388346, %v1015_v18  ;;  %1185 = vmax.xlane.f32.xlu0 %v1184_v19 }
 0x2ea   :  { %v4782_v23 = vpop.f32.mrf.mxu1 }
 0x2eb   :  { %v1159_v24 = vpop.xlane.xlu0 %1158  ;;  %v6059_v26 = vsel %vm5992_vm11, -1e+30, %v1126_v20 }
 0x2ec   :  { %v1205_v27 = vsub.f32 %v5975_v21, %v1159_v24  ;;  %v1018_v29 = vpop.f32.mrf.mxu1  ;;  %v1187_v30 = vsel %vm1156_vm7, %v6059_v26, -inf }
 0x2ed   :  { %v1127_v32 = vmul.f32 0.088388346, %v1018_v29  ;;  %1188 = vmax.xlane.f32.xlu1 %v1187_v30 }
 0x2ee   :  { %v1221_v33 = vmul.f32 1.442695, %v1205_v27  ;;  %v4783_v35 = vpop.f32.mrf.mxu1 }
 0x2ef   :  { %v6066_v36 = vsel %vm6003_vm12, -1e+30, %v1127_v32  ;;  %v1162_v63 = vpop.xlane.xlu1 %1161 }
 0x2f0   :  { %5210 = vpow2.f32 %v1221_v33  ;;  %v1062_v38 = vpop.f32.mrf.mxu1  ;;  %v1190_v39 = vsel %vm1156_vm7, %v6066_v36, -inf  ;;  %v1206_v0 = vsub.f32 %v5986_v28, %v1162_v63 }
 0x2f1   :  { %v1128_v41 = vmul.f32 0.088388346, %v1062_v38  ;;  %1191 = vmax.xlane.f32.xlu0 %v1190_v39 }
 0x2f2   :  { %v4788_v21 = vpop.f32.mrf.mxu1  ;;  %v1223_v5 = vmul.f32 1.442695, %v1206_v0 }
 0x2f3   :  { %v6072_v42 = vsel %vm5968_vm6, -1e+30, %v1128_v41  ;;  %v1165_v37 = vpop.xlane.xlu0 %1164 }
 0x2f4   :  { %v1065_v43 = vpop.f32.mrf.mxu1  ;;  %v1193_v44 = vsel %vm1156_vm7, %v6072_v42, -inf  ;;  %5212 = vpow2.f32 %v1223_v5  ;;  %v1207_v7 = vsub.f32 %v5998_v34, %v1165_v37 }
 0x2f5   :  { %v1129_v46 = vmul.f32 0.088388346, %v1065_v43  ;;  %1194 = vmax.xlane.f32.xlu1 %v1193_v44 }
 0x2f6   :  { %v4789_v48 = vpop.f32.mrf.mxu1  ;;  %v1225_v12 = vmul.f32 1.442695, %v1207_v7 }
 0x2f7   :  { %v6078_v49 = vsel %vm5980_vm9, -1e+30, %v1129_v46  ;;  %v1168_v1 = vpop.xlane.xlu0 %1167 }
 0x2f8   :  { %v1109_v50 = vpop.f32.mrf.mxu1  ;;  %v1196_v52 = vsel %vm1156_vm7, %v6078_v49, -inf  ;;  %v1208_v6 = vsub.f32 %v6009_v40, %v1168_v1 }
 0x2f9   :  { %v1130_v53 = vmul.f32 0.088388346, %v1109_v50  ;;  %1197 = vmax.xlane.f32.xlu0 %v1196_v52 }
 0x2fa   :  { %v4794_v17 = vpop.f32.mrf.mxu1  ;;  %v1227_v10 = vmul.f32 1.442695, %v1208_v6 }
 0x2fb   :  { %v6084_v54 = vsel %vm5992_vm11, -1e+30, %v1130_v53 }
 0x2fc   :  { %v1112_v55 = vpop.f32.mrf.mxu1  ;;  %v1199_v57 = vsel %vm1156_vm7, %v6084_v54, -inf  ;;  %5214 = vpow2.f32 %v1227_v10 }
 0x2fd   :  { %v6088_v58 = vpop.eup %5210  ;;  %v1131_v25 = vmul.f32 0.088388346, %v1112_v55  ;;  %1200 = vmax.xlane.f32.xlu1 %v1199_v57  ;;  %5216 = vpow2.f32 %v1225_v12 }
 0x2fe   :  { %v4795_v59 = vpop.f32.mrf.mxu1  ;;  %v1253_v62 = vsel %vm1156_vm7, %v6088_v58, 0.0 }
 0x2ff   :  { %v6092_v60 = vsel %vm6003_vm12, -1e+30, %v1131_v25 }
 0x300   :  { %v1202_v31 = vsel %vm1156_vm7, %v6092_v60, -inf }
 0x301   :  { %1254 = vadd.xlane.f32.xlu1 %v1253_v62  ;;  %1203 = vmax.xlane.f32.xlu0 %v1202_v31  ;;  %v6109_v13 = vpop.eup %5212 }
 0x302   :  { %v1256_v14 = vsel %vm1156_vm7, %v6109_v13, 0.0 }
 0x309   :  { %v6113_v15 = vpop.eup %5214 }
 0x30a   :  { %v1262_v28 = vsel %vm1156_vm7, %v6113_v15, 0.0  ;;  %v6117_v18 = vpop.eup %5216 }
 0x30b   :  { %v1259_v34 = vsel %vm1156_vm7, %v6117_v18, 0.0 }
 0x312   :  { %721 = vrot.lane.b32.xlu1 %v6015_v47, %s5683_s12 }
 0x316   :  { %727 = vrot.lane.b32.xlu1 %v6015_v47, %s5666_s25 }
 0x317   :  { %723 = vrot.lane.b32.xlu0 %v6013_v45, %s5683_s12 }
 0x31a   :  { %729 = vrot.lane.b32.xlu1 %v6013_v45, %s5666_s25 }
 0x336   :  { %1257 = vadd.xlane.f32.xlu0 %v1256_v14 }
 0x33a   :  { %1263 = vadd.xlane.f32.xlu0 %v1262_v28 }
 0x33e   :  { %1260 = vadd.xlane.f32.xlu1 %v1259_v34 }
 0x35e   :  { %v1171_v40 = vpop.xlane.xlu1 %1170 }
 0x35f   :  { %v1209_v19 = vsub.f32 %v6023_v51, %v1171_v40 }
 0x361   :  { %v1229_v20 = vmul.f32 1.442695, %v1209_v19 }
 0x362   :  { %v1174_v23 = vpop.xlane.xlu0 %1173 }
 0x363   :  { %5218 = vpow2.f32 %v1229_v20  ;;  %v1210_v24 = vsub.f32 %v6029_v56, %v1174_v23 }
 0x365   :  { %v1231_v27 = vmul.f32 1.442695, %v1210_v24 }
 0x366   :  { %v1177_v29 = vpop.xlane.xlu1 %1176 }
 0x367   :  { %5220 = vpow2.f32 %v1231_v27  ;;  %v1211_v30 = vsub.f32 %v6035_v61, %v1177_v29 }
 0x369   :  { %v1233_v32 = vmul.f32 1.442695, %v1211_v30 }
 0x36a   :  { %v1180_v33 = vpop.xlane.xlu0 %1179 }
 0x36b   :  { %5222 = vpow2.f32 %v1233_v32  ;;  %v1212_v35 = vsub.f32 %v6041_v3, %v1180_v33 }
 0x36d   :  { %v1235_v38 = vmul.f32 1.442695, %v1212_v35 }
 0x36e   :  { %v1183_v39 = vpop.xlane.xlu1 %1182 }
 0x36f   :  { %5224 = vpow2.f32 %v1235_v38  ;;  %v1213_v51 = vsub.f32 %v6047_v11, %v1183_v39 }
 0x370   :  { %v6126_v41 = vpop.eup %5218 }
 0x371   :  { %v1237_v21 = vmul.f32 1.442695, %v1213_v51  ;;  %v1265_v56 = vsel %vm1156_vm7, %v6126_v41, 0.0 }
 0x372   :  { %v1186_v43 = vpop.xlane.xlu0 %1185  ;;  %1266 = vadd.xlane.f32.xlu1 %v1265_v56 }
 0x373   :  { %5226 = vpow2.f32 %v1237_v21  ;;  %v1214_v61 = vsub.f32 %v6053_v16, %v1186_v43 }
 0x374   :  { %v6131_v44 = vpop.eup %5220 }
 0x375   :  { %v1239_v46 = vmul.f32 1.442695, %v1214_v61  ;;  %v1268_v3 = vsel %vm1156_vm7, %v6131_v44, 0.0 }
 0x376   :  { %v1189_v48 = vpop.xlane.xlu1 %1188  ;;  %1269 = vadd.xlane.f32.xlu0 %v1268_v3 }
 0x377   :  { %5228 = vpow2.f32 %v1239_v46  ;;  %v1215_v11 = vsub.f32 %v6059_v26, %v1189_v48 }
 0x378   :  { %v6136_v50 = vpop.eup %5222 }
 0x379   :  { %v1241_v52 = vmul.f32 1.442695, %v1215_v11  ;;  %v1271_v53 = vsel %vm1156_vm7, %v6136_v50, 0.0 }
 0x37a   :  { %v1192_v17 = vpop.xlane.xlu0 %1191  ;;  %1272 = vadd.xlane.f32.xlu1 %v1271_v53 }
 0x37b   :  { %5230 = vpow2.f32 %v1241_v52  ;;  %v1216_v16 = vsub.f32 %v6066_v36, %v1192_v17 }
 0x37c   :  { %v6141_v55 = vpop.eup %5224 }
 0x37d   :  { %v1243_v57 = vmul.f32 1.442695, %v1216_v16  ;;  %v1274_v25 = vsel %vm1156_vm7, %v6141_v55, 0.0 }
 0x37e   :  { %v1195_v59 = vpop.xlane.xlu1 %1194  ;;  %1275 = vadd.xlane.f32.xlu0 %v1274_v25 }
 0x37f   :  { %5232 = vpow2.f32 %v1243_v57  ;;  %v1217_v26 = vsub.f32 %v6072_v42, %v1195_v59 }
 0x380   :  { %v6146_v62 = vpop.eup %5226 }
 0x381   :  { %v1245_v31 = vmul.f32 1.442695, %v1217_v26  ;;  %v1277_v37 = vsel %vm1156_vm7, %v6146_v62, 0.0 }
 0x382   :  { %v1198_v63 = vpop.xlane.xlu0 %1197  ;;  %1278 = vadd.xlane.f32.xlu1 %v1277_v37 }
 0x383   :  { %5234 = vpow2.f32 %v1245_v31  ;;  %v1218_v36 = vsub.f32 %v6078_v49, %v1198_v63 }
 0x384   :  { %v6151_v0 = vpop.eup %5228 }
 0x385   :  { %v1247_v1 = vmul.f32 1.442695, %v1218_v36  ;;  %v1280_v5 = vsel %vm1156_vm7, %v6151_v0, 0.0 }
 0x386   :  { %v1201_v6 = vpop.xlane.xlu1 %1200  ;;  %1281 = vadd.xlane.f32.xlu0 %v1280_v5 }
 0x387   :  { %5236 = vpow2.f32 %v1247_v1  ;;  %v1219_v42 = vsub.f32 %v6084_v54, %v1201_v6 }
 0x388   :  { %v6156_v7 = vpop.eup %5230 }
 0x389   :  { %v1249_v10 = vmul.f32 1.442695, %v1219_v42  ;;  %v1283_v12 = vsel %vm1156_vm7, %v6156_v7, 0.0 }
 0x38a   :  { %1284 = vadd.xlane.f32.xlu1 %v1283_v12  ;;  %v1204_v14 = vpop.xlane.xlu0 %1203  ;;  %v1255_v30 = vpop.xlane.xlu1 %1254 }
 0x38b   :  { %5238 = vpow2.f32 %v1249_v10  ;;  %v1220_v49 = vsub.f32 %v6092_v60, %v1204_v14 }
 0x38c   :  { %v6161_v28 = vpop.eup %5232 }
 0x38d   :  { %v1251_v34 = vmul.f32 1.442695, %v1220_v49  ;;  %v1286_v40 = vsel %vm1156_vm7, %v6161_v28, 0.0 }
 0x38e   :  { %1287 = vadd.xlane.f32.xlu0 %v1286_v40  ;;  %v722_v32 = vpop.permute.xlu1 %721  ;;  %v724_v33 = vpop.permute.xlu0 %723 }
 0x38f   :  { %5240 = vpow2.f32 %v1251_v34 }
 0x390   :  { %v6165_v54 = vpop.eup %5234  ;;  %5242 = vrcp.f32 %v1255_v30 }
 0x391   :  { %v1289_v19 = vsel %vm1156_vm7, %v6165_v54, 0.0 }
 0x392   :  { %1290 = vadd.xlane.f32.xlu1 %v1289_v19  ;;  %v728_v35 = vpop.permute.xlu1 %727 }
 0x394   :  { %v6169_v20 = vpop.eup %5236 }
 0x395   :  { %v1292_v23 = vsel %vm1156_vm7, %v6169_v20, 0.0 }
 0x396   :  { %1293 = vadd.xlane.f32.xlu0 %v1292_v23  ;;  %v730_v39 = vpop.permute.xlu1 %729 }
 0x398   :  { %v6173_v60 = vpop.eup %5238 }
 0x399   :  { %v1295_v24 = vsel %vm1156_vm7, %v6173_v60, 0.0 }
 0x39a   :  { %1296 = vadd.xlane.f32.xlu1 %v1295_v24 }
 0x39c   :  { %v6177_v27 = vpop.eup %5240 }
 0x39d   :  { %v1298_v29 = vsel %vm1156_vm7, %v6177_v27, 0.0  ;;  %v5243_v56 = vpop.eup %5242 }
 0x39e   :  { %1299 = vadd.xlane.f32.xlu0 %v1298_v29  ;;  %v1317_v61 = vmul.f32 %v5243_v56, %v6088_v58 }
 0x3ab   :  { %735 = vrot.lane.b32.xlu1 %v6013_v45, %s5684_s22 }
 0x3b4   :  { %733 = vrot.lane.b32.xlu0 %v6015_v47, %s5684_s22 }
 0x3bf   :  { %v1258_v38 = vpop.xlane.xlu0 %1257 }
 0x3c0   :  { %5244 = vrcp.f32 %v1258_v38 }
 0x3c3   :  { %v1264_v51 = vpop.xlane.xlu0 %1263 }
 0x3c4   :  { %5246 = vrcp.f32 %v1264_v51 }
 0x3c7   :  { %v1261_v21 = vpop.xlane.xlu1 %1260 }
 0x3c8   :  { %5248 = vrcp.f32 %v1261_v21 }
 0x3cd   :  { %v5245_v43 = vpop.eup %5244 }
 0x3ce   :  { %v1318_v45 = vmul.f32 %v5245_v43, %v6109_v13 }
 0x3d0   :  { %v1333_v46 = vpack.c.bf16 %v1318_v45, %v1317_v61 }
 0x3d1   :  { %v5247_v47 = vpop.eup %5246 }
 0x3d2   :  { %4799 = vmatmul.mubr.msk.bf16.vlgmr.msra.gmra.mxu0 %vm1156_vm7, %v1333_v46  ;;  %v1320_v11 = vmul.f32 %v5247_v47, %v6113_v15 }
 0x3d3   :  { %4809 = vmatpush3.bf16.msra.mxu0 %v722_v32  ;;  %4810 = vmatprep.mubr.msk.bf16.mxu0 %vm5682_vm0, %v5681_v22 }
 0x3d4   :  { %4820 = vmatprep.subr.bf16.mxu0 %v5681_v22 }
 0x3d5   :  { %v5249_v3 = vpop.eup %5248 }
 0x3d6   :  { %v1319_v48 = vmul.f32 %v5249_v3, %v6117_v18 }
 0x3d8   :  { %v1334_v52 = vpack.c.bf16 %v1320_v11, %v1319_v48  ;;  %v5090_v48 = vld [vmem:[#allocation13 + $0x38] sm:$0xff]   ;;  %v5091_v11 = vld [vmem:[#allocation13 + $0x30] sm:$0xff]  }
 0x3da   :  { %4805 = vmatmul.mubr.msk.bf16.vlgmr.msra.gmra.mxu1 %vm1156_vm7, %v1334_v52 }
 0x3db   :  { %4815 = vmatpush3.bf16.msra.mxu1 %v724_v33  ;;  %4816 = vmatprep.mubr.msk.bf16.mxu1 %vm5682_vm0, %v5681_v22 }
 0x3dc   :  { %4826 = vmatprep.subr.bf16.mxu1 %v5681_v22 }
 0x3fb   :  { %v1267_v58 = vpop.xlane.xlu1 %1266 }
 0x3fc   :  { %5250 = vrcp.f32 %v1267_v58 }
 0x3ff   :  { %v1270_v13 = vpop.xlane.xlu0 %1269 }
 0x400   :  { %5252 = vrcp.f32 %v1270_v13 }
 0x403   :  { %v1273_v53 = vpop.xlane.xlu1 %1272 }
 0x404   :  { %5254 = vrcp.f32 %v1273_v53 }
 0x407   :  { %v1276_v17 = vpop.xlane.xlu0 %1275 }
 0x408   :  { %5256 = vrcp.f32 %v1276_v17 }
 0x409   :  { %v5251_v18 = vpop.eup %5250 }
 0x40a   :  { %v1321_v57 = vmul.f32 %v5251_v18, %v6126_v41  ;;  %v5092_v18 = vld [vmem:[#allocation13 + $0x28] sm:$0xff]  }
 0x40b   :  { %v1279_v16 = vpop.xlane.xlu1 %1278 }
 0x40c   :  { %5258 = vrcp.f32 %v1279_v16  ;;  %v5093_v16 = vld [vmem:[#allocation13 + $0x20] sm:$0xff]  }
 0x40d   :  { %v5253_v15 = vpop.eup %5252 }
 0x40e   :  { %v1322_v25 = vmul.f32 %v5253_v15, %v6131_v44 }
 0x40f   :  { %v1282_v59 = vpop.xlane.xlu0 %1281 }
 0x410   :  { %5260 = vrcp.f32 %v1282_v59  ;;  %v1335_v26 = vpack.c.bf16 %v1322_v25, %v1321_v57 }
 0x411   :  { %v5255_v31 = vpop.eup %5254 }
 0x412   :  { %4811 = vmatmul.mubr.msk.bf16.vlgmr.msra.gmra.mxu0 %vm1156_vm7, %v1335_v26  ;;  %v1323_v36 = vmul.f32 %v5255_v31, %v6136_v50  ;;  %v5094_v31 = vld [vmem:[#allocation13 + $0x18] sm:$0xff]  }
 0x413   :  { %4821 = vmatpush3.bf16.msra.mxu0 %v728_v35  ;;  %v1285_v37 = vpop.xlane.xlu1 %1284  ;;  %4822 = vmatprep.mubr.msk.bf16.mxu0 %vm5682_vm0, %v5681_v22 }
 0x414   :  { %4832 = vmatprep.subr.bf16.mxu0 %v5681_v22  ;;  %5262 = vrcp.f32 %v1285_v37  ;;  %v5095_v37 = vld [vmem:[#allocation13 + $0x10] sm:$0xff]  }
 0x415   :  { %v5257_v63 = vpop.eup %5256 }
 0x416   :  { %v1324_v41 = vmul.f32 %v5257_v63, %v6141_v55 }
 0x417   :  { %v1288_v44 = vpop.xlane.xlu0 %1287 }
 0x418   :  { %5264 = vrcp.f32 %v1288_v44  ;;  %v1336_v1 = vpack.c.bf16 %v1324_v41, %v1323_v36 }
 0x419   :  { %v5259_v5 = vpop.eup %5258 }
 0x41a   :  { %4817 = vmatmul.mubr.msk.bf16.vlgmr.msra.gmra.mxu1 %vm1156_vm7, %v1336_v1  ;;  %v1325_v10 = vmul.f32 %v5259_v5, %v6146_v62  ;;  %v5096_v1 = vld [vmem:[#allocation13 + $0x8] sm:$0xff]  }
 0x41b   :  { %4827 = vmatpush3.bf16.msra.mxu1 %v730_v39  ;;  %v1291_v6 = vpop.xlane.xlu1 %1290  ;;  %4828 = vmatprep.mubr.msk.bf16.mxu1 %vm5682_vm0, %v5681_v22 }
 0x41c   :  { %4838 = vmatprep.subr.bf16.mxu1 %v5681_v22  ;;  %5266 = vrcp.f32 %v1291_v6  ;;  %v5097_v6 = vld [vmem:[#allocation13] sm:$0xff]  }
 0x41d   :  { %v5261_v42 = vpop.eup %5260 }
 0x41e   :  { %v1326_v50 = vmul.f32 %v5261_v42, %v6151_v0 }
 0x41f   :  { %v1294_v55 = vpop.xlane.xlu0 %1293 }
 0x420   :  { %5268 = vrcp.f32 %v1294_v55  ;;  %v1337_v12 = vpack.c.bf16 %v1326_v50, %v1325_v10 }
 0x421   :  { %v5263_v14 = vpop.eup %5262 }
 0x422   :  { %4823 = vmatmul.mubr.msk.bf16.vlgmr.msra.gmra.mxu0 %vm1156_vm7, %v1337_v12  ;;  %v1327_v40 = vmul.f32 %v5263_v14, %v6156_v7 }
 0x423   :  { %v1297_v49 = vpop.xlane.xlu1 %1296  ;;  %4834 = vmatprep.mubr.msk.bf16.mxu0 %vm5682_vm0, %v5681_v22 }
 0x424   :  { %5270 = vrcp.f32 %v1297_v49 }
 0x425   :  { %v5265_v34 = vpop.eup %5264 }
 0x426   :  { %v1328_v19 = vmul.f32 %v5265_v34, %v6161_v28 }
 0x427   :  { %v1300_v23 = vpop.xlane.xlu0 %1299  ;;  %v736_v0 = vpop.permute.xlu1 %735 }
 0x428   :  { %5272 = vrcp.f32 %v1300_v23  ;;  %v1338_v62 = vpack.c.bf16 %v1328_v19, %v1327_v40 }
 0x429   :  { %v5267_v24 = vpop.eup %5266 }
 0x42a   :  { %4829 = vmatmul.mubr.msk.bf16.vlgmr.msra.gmra.mxu1 %vm1156_vm7, %v1338_v62  ;;  %v1329_v32 = vmul.f32 %v5267_v24, %v6165_v54 }
 0x42b   :  { %4839 = vmatpush3.bf16.msra.mxu1 %v736_v0  ;;  %v734_v29 = vpop.permute.xlu0 %733  ;;  %4840 = vmatprep.mubr.msk.bf16.mxu1 %vm5682_vm0, %v5681_v22 }
 0x42c   :  { %4833 = vmatpush3.bf16.msra.mxu0 %v734_v29 }
 0x42d   :  { %v5269_v30 = vpop.eup %5268  ;;  %4844 = vmatprep.subr.bf16.mxu0 %v5090_v48 }
 0x42e   :  { %v1330_v7 = vmul.f32 %v5269_v30, %v6169_v20 }
 0x430   :  { %v1339_v33 = vpack.c.bf16 %v1330_v7, %v1329_v32 }
 0x431   :  { %v5271_v28 = vpop.eup %5270 }
 0x432   :  { %4835 = vmatmul.mubr.msk.bf16.vlgmr.msra.gmra.mxu0 %vm1156_vm7, %v1339_v33  ;;  %v1331_v38 = vmul.f32 %v5271_v28, %v6173_v60 }
 0x433   :  { %4845 = vmatpush3.bf16.msra.mxu0 %v5090_v48  ;;  %v5363_v48 = vld [vmem:[#allocation2 + $0x8] sm:$0xff] }
 0x434   :  { %4846 = vmatprep.subr.bf16.mxu0 %v5091_v11 }
 0x435   :  { %v5273_v35 = vpop.eup %5272 }
 0x436   :  { %v1332_v39 = vmul.f32 %v5273_v35, %v6177_v27 }
 0x437   :  { %4847 = vmatpush3.bf16.msra.mxu0 %v5091_v11 }
 0x438   :  { %v1340_v51 = vpack.c.bf16 %v1332_v39, %v1331_v38  ;;  %4848 = vmatprep.subr.bf16.mxu0 %v5092_v18 }
 0x43a   :  { %4841 = vmatmul.mubr.msk.bf16.vlgmr.msra.gmra.mxu1 %vm1156_vm7, %v1340_v51 }
 0x43b   :  { %4849 = vmatpush3.bf16.msra.mxu0 %v5092_v18  ;;  %v5099_v18 = vld [vmem:[#allocation16 + $0x30] sm:$0xff]  }
 0x43c   :  { %4850 = vmatprep.subr.bf16.mxu0 %v5093_v16 }
 0x43f   :  { %4851 = vmatpush3.bf16.msra.mxu0 %v5093_v16  ;;  %v5100_v16 = vld [vmem:[#allocation16 + $0x28] sm:$0xff]  }
 0x440   :  { %4852 = vmatprep.subr.bf16.mxu0 %v5094_v31 }
 0x443   :  { %4853 = vmatpush3.bf16.msra.mxu0 %v5094_v31 }
 0x444   :  { %4854 = vmatprep.subr.bf16.mxu0 %v5095_v37 }
 0x447   :  { %4855 = vmatpush3.bf16.msra.mxu0 %v5095_v37 }
 0x448   :  { %4856 = vmatprep.subr.bf16.mxu0 %v5096_v1 }
 0x44b   :  { %4857 = vmatpush3.bf16.msra.mxu0 %v5096_v1 }
 0x44c   :  { %4858 = vmatprep.subr.bf16.mxu0 %v5097_v6 }
 0x44f   :  { %4859 = vmatpush3.bf16.msra.mxu0 %v5097_v6 }
 0x492   :  { %v6225_v21 = vpop.f32.mrf.mxu0 }
 0x494   :  { %v4800_v56 = vpop.f32.mrf.mxu0 }
 0x496   :  { %v6227_v43 = vpop.f32.mrf.mxu0 }
 0x497   :  { %v1693_v54 = vpack.c.bf16 %v6227_v43, %v6225_v21  ;;  %v4359_v43 = vld [vmem:[%s6767_s1] ss:$0 sm:$0xff] }
 0x498   :  { %v4801_v20 = vpop.f32.mrf.mxu0 }
 0x49a   :  { %v6231_v61 = vpop.f32.mrf.mxu1 }
 0x49c   :  { %v4806_v45 = vpop.f32.mrf.mxu1 }
 0x49e   :  { %v6233_v46 = vpop.f32.mrf.mxu1 }
 0x49f   :  { %v1694_v60 = vpack.c.bf16 %v6233_v46, %v6231_v61 }
 0x4a0   :  { %v4807_v27 = vpop.f32.mrf.mxu1 }
 0x4d2   :  { %v1466_v47 = vpop.f32.mrf.mxu0 }
 0x4d4   :  { %v4812_v3 = vpop.f32.mrf.mxu0 }
 0x4d6   :  { %v1469_v52 = vpop.f32.mrf.mxu0 }
 0x4d7   :  { %v1695_v58 = vpack.c.bf16 %v1469_v52, %v1466_v47  ;;  %v5362_v47 = vld [vmem:[#allocation2] sm:$0xff]  ;;  %v5364_v52 = vld [vmem:[#allocation2 + $0x10] sm:$0xff] }
 0x4d8   :  { %v4813_v13 = vpop.f32.mrf.mxu0 }
 0x4d9   :  { %1703 = vrot.lane.b32.xlu0 %v1695_v58, %s5684_s22  ;;  %v5365_v13 = vld [vmem:[#allocation2 + $0x18] sm:$0xff] }
 0x4da   :  { %v1510_v53 = vpop.f32.mrf.mxu1 }
 0x4dc   :  { %v4818_v17 = vpop.f32.mrf.mxu1 }
 0x4dd   :  { %v5098_v17 = vld [vmem:[#allocation16 + $0x38] sm:$0xff]  }
 0x4de   :  { %v1513_v15 = vpop.f32.mrf.mxu1  ;;  %4884 = vmatprep.subr.bf16.mxu0 %v5098_v17 }
 0x4df   :  { %v1696_v57 = vpack.c.bf16 %v1513_v15, %v1510_v53  ;;  %v5101_v15 = vld [vmem:[#allocation16 + $0x20] sm:$0xff]  }
 0x4e0   :  { %v4819_v25 = vpop.f32.mrf.mxu1 }
 0x4e1   :  { %1705 = vrot.lane.b32.xlu1 %v1696_v57, %s5684_s22 }
 0x4e2   :  { %v1554_v59 = vpop.f32.mrf.mxu0 }
 0x4e4   :  { %v4824_v26 = vpop.f32.mrf.mxu0 }
 0x4e6   :  { %v1557_v63 = vpop.f32.mrf.mxu0 }
 0x4e7   :  { %v1697_v36 = vpack.c.bf16 %v1557_v63, %v1554_v59 }
 0x4e8   :  { %v4825_v41 = vpop.f32.mrf.mxu0 }
 0x4e9   :  { %1709 = vrot.lane.b32.xlu0 %v1697_v36, %s5666_s25 }
 0x4ea   :  { %v1598_v44 = vpop.f32.mrf.mxu1 }
 0x4ec   :  { %v4830_v5 = vpop.f32.mrf.mxu1 }
 0x4ee   :  { %v1601_v42 = vpop.f32.mrf.mxu1 }
 0x4ef   :  { %v1698_v10 = vpack.c.bf16 %v1601_v42, %v1598_v44 }
 0x4f0   :  { %v4831_v50 = vpop.f32.mrf.mxu1 }
 0x4f1   :  { %1711 = vrot.lane.b32.xlu1 %v1698_v10, %s5666_s25 }
 0x4f2   :  { %v1642_v55 = vpop.f32.mrf.mxu0 }
 0x4f4   :  { %v4836_v12 = vpop.f32.mrf.mxu0 }
 0x4f5   :  { %v5103_v12 = vld [vmem:[#allocation14 + $0x38] sm:$0xff]  }
 0x4f6   :  { %v1645_v14 = vpop.f32.mrf.mxu0  ;;  %4864 = vmatprep.subr.bf16.mxu1 %v5103_v12 }
 0x4f7   :  { %v1699_v49 = vpack.c.bf16 %v1645_v14, %v1642_v55  ;;  %v5102_v55 = vld [vmem:[#allocation16 + $0x18] sm:$0xff]   ;;  %v5104_v14 = vld [vmem:[#allocation16 + $0x10] sm:$0xff]   ;;  %4865 = vmatpush3.bf16.msra.mxu1 %v5103_v12 }
 0x4f8   :  { %v4837_v34 = vpop.f32.mrf.mxu0 }
 0x4f9   :  { %1715 = vrot.lane.b32.xlu0 %v1699_v49, %s5683_s12  ;;  %v5105_v49 = vld [vmem:[#allocation14 + $0x30] sm:$0xff]   ;;  %v5106_v34 = vld [vmem:[#allocation16 + $0x8] sm:$0xff]  }
 0x4fa   :  { %v1686_v40 = vpop.f32.mrf.mxu1  ;;  %4866 = vmatprep.subr.bf16.mxu1 %v5105_v49 }
 0x4fb   :  { %4867 = vmatpush3.bf16.msra.mxu1 %v5105_v49 }
 0x4fc   :  { %v4842_v19 = vpop.f32.mrf.mxu1 }
 0x4fd   :  { %v5108_v19 = vld [vmem:[#allocation16] sm:$0xff]  }
 0x4fe   :  { %v1689_v23 = vpop.f32.mrf.mxu1 }
 0x4ff   :  { %v1700_v62 = vpack.c.bf16 %v1689_v23, %v1686_v40  ;;  %v5107_v40 = vld [vmem:[#allocation14 + $0x28] sm:$0xff]   ;;  %v5109_v23 = vld [vmem:[#allocation14 + $0x20] sm:$0xff]  }
 0x500   :  { %v4843_v0 = vpop.f32.mrf.mxu1  ;;  %4868 = vmatprep.subr.bf16.mxu1 %v5107_v40 }
 0x501   :  { %1717 = vrot.lane.b32.xlu1 %v1700_v62, %s5683_s12  ;;  %4869 = vmatpush3.bf16.msra.mxu1 %v5107_v40  ;;  %v257_v62 = vld [vmem:[#allocation5] sm:$0xff]  ;;  %v258_v0 = vld [vmem:[#allocation5 + $0x8] sm:$0xff] }
 0x502   :  { %4870 = vmatprep.subr.bf16.mxu1 %v5109_v23 }
 0x505   :  { %4871 = vmatpush3.bf16.msra.mxu1 %v5109_v23 }
 0x54b   :  { %v1704_v24 = vpop.permute.xlu0 %1703 }
 0x54c   :  { %v1721_v30 = vsel %vm739_vm1, %v1693_v54, %v1704_v24  ;;  %v6274_v24 = vpack.c.bf16 %v258_v0, %v257_v62 }
 0x553   :  { %v1706_v32 = vpop.permute.xlu1 %1705 }
 0x554   :  { %v1724_v38 = vsel %vm739_vm1, %v1694_v60, %v1706_v32  ;;  %v5110_v32 = vld [vmem:[#allocation14 + $0x18] sm:$0xff]  }
 0x555   :  { %4872 = vmatprep.subr.bf16.mxu1 %v5110_v32 }
 0x556   :  { %4873 = vmatpush3.bf16.msra.mxu1 %v5110_v32 }
 0x55b   :  { %v1710_v29 = vpop.permute.xlu0 %1709 }
 0x55c   :  { %v1727_v7 = vsel %vm1725_vm13, %v1721_v30, %v1710_v29  ;;  %v259_v29 = vld [vmem:[#allocation5 + $0x10] sm:$0xff]  ;;  %v260_v30 = vld [vmem:[#allocation5 + $0x18] sm:$0xff] }
 0x563   :  { %v1712_v35 = vpop.permute.xlu1 %1711 }
 0x564   :  { %v1729_v39 = vsel %vm1725_vm13, %v1724_v38, %v1712_v35  ;;  %v5113_v35 = vld [vmem:[#allocation14] sm:$0xff]   ;;  %v5114_v38 = vld [vmem:[#allocation17 + $0x38] sm:$0xff]  }
 0x56b   :  { %v1716_v33 = vpop.permute.xlu0 %1715 }
 0x56c   :  { %v1732_v28 = vsel %vm1730_vm14, %v1727_v7, %v1716_v33  ;;  %v6276_v7 = vpack.c.bf16 %v260_v30, %v259_v29  ;;  %v5111_v33 = vld [vmem:[#allocation14 + $0x10] sm:$0xff]  }
 0x56d   :  { %4860 = vmatprep.mubr.bf16.mxu0 %v1732_v28  ;;  %4874 = vmatprep.subr.bf16.mxu1 %v5111_v33  ;;  %v5112_v28 = vld [vmem:[#allocation14 + $0x8] sm:$0xff]  }
 0x56e   :  { %4875 = vmatpush3.bf16.msra.mxu1 %v5111_v33 }
 0x56f   :  { %4876 = vmatprep.subr.bf16.mxu1 %v5112_v28 }
 0x572   :  { %4877 = vmatpush3.bf16.msra.mxu1 %v5112_v28 }
 0x573   :  { %v1718_v51 = vpop.permute.xlu1 %1717  ;;  %4878 = vmatprep.subr.bf16.mxu1 %v5113_v35 }
 0x574   :  { %v1735_v21 = vsel %vm1730_vm14, %v1729_v39, %v1718_v51 }
 0x575   :  { %4861 = vmatmul.mubr.bf16.vlgmr.msra.gmra.mxu0 %v1735_v21 }
 0x576   :  { %4885 = vmatpush3.bf16.msra.mxu0 %v5098_v17  ;;  %4900 = vmatprep.mubr.bf16.mxu0 %v6274_v24  ;;  %v4369_v17 = vld [vmem:[%s6729_s15] ss:$0 sm:$0xff] }
 0x577   :  { %4886 = vmatprep.subr.bf16.mxu0 %v5099_v18  ;;  %4879 = vmatpush3.bf16.msra.mxu1 %v5113_v35 }
 0x578   :  { %4904 = vmatprep.subr.bf16.mxu1 %v5114_v38 }
 0x57a   :  { %4887 = vmatpush3.bf16.msra.mxu0 %v5099_v18 }
 0x57b   :  { %4888 = vmatprep.subr.bf16.mxu0 %v5100_v16 }
 0x57e   :  { %4889 = vmatpush3.bf16.msra.mxu0 %v5100_v16 }
 0x57f   :  { %4890 = vmatprep.subr.bf16.mxu0 %v5101_v15 }
 0x582   :  { %4891 = vmatpush3.bf16.msra.mxu0 %v5101_v15 }
 0x583   :  { %4892 = vmatprep.subr.bf16.mxu0 %v5102_v55 }
 0x586   :  { %4893 = vmatpush3.bf16.msra.mxu0 %v5102_v55 }
 0x587   :  { %4894 = vmatprep.subr.bf16.mxu0 %v5104_v14 }
 0x58a   :  { %4895 = vmatpush3.bf16.msra.mxu0 %v5104_v14 }
 0x58b   :  { %4896 = vmatprep.subr.bf16.mxu0 %v5106_v34 }
 0x58e   :  { %4897 = vmatpush3.bf16.msra.mxu0 %v5106_v34 }
 0x58f   :  { %4898 = vmatprep.subr.bf16.mxu0 %v5108_v19 }
 0x592   :  { %4899 = vmatpush3.bf16.msra.mxu0 %v5108_v19 }
 0x593   :  { %4924 = vmatprep.subr.bf16.mxu0 %v5681_v22 }
 0x595   :  { %4901 = vmatmul.mubr.bf16.vlgmr.msra.gmra.mxu0 %v6276_v7 }
 0x596   :  { %4926 = vmatprep.mubr.msk.bf16.mxu0 %vm5682_vm0, %v5681_v22 }
 0x635   :  { %v4862_v56 = vpop.f32.mrf.mxu0 }
 0x636   :  { %v1851_v27 = vadd.f32 %v4862_v56, %v4359_v43 }
 0x637   :  { %v1842_v54 = vpop.f32.mrf.mxu0 }
 0x638   :  { %v1843_v20 = vadd.f32 %v4359_v43, %v1842_v54  ;;  %v1859_v58 = vadd.f32 %v5364_v52, %v1851_v27 }
 0x639   :  { %v4863_v45 = vpop.f32.mrf.mxu0 }
 0x63a   :  { %v1857_v3 = vadd.f32 %v5362_v47, %v1843_v20  ;;  %v1854_v60 = vadd.f32 %v4863_v45, %v4359_v43 }
 0x63b   :  { %v1845_v61 = vpop.f32.mrf.mxu0 }
 0x63c   :  { %v1846_v46 = vadd.f32 %v4359_v43, %v1845_v61  ;;  %1861 = vadd.xlane.f32.xlu0 %v1857_v3  ;;  %v1860_v53 = vadd.f32 %v5365_v13, %v1854_v60 }
 0x63e   :  { %v1858_v11 = vadd.f32 %v5363_v48, %v1846_v46  ;;  %v4368_v48 = vld [vmem:[%s6728_s14] ss:$0 sm:$0xff] }
 0x640   :  { %1863 = vadd.xlane.f32.xlu1 %v1858_v11  ;;  %1865 = vadd.xlane.f32.xlu0 %v1859_v58 }
 0x644   :  { %1867 = vadd.xlane.f32.xlu0 %v1860_v53 }
 0x6c5   :  { %v1862_v57 = vpop.xlane.xlu0 %1861 }
 0x6c6   :  { %v1870_v25 = vmul.f32 0.0078125, %v1862_v57 }
 0x6c8   :  { %v6258_v59 = vsub.f32 %v1857_v3, %v1870_v25 }
 0x6c9   :  { %v1864_v26 = vpop.xlane.xlu1 %1863  ;;  %v1866_v31 = vpop.xlane.xlu0 %1865 }
 0x6ca   :  { %v1871_v37 = vmul.f32 0.0078125, %v1864_v26  ;;  %v1872_v63 = vmul.f32 0.0078125, %v1866_v31  ;;  %v1878_v36 = vmul.f32 %v6258_v59, %v6258_v59 }
 0x6cc   :  { %v6262_v41 = vsub.f32 %v1858_v11, %v1871_v37  ;;  %v6264_v44 = vsub.f32 %v1859_v58, %v1872_v63  ;;  %1882 = vadd.xlane.f32.xlu1 %v1878_v36 }
 0x6cd   :  { %v1868_v1 = vpop.xlane.xlu0 %1867 }
 0x6ce   :  { %v1873_v5 = vmul.f32 0.0078125, %v1868_v1  ;;  %v1879_v6 = vmul.f32 %v6262_v41, %v6262_v41  ;;  %v1880_v42 = vmul.f32 %v6264_v44, %v6264_v44  ;;  %v5117_v1 = vld [vmem:[#allocation17 + $0x20] sm:$0xff]  }
 0x6d0   :  { %v6270_v10 = vsub.f32 %v1860_v53, %v1873_v5  ;;  %1884 = vadd.xlane.f32.xlu0 %v1879_v6  ;;  %1886 = vadd.xlane.f32.xlu1 %v1880_v42  ;;  %v5118_v5 = vld [vmem:[#allocation17 + $0x18] sm:$0xff]   ;;  %v5119_v6 = vld [vmem:[#allocation17 + $0x10] sm:$0xff]   ;;  %v5120_v42 = vld [vmem:[#allocation17 + $0x8] sm:$0xff]  }
 0x6d2   :  { %v1881_v50 = vmul.f32 %v6270_v10, %v6270_v10 }
 0x6d4   :  { %1888 = vadd.xlane.f32.xlu0 %v1881_v50  ;;  %v4902_v50 = vpop.f32.mrf.mxu0 }
 0x6d6   :  { %v2159_v55 = vpop.f32.mrf.mxu0 }
 0x6d8   :  { %v4903_v12 = vpop.f32.mrf.mxu0 }
 0x6d9   :  { %v2175_v14 = vpack.c.bf16 %v4903_v12, %v4902_v50 }
 0x6da   :  { %v2162_v49 = vpop.f32.mrf.mxu0 }
 0x6db   :  { %v2174_v34 = vpack.c.bf16 %v2162_v49, %v2159_v55  ;;  %v2376_v40 = vsel %vm739_vm1, %v2175_v14, 0 }
 0x6dd   :  { %v2329_v19 = vsel %vm739_vm1, %v2174_v34, 0 }
 0x6de   :  { %4925 = vmatpush3.bf16.xpose.msra.mxu0 %v2329_v19 }
 0x6df   :  { %4936 = vmatprep.subr.bf16.mxu0 %v5681_v22 }
 0x6e1   :  { %2178 = vrot.lane.b32.xlu1 %v2174_v34, %s5683_s12 }
 0x6e5   :  { %2182 = vrot.lane.b32.xlu1 %v2174_v34, %s5666_s25 }
 0x6ea   :  { %2180 = vrot.lane.b32.xlu0 %v2175_v14, %s5683_s12 }
 0x755   :  { %v1883_v39 = vpop.xlane.xlu1 %1882 }
 0x756   :  { %v1890_v51 = vmul.f32 0.0078125, %v1883_v39 }
 0x758   :  { %v1894_v21 = vadd.f32 1e-05, %v1890_v51 }
 0x759   :  { %v1887_v56 = vpop.xlane.xlu1 %1886  ;;  %v1885_v43 = vpop.xlane.xlu0 %1884 }
 0x75a   :  { %5274 = vrsqrt.f32 %v1894_v21  ;;  %v1892_v54 = vmul.f32 0.0078125, %v1887_v56  ;;  %v1891_v20 = vmul.f32 0.0078125, %v1885_v43 }
 0x75c   :  { %v1896_v45 = vadd.f32 1e-05, %v1892_v54  ;;  %v1895_v27 = vadd.f32 1e-05, %v1891_v20 }
 0x75d   :  { %v1889_v47 = vpop.xlane.xlu0 %1888 }
 0x75e   :  { %5276 = vrsqrt.f32 %v1896_v45  ;;  %v1893_v3 = vmul.f32 0.0078125, %v1889_v47 }
 0x75f   :  { %5278 = vrsqrt.f32 %v1895_v27 }
 0x760   :  { %v1897_v61 = vadd.f32 1e-05, %v1893_v3 }
 0x761   :  { %v2181_v0 = vpop.permute.xlu0 %2180 }
 0x762   :  { %5280 = vrsqrt.f32 %v1897_v61  ;;  %v2470_v30 = vsel %vm739_vm1, %v2181_v0, 0 }
 0x767   :  { %v5275_v46 = vpop.eup %5274 }
 0x768   :  { %v1902_v60 = vmul.f32 %v5275_v46, %v6258_v59 }
 0x76a   :  { %v1913_v53 = vmul.f32 %v4368_v48, %v1902_v60 }
 0x76b   :  { %v5277_v11 = vpop.eup %5276 }
 0x76c   :  { %v5279_v52 = vpop.eup %5278  ;;  %v1904_v58 = vmul.f32 %v5277_v11, %v6264_v44  ;;  %v6293_v25 = vadd.f32 %v4369_v17, %v1913_v53  ;;  %v5116_v44 = vld [vmem:[#allocation17 + $0x28] sm:$0xff]  }
 0x76d   :  { %v1903_v13 = vmul.f32 %v5279_v52, %v6262_v41  ;;  %v5115_v41 = vld [vmem:[#allocation17 + $0x30] sm:$0xff]  }
 0x76e   :  { %v1915_v57 = vmul.f32 %v4368_v48, %v1904_v58 }
 0x76f   :  { %v5281_v18 = vpop.eup %5280  ;;  %v1914_v16 = vmul.f32 %v4368_v48, %v1903_v13  ;;  %v4318_v13 = vld.sshfl [vmem:[#allocation7] sm:$0x11 pattern:$0x75316420] }
 0x770   :  { %v1905_v15 = vmul.f32 %v5281_v18, %v6270_v10  ;;  %v6299_v37 = vadd.f32 %v4369_v17, %v1915_v57  ;;  %v5121_v10 = vld [vmem:[#allocation17] sm:$0xff]   ;;  %v325_v53 = vcombine.high %v4318_v13, %v4318_v13  ;;  %v332_v18 = vrot.slane %v4318_v13, %v5951_v4 }
 0x771   :  { %v6295_v59 = vadd.f32 %v4369_v17, %v1914_v16 }
 0x772   :  { %v1916_v26 = vmul.f32 %v4368_v48, %v1905_v15  ;;  %vm342_vm2 = vcmp.eq.f32.partialorder %v332_v18, 0.0 }
 0x773   :  { %v1928_v31 = vpack.c.bf16 %v6295_v59, %v6293_v25  ;;  %v2717_v15 = vsel %vm342_vm2, 1, %v5686_v9 }
 0x774   :  { %v6301_v63 = vadd.f32 %v4369_v17, %v1916_v26  ;;  %v339_v17 = vrot.slane %v325_v53, %v5951_v4  ;;  %v2722_v26 = vrot.slane %v2717_v15, %v5958_v8 }
 0x775   :  { %4880 = vmatprep.mubr.bf16.mxu1 %v1928_v31 }
 0x776   :  { %v1929_v36 = vpack.c.bf16 %v6301_v63, %v6299_v37  ;;  %vm343_vm15 = vcmp.eq.f32.partialorder %v339_v17, 0.0  ;;  %vm6380_vm4 = vcmp.eq.s32.totalorder %v2722_v26, 1 }
 0x777   :  { %v2718_v16 = vsel %vm343_vm15, 1, %v5686_v9 }
 0x778   :  { %4881 = vmatmul.mubr.bf16.vlgmr.msra.gmra.mxu1 %v1929_v36  ;;  %v2726_v57 = vrot.slane %v2718_v16, %v5958_v8 }
 0x779   :  { %4905 = vmatpush3.bf16.msra.mxu1 %v5114_v38  ;;  %4920 = vmatprep.mubr.bf16.mxu1 %v6274_v24 }
 0x77a   :  { %4906 = vmatprep.subr.bf16.mxu1 %v5115_v41  ;;  %vm6376_vm3 = vcmp.eq.s32.totalorder %v2726_v57, 1 }
 0x77d   :  { %4907 = vmatpush3.bf16.msra.mxu1 %v5115_v41 }
 0x77e   :  { %4908 = vmatprep.subr.bf16.mxu1 %v5116_v44 }
 0x781   :  { %4909 = vmatpush3.bf16.msra.mxu1 %v5116_v44 }
 0x782   :  { %4910 = vmatprep.subr.bf16.mxu1 %v5117_v1 }
 0x785   :  { %4911 = vmatpush3.bf16.msra.mxu1 %v5117_v1 }
 0x786   :  { %4912 = vmatprep.subr.bf16.mxu1 %v5118_v5 }
 0x789   :  { %4913 = vmatpush3.bf16.msra.mxu1 %v5118_v5 }
 0x78a   :  { %4914 = vmatprep.subr.bf16.mxu1 %v5119_v6 }
 0x78d   :  { %4915 = vmatpush3.bf16.msra.mxu1 %v5119_v6 }
 0x78e   :  { %4916 = vmatprep.subr.bf16.mxu1 %v5120_v42 }
 0x791   :  { %4917 = vmatpush3.bf16.msra.mxu1 %v5120_v42 }
 0x792   :  { %4918 = vmatprep.subr.bf16.mxu1 %v5121_v10 }
 0x795   :  { %4919 = vmatpush3.bf16.msra.mxu1 %v5121_v10 }
 0x796   :  { %4930 = vmatprep.subr.bf16.mxu1 %v5681_v22 }
 0x798   :  { %4921 = vmatmul.mubr.bf16.vlgmr.msra.gmra.mxu1 %v6276_v7  ;;  %v2179_v7 = vpop.permute.xlu1 %2178 }
 0x799   :  { %4932 = vmatprep.mubr.msk.bf16.mxu1 %vm5682_vm0, %v5681_v22  ;;  %4931 = vmatpush3.bf16.xpose.msra.mxu1 %v2376_v40  ;;  %v2423_v28 = vsel %vm739_vm1, %v2179_v7, 0 }
 0x79a   :  { %4942 = vmatprep.subr.bf16.mxu1 %v5681_v22 }
 0x79c   :  { %v2183_v35 = vpop.permute.xlu1 %2182 }
 0x79d   :  { %v2517_v51 = vsel %vm739_vm1, %v2183_v35, 0 }
 0x838   :  { %v4882_v23 = vpop.f32.mrf.mxu1 }
 0x83a   :  { %v2030_v62 = vpop.f32.mrf.mxu1 }
 0x83c   :  { %v4883_v24 = vpop.f32.mrf.mxu1 }
 0x83d   :  { %v2046_v29 = vpack.c.bf16 %v4883_v24, %v4882_v23 }
 0x83e   :  { %v2033_v32 = vpop.f32.mrf.mxu1 }
 0x83f   :  { %v2045_v33 = vpack.c.bf16 %v2033_v32, %v2030_v62  ;;  %2051 = vrot.lane.b32.xlu0 %v2046_v29, %s5683_s12  ;;  %4933 = vmatmul.mubr.msk.bf16.vlgmr.msra.gmra.mxu1 %vm739_vm1, %v2046_v29 }
 0x840   :  { %4943 = vmatpush3.bf16.xpose.msra.mxu1 %v2470_v30  ;;  %4944 = vmatprep.mubr.msk.bf16.mxu1 %vm5682_vm0, %v5681_v22 }
 0x841   :  { %2049 = vrot.lane.b32.xlu1 %v2045_v33, %s5683_s12  ;;  %4927 = vmatmul.mubr.msk.bf16.vlgmr.msra.gmra.mxu0 %vm739_vm1, %v2045_v33 }
 0x842   :  { %4937 = vmatpush3.bf16.xpose.msra.mxu0 %v2423_v28  ;;  %4938 = vmatprep.mubr.msk.bf16.mxu0 %vm5682_vm0, %v5681_v22 }
 0x843   :  { %2053 = vrot.lane.b32.xlu0 %v2045_v33, %s5666_s25  ;;  %4948 = vmatprep.subr.bf16.mxu0 %v5681_v22 }
 0x844   :  { %4954 = vmatprep.subr.bf16.mxu1 %v5681_v22 }
 0x845   :  { %2184 = vrot.lane.b32.xlu1 %v2175_v14, %s5666_s25 }
 0x847   :  { %2055 = vrot.lane.b32.xlu0 %v2046_v29, %s5666_s25 }
 0x849   :  { %2186 = vrot.lane.b32.xlu1 %v2174_v34, %s5684_s22 }
 0x84b   :  { %2057 = vrot.lane.b32.xlu0 %v2045_v33, %s5684_s22 }
 0x84d   :  { %2188 = vrot.lane.b32.xlu1 %v2175_v14, %s5684_s22 }
 0x851   :  { %2059 = vrot.lane.b32.xlu1 %v2046_v29, %s5684_s22 }
 0x858   :  { %v4922_v21 = vpop.f32.mrf.mxu1 }
 0x85a   :  { %v2288_v20 = vpop.f32.mrf.mxu1 }
 0x85c   :  { %v4923_v47 = vpop.f32.mrf.mxu1 }
 0x85d   :  { %v6359_v52 = vpack.c.bf16 %v4923_v47, %v4922_v21 }
 0x85e   :  { %v2291_v60 = vpop.f32.mrf.mxu1 }
 0x85f   :  { %v6355_v48 = vpack.c.bf16 %v2291_v60, %v2288_v20 }
 0x8b1   :  { %v2052_v38 = vpop.permute.xlu0 %2051 }
 0x8b2   :  { %4945 = vmatmul.mubr.msk.bf16.vlgmr.msra.gmra.mxu1 %vm739_vm1, %v2052_v38 }
 0x8b3   :  { %v2050_v39 = vpop.permute.xlu1 %2049  ;;  %4956 = vmatprep.mubr.msk.bf16.mxu1 %vm5682_vm0, %v5681_v22 }
 0x8b4   :  { %4939 = vmatmul.mubr.msk.bf16.vlgmr.msra.gmra.mxu0 %vm739_vm1, %v2050_v39 }
 0x8b5   :  { %4949 = vmatpush3.bf16.xpose.msra.mxu0 %v2517_v51  ;;  %4950 = vmatprep.mubr.msk.bf16.mxu0 %vm5682_vm0, %v5681_v22  ;;  %v2054_v56 = vpop.permute.xlu0 %2053 }
 0x8b6   :  { %4960 = vmatprep.subr.bf16.mxu0 %v5681_v22 }
 0x8b7   :  { %v2185_v43 = vpop.permute.xlu1 %2184 }
 0x8b8   :  { %v2564_v54 = vsel %vm739_vm1, %v2185_v43, 0 }
 0x8b9   :  { %4955 = vmatpush3.bf16.xpose.msra.mxu1 %v2564_v54  ;;  %v2056_v3 = vpop.permute.xlu0 %2055 }
 0x8ba   :  { %4966 = vmatprep.subr.bf16.mxu1 %v5681_v22 }
 0x8bb   :  { %v2187_v45 = vpop.permute.xlu1 %2186 }
 0x8bc   :  { %v2611_v27 = vsel %vm739_vm1, %v2187_v45, 0  ;;  %4951 = vmatmul.mubr.msk.bf16.vlgmr.msra.gmra.mxu0 %vm739_vm1, %v2054_v56 }
 0x8bd   :  { %4961 = vmatpush3.bf16.xpose.msra.mxu0 %v2611_v27  ;;  %4962 = vmatprep.mubr.msk.bf16.mxu0 %vm5682_vm0, %v5681_v22  ;;  %v2058_v11 = vpop.permute.xlu0 %2057 }
 0x8be   :  { %4972 = vmatprep.subr.bf16.mxu0 %v5681_v22 }
 0x8bf   :  { %v2189_v61 = vpop.permute.xlu1 %2188 }
 0x8c0   :  { %v2658_v46 = vsel %vm739_vm1, %v2189_v61, 0  ;;  %4957 = vmatmul.mubr.msk.bf16.vlgmr.msra.gmra.mxu1 %vm739_vm1, %v2056_v3 }
 0x8c1   :  { %4967 = vmatpush3.bf16.xpose.msra.mxu1 %v2658_v46  ;;  %4968 = vmatprep.mubr.msk.bf16.mxu1 %vm5682_vm0, %v5681_v22 }
 0x8c2   :  { %4978 = vmatprep.subr.bf16.mxu1 %v5681_v22 }
 0x8c3   :  { %v2060_v58 = vpop.permute.xlu1 %2059 }
 0x8c4   :  { %4963 = vmatmul.mubr.msk.bf16.vlgmr.msra.gmra.mxu0 %vm739_vm1, %v2058_v11 }
 0x8c5   :  { %4973 = vmatpush3.bf16.msra.mxu0 %v6355_v48  ;;  %4974 = vmatprep.mubr.msk.bf16.mxu0 %vm5682_vm0, %v5681_v22 }
 0x8c6   :  { %4984 = vmatprep.subr.bf16.mxu0 %v5681_v22 }
 0x8c8   :  { %4969 = vmatmul.mubr.msk.bf16.vlgmr.msra.gmra.mxu1 %vm739_vm1, %v2060_v58 }
 0x8c9   :  { %4979 = vmatpush3.bf16.msra.mxu1 %v6359_v52  ;;  %4980 = vmatprep.mubr.msk.bf16.mxu1 %vm5682_vm0, %v5681_v22 }
 0x8ca   :  { %4990 = vmatprep.subr.bf16.mxu1 %v5681_v22 }
 0x8ff   :  { %v2412_v31 = vpop.f32.mrf.mxu1 }
 0x900   :  { %v2703_v41 = vmul.f32 0.088388346, %v2412_v31 }
 0x901   :  { %v2365_v44 = vpop.f32.mrf.mxu0  ;;  %v4934_v1 = vpop.f32.mrf.mxu1 }
 0x902   :  { %v2701_v5 = vmul.f32 0.088388346, %v2365_v44  ;;  %v6386_v6 = vsel %vm6376_vm3, -1e+30, %v2703_v41 }
 0x903   :  { %v4928_v42 = vpop.f32.mrf.mxu0  ;;  %v2415_v10 = vpop.f32.mrf.mxu1  ;;  %v2751_v50 = vsel %vm1156_vm7, %v6386_v6, -inf }
 0x904   :  { %v2704_v55 = vmul.f32 0.088388346, %v2415_v10  ;;  %2752 = vmax.xlane.f32.xlu0 %v2751_v50  ;;  %v6392_v12 = vsel %vm6380_vm4, -1e+30, %v2701_v5 }
 0x905   :  { %v2368_v14 = vpop.f32.mrf.mxu0  ;;  %v4935_v49 = vpop.f32.mrf.mxu1  ;;  %v2745_v19 = vsel %vm1156_vm7, %v6392_v12, -inf }
 0x906   :  { %v2702_v34 = vmul.f32 0.088388346, %v2368_v14  ;;  %v6402_v62 = vsel %vm6376_vm3, -1e+30, %v2704_v55 }
 0x907   :  { %v4929_v40 = vpop.f32.mrf.mxu0  ;;  %v2754_v24 = vsel %vm1156_vm7, %v6402_v62, -inf }
 0x908   :  { %2746 = vmax.xlane.f32.xlu0 %v2745_v19  ;;  %v6398_v23 = vsel %vm6380_vm4, -1e+30, %v2702_v34 }
 0x909   :  { %v2748_v0 = vsel %vm1156_vm7, %v6398_v23, -inf }
 0x90a   :  { %2749 = vmax.xlane.f32.xlu1 %v2748_v0 }
 0x90c   :  { %2755 = vmax.xlane.f32.xlu0 %v2754_v24 }
 0x972   :  { %v2506_v29 = vpop.f32.mrf.mxu1 }
 0x973   :  { %v2707_v30 = vmul.f32 0.088388346, %v2506_v29 }
 0x974   :  { %v2459_v32 = vpop.f32.mrf.mxu0  ;;  %v4946_v7 = vpop.f32.mrf.mxu1 }
 0x975   :  { %v2705_v33 = vmul.f32 0.088388346, %v2459_v32  ;;  %v6410_v28 = vsel %vm6376_vm3, -1e+30, %v2707_v30 }
 0x976   :  { %v4940_v35 = vpop.f32.mrf.mxu0  ;;  %v2509_v38 = vpop.f32.mrf.mxu1  ;;  %v2763_v39 = vsel %vm1156_vm7, %v6410_v28, -inf }
 0x977   :  { %2764 = vmax.xlane.f32.xlu1 %v2763_v39  ;;  %v6416_v51 = vsel %vm6380_vm4, -1e+30, %v2705_v33  ;;  %v2708_v43 = vmul.f32 0.088388346, %v2509_v38 }
 0x978   :  { %v2462_v21 = vpop.f32.mrf.mxu0  ;;  %v4947_v56 = vpop.f32.mrf.mxu1  ;;  %v2757_v45 = vsel %vm1156_vm7, %v6416_v51, -inf }
 0x979   :  { %v2706_v54 = vmul.f32 0.088388346, %v2462_v21  ;;  %v6428_v61 = vsel %vm6376_vm3, -1e+30, %v2708_v43 }
 0x97a   :  { %v4941_v20 = vpop.f32.mrf.mxu0  ;;  %v2766_v58 = vsel %vm1156_vm7, %v6428_v61, -inf }
 0x97b   :  { %2758 = vmax.xlane.f32.xlu1 %v2757_v45  ;;  %v6422_v27 = vsel %vm6380_vm4, -1e+30, %v2706_v54 }
 0x97c   :  { %v2553_v47 = vpop.f32.mrf.mxu0  ;;  %v2760_v3 = vsel %vm1156_vm7, %v6422_v27, -inf }
 0x97d   :  { %2761 = vmax.xlane.f32.xlu0 %v2760_v3  ;;  %v2709_v13 = vmul.f32 0.088388346, %v2553_v47 }
 0x97e   :  { %v4952_v46 = vpop.f32.mrf.mxu0 }
 0x97f   :  { %v6446_v5 = vsel %vm6380_vm4, -1e+30, %v2709_v13 }
 0x980   :  { %v2556_v60 = vpop.f32.mrf.mxu0  ;;  %v2600_v11 = vpop.f32.mrf.mxu1  ;;  %v2769_v49 = vsel %vm1156_vm7, %v6446_v5, -inf }
 0x981   :  { %v2710_v53 = vmul.f32 0.088388346, %v2556_v60  ;;  %v2711_v17 = vmul.f32 0.088388346, %v2600_v11  ;;  %2767 = vmax.xlane.f32.xlu0 %v2766_v58 }
 0x982   :  { %v4953_v18 = vpop.f32.mrf.mxu0  ;;  %v4958_v16 = vpop.f32.mrf.mxu1 }
 0x983   :  { %v6434_v15 = vsel %vm6376_vm3, -1e+30, %v2711_v17  ;;  %v6438_v57 = vsel %vm6380_vm4, -1e+30, %v2710_v53 }
 0x984   :  { %v2603_v26 = vpop.f32.mrf.mxu1  ;;  %v2647_v31 = vpop.f32.mrf.mxu0  ;;  %v2775_v41 = vsel %vm1156_vm7, %v6434_v15, -inf  ;;  %v2772_v44 = vsel %vm1156_vm7, %v6438_v57, -inf }
 0x985   :  { %v2712_v1 = vmul.f32 0.088388346, %v2603_v26  ;;  %2776 = vmax.xlane.f32.xlu1 %v2775_v41  ;;  %2773 = vmax.xlane.f32.xlu0 %v2772_v44  ;;  %v2713_v40 = vmul.f32 0.088388346, %v2647_v31 }
 0x986   :  { %v4959_v42 = vpop.f32.mrf.mxu1  ;;  %v4964_v10 = vpop.f32.mrf.mxu0 }
 0x987   :  { %v6450_v50 = vsel %vm6376_vm3, -1e+30, %v2712_v1  ;;  %v6470_v39 = vsel %vm6380_vm4, -1e+30, %v2713_v40 }
 0x988   :  { %v2650_v55 = vpop.f32.mrf.mxu0  ;;  %v2694_v14 = vpop.f32.mrf.mxu1  ;;  %v2778_v34 = vsel %vm1156_vm7, %v6450_v50, -inf  ;;  %v2781_v43 = vsel %vm1156_vm7, %v6470_v39, -inf }
 0x989   :  { %v2714_v19 = vmul.f32 0.088388346, %v2650_v55  ;;  %v2715_v0 = vmul.f32 0.088388346, %v2694_v14  ;;  %2770 = vmax.xlane.f32.xlu1 %v2769_v49  ;;  %2779 = vmax.xlane.f32.xlu0 %v2778_v34 }
 0x98a   :  { %v4965_v24 = vpop.f32.mrf.mxu0  ;;  %v4970_v29 = vpop.f32.mrf.mxu1 }
 0x98b   :  { %v6458_v30 = vsel %vm6376_vm3, -1e+30, %v2715_v0  ;;  %v6462_v32 = vsel %vm6380_vm4, -1e+30, %v2714_v19 }
 0x98c   :  { %v2697_v7 = vpop.f32.mrf.mxu1  ;;  %v2787_v33 = vsel %vm1156_vm7, %v6458_v30, -inf  ;;  %v2784_v35 = vsel %vm1156_vm7, %v6462_v32, -inf }
 0x98d   :  { %v2716_v38 = vmul.f32 0.088388346, %v2697_v7  ;;  %2788 = vmax.xlane.f32.xlu1 %v2787_v33  ;;  %2785 = vmax.xlane.f32.xlu0 %v2784_v35  ;;  %v2753_v20 = vpop.xlane.xlu0 %2752 }
 0x98e   :  { %v4971_v21 = vpop.f32.mrf.mxu1  ;;  %v2795_v60 = vsub.f32 %v6386_v6, %v2753_v20 }
 0x98f   :  { %v6474_v56 = vsel %vm6376_vm3, -1e+30, %v2716_v38 }
 0x990   :  { %v2790_v54 = vsel %vm1156_vm7, %v6474_v56, -inf  ;;  %v2813_v58 = vmul.f32 1.442695, %v2795_v60 }
 0x991   :  { %2782 = vmax.xlane.f32.xlu1 %v2781_v43  ;;  %2791 = vmax.xlane.f32.xlu0 %v2790_v54  ;;  %v2747_v4 = vpop.xlane.xlu0 %2746 }
 0x992   :  { %v2793_v13 = vsub.f32 %v6392_v12, %v2747_v4 }
 0x993   :  { %v2750_v47 = vpop.xlane.xlu1 %2749 }
 0x994   :  { %v2794_v3 = vsub.f32 %v6398_v23, %v2750_v47  ;;  %v2809_v53 = vmul.f32 1.442695, %v2793_v13 }
 0x995   :  { %v2756_v36 = vpop.xlane.xlu0 %2755 }
 0x996   :  { %v2796_v45 = vsub.f32 %v6402_v62, %v2756_v36  ;;  %v2811_v11 = vmul.f32 1.442695, %v2794_v3 }
 0x998   :  { %v2815_v46 = vmul.f32 1.442695, %v2796_v45 }
 0x99a   :  { %5282 = vpow2.f32 %v2815_v46 }
 0x99b   :  { %5284 = vpow2.f32 %v2811_v11 }
 0x99c   :  { %5286 = vpow2.f32 %v2813_v58 }
 0x99d   :  { %5288 = vpow2.f32 %v2809_v53 }
 0x9a2   :  { %2307 = vrot.lane.b32.xlu1 %v6355_v48, %s5683_s12 }
 0x9a6   :  { %2313 = vrot.lane.b32.xlu1 %v6355_v48, %s5666_s25 }
 0x9a7   :  { %2309 = vrot.lane.b32.xlu0 %v6359_v52, %s5683_s12  ;;  %v6492_v17 = vpop.eup %5282 }
 0x9a8   :  { %v2850_v62 = vsel %vm1156_vm7, %v6492_v17, 0.0  ;;  %v6496_v18 = vpop.eup %5284 }
 0x9a9   :  { %v2844_v6 = vsel %vm1156_vm7, %v6496_v18, 0.0  ;;  %v6500_v23 = vpop.eup %5286 }
 0x9aa   :  { %2315 = vrot.lane.b32.xlu1 %v6359_v52, %s5666_s25  ;;  %v2847_v12 = vsel %vm1156_vm7, %v6500_v23, 0.0  ;;  %v6504_v16 = vpop.eup %5288 }
 0x9ab   :  { %v2841_v26 = vsel %vm1156_vm7, %v6504_v16, 0.0 }
 0x9c6   :  { %2851 = vadd.xlane.f32.xlu0 %v2850_v62 }
 0x9ca   :  { %2845 = vadd.xlane.f32.xlu0 %v2844_v6 }
 0x9ce   :  { %2848 = vadd.xlane.f32.xlu1 %v2847_v12 }
 0x9d2   :  { %2842 = vadd.xlane.f32.xlu1 %v2841_v26 }
 0xa00   :  { %v2765_v31 = vpop.xlane.xlu1 %2764 }
 0xa01   :  { %v2799_v41 = vsub.f32 %v6410_v28, %v2765_v31 }
 0xa03   :  { %v2821_v44 = vmul.f32 1.442695, %v2799_v41 }
 0xa04   :  { %v2759_v1 = vpop.xlane.xlu1 %2758 }
 0xa05   :  { %5290 = vpow2.f32 %v2821_v44  ;;  %v2797_v42 = vsub.f32 %v6416_v51, %v2759_v1 }
 0xa06   :  { %v2762_v10 = vpop.xlane.xlu0 %2761 }
 0xa07   :  { %v2817_v55 = vmul.f32 1.442695, %v2797_v42  ;;  %v2798_v14 = vsub.f32 %v6422_v27, %v2762_v10 }
 0xa09   :  { %5292 = vpow2.f32 %v2817_v55  ;;  %v2819_v40 = vmul.f32 1.442695, %v2798_v14 }
 0xa0a   :  { %v2768_v49 = vpop.xlane.xlu0 %2767 }
 0xa0b   :  { %v2800_v34 = vsub.f32 %v6428_v61, %v2768_v49 }
 0xa0d   :  { %v2823_v19 = vmul.f32 1.442695, %v2800_v34 }
 0xa0e   :  { %v2777_v0 = vpop.xlane.xlu1 %2776  ;;  %v2774_v24 = vpop.xlane.xlu0 %2773 }
 0xa0f   :  { %5294 = vpow2.f32 %v2823_v19  ;;  %v2803_v28 = vsub.f32 %v6434_v15, %v2777_v0  ;;  %v2802_v51 = vsub.f32 %v6438_v57, %v2774_v24 }
 0xa10   :  { %5296 = vpow2.f32 %v2819_v40 }
 0xa11   :  { %v2829_v29 = vmul.f32 1.442695, %v2803_v28  ;;  %v2827_v54 = vmul.f32 1.442695, %v2802_v51 }
 0xa12   :  { %v6513_v7 = vpop.eup %5290  ;;  %v2771_v33 = vpop.xlane.xlu1 %2770 }
 0xa13   :  { %v2780_v35 = vpop.xlane.xlu0 %2779  ;;  %5298 = vpow2.f32 %v2829_v29  ;;  %v2801_v27 = vsub.f32 %v6446_v5, %v2771_v33  ;;  %v2859_v38 = vsel %vm1156_vm7, %v6513_v7, 0.0 }
 0xa14   :  { %v2804_v61 = vsub.f32 %v6450_v50, %v2780_v35  ;;  %2860 = vadd.xlane.f32.xlu1 %v2859_v38 }
 0xa15   :  { %v2825_v21 = vmul.f32 1.442695, %v2801_v27 }
 0xa16   :  { %v2831_v43 = vmul.f32 1.442695, %v2804_v61  ;;  %v6520_v15 = vpop.eup %5292  ;;  %v2789_v20 = vpop.xlane.xlu1 %2788 }
 0xa17   :  { %v2786_v4 = vpop.xlane.xlu0 %2785  ;;  %5300 = vpow2.f32 %v2825_v21  ;;  %v2807_v57 = vsub.f32 %v6458_v30, %v2789_v20  ;;  %v2853_v36 = vsel %vm1156_vm7, %v6520_v15, 0.0 }
 0xa18   :  { %5302 = vpow2.f32 %v2831_v43  ;;  %2854 = vadd.xlane.f32.xlu1 %v2853_v36  ;;  %v2806_v50 = vsub.f32 %v6462_v32, %v2786_v4 }
 0xa19   :  { %v2837_v5 = vmul.f32 1.442695, %v2807_v57  ;;  %5304 = vpow2.f32 %v2827_v54 }
 0xa1a   :  { %v2783_v45 = vpop.xlane.xlu1 %2782  ;;  %v2835_v53 = vmul.f32 1.442695, %v2806_v50 }
 0xa1b   :  { %v2792_v47 = vpop.xlane.xlu0 %2791  ;;  %5306 = vpow2.f32 %v2837_v5  ;;  %v2805_v3 = vsub.f32 %v6470_v39, %v2783_v45 }
 0xa1c   :  { %v2808_v46 = vsub.f32 %v6474_v56, %v2792_v47  ;;  %v6528_v60 = vpop.eup %5294 }
 0xa1d   :  { %v2833_v11 = vmul.f32 1.442695, %v2805_v3  ;;  %v2862_v58 = vsel %vm1156_vm7, %v6528_v60, 0.0  ;;  %v6532_v13 = vpop.eup %5296 }
 0xa1e   :  { %v2839_v30 = vmul.f32 1.442695, %v2808_v46  ;;  %2863 = vadd.xlane.f32.xlu0 %v2862_v58  ;;  %v2856_v56 = vsel %vm1156_vm7, %v6532_v13, 0.0  ;;  %v2308_v40 = vpop.permute.xlu1 %2307 }
 0xa1f   :  { %5308 = vpow2.f32 %v2833_v11  ;;  %v2310_v19 = vpop.permute.xlu0 %2309 }
 0xa20   :  { %v6534_v32 = vpop.eup %5298  ;;  %5310 = vpow2.f32 %v2839_v30 }
 0xa21   :  { %v2871_v39 = vsel %vm1156_vm7, %v6534_v32, 0.0  ;;  %5312 = vpow2.f32 %v2835_v53 }
 0xa22   :  { %2872 = vadd.xlane.f32.xlu1 %v2871_v39  ;;  %2857 = vadd.xlane.f32.xlu0 %v2856_v56  ;;  %v6572_v0 = vpop.permute.xlu1 %2313 }
 0xa24   :  { %v6540_v62 = vpop.eup %5300 }
 0xa25   :  { %v6542_v6 = vpop.eup %5302  ;;  %v2865_v12 = vsel %vm1156_vm7, %v6540_v62, 0.0 }
 0xa26   :  { %2866 = vadd.xlane.f32.xlu1 %v2865_v12  ;;  %v2874_v26 = vsel %vm1156_vm7, %v6542_v6, 0.0  ;;  %v6548_v31 = vpop.eup %5304  ;;  %v2316_v28 = vpop.permute.xlu1 %2315 }
 0xa27   :  { %2875 = vadd.xlane.f32.xlu0 %v2874_v26  ;;  %v2868_v1 = vsel %vm1156_vm7, %v6548_v31, 0.0 }
 0xa28   :  { %v6550_v41 = vpop.eup %5306 }
 0xa29   :  { %v2883_v44 = vsel %vm1156_vm7, %v6550_v41, 0.0 }
 0xa2a   :  { %2884 = vadd.xlane.f32.xlu1 %v2883_v44 }
 0xa2b   :  { %2869 = vadd.xlane.f32.xlu0 %v2868_v1 }
 0xa2c   :  { %v6556_v42 = vpop.eup %5308 }
 0xa2d   :  { %v6558_v10 = vpop.eup %5310  ;;  %v2877_v55 = vsel %vm1156_vm7, %v6556_v42, 0.0 }
 0xa2e   :  { %2878 = vadd.xlane.f32.xlu1 %v2877_v55  ;;  %v2886_v14 = vsel %vm1156_vm7, %v6558_v10, 0.0  ;;  %v6564_v49 = vpop.eup %5312 }
 0xa2f   :  { %2887 = vadd.xlane.f32.xlu0 %v2886_v14  ;;  %v2880_v34 = vsel %vm1156_vm7, %v6564_v49, 0.0 }
 0xa33   :  { %2881 = vadd.xlane.f32.xlu0 %v2880_v34 }
 0xa3f   :  { %2321 = vrot.lane.b32.xlu1 %v6359_v52, %s5684_s22 }
 0xa49   :  { %2319 = vrot.lane.b32.xlu0 %v6355_v48, %s5684_s22 }
 0xa4f   :  { %v2852_v24 = vpop.xlane.xlu0 %2851 }
 0xa50   :  { %5314 = vrcp.f32 %v2852_v24 }
 0xa53   :  { %v2846_v29 = vpop.xlane.xlu0 %2845 }
 0xa57   :  { %v2849_v51 = vpop.xlane.xlu1 %2848 }
 0xa58   :  { %5316 = vrcp.f32 %v2849_v51 }
 0xa59   :  { %5318 = vrcp.f32 %v2846_v29 }
 0xa5b   :  { %v2843_v33 = vpop.xlane.xlu1 %2842 }
 0xa5c   :  { %5320 = vrcp.f32 %v2843_v33 }
 0xa5d   :  { %v5315_v35 = vpop.eup %5314 }
 0xa5e   :  { %v2908_v61 = vmul.f32 %v5315_v35, %v6492_v17 }
 0xa65   :  { %v5317_v27 = vpop.eup %5316 }
 0xa66   :  { %v2907_v52 = vmul.f32 %v5317_v27, %v6500_v23  ;;  %v5319_v38 = vpop.eup %5318 }
 0xa67   :  { %v2906_v54 = vmul.f32 %v5319_v38, %v6496_v18 }
 0xa68   :  { %v2922_v48 = vpack.c.bf16 %v2908_v61, %v2907_v52  ;;  %v5124_v52 = vld [vmem:[#allocation19 + $0x28] sm:$0xff]  }
 0xa69   :  { %v5321_v21 = vpop.eup %5320 }
 0xa6a   :  { %4981 = vmatmul.mubr.msk.bf16.vlgmr.msra.gmra.mxu1 %vm1156_vm7, %v2922_v48  ;;  %v2905_v43 = vmul.f32 %v5321_v21, %v6504_v16 }
 0xa6b   :  { %4991 = vmatpush3.bf16.msra.mxu1 %v2310_v19  ;;  %4992 = vmatprep.mubr.msk.bf16.mxu1 %vm5682_vm0, %v5681_v22 }
 0xa6c   :  { %v2921_v20 = vpack.c.bf16 %v2906_v54, %v2905_v43  ;;  %5002 = vmatprep.subr.bf16.mxu1 %v5681_v22 }
 0xa6e   :  { %4975 = vmatmul.mubr.msk.bf16.vlgmr.msra.gmra.mxu0 %vm1156_vm7, %v2921_v20 }
 0xa6f   :  { %4985 = vmatpush3.bf16.msra.mxu0 %v2308_v40  ;;  %4986 = vmatprep.mubr.msk.bf16.mxu0 %vm5682_vm0, %v5681_v22 }
 0xa70   :  { %4996 = vmatprep.subr.bf16.mxu0 %v5681_v22 }
 0xa9d   :  { %v2861_v17 = vpop.xlane.xlu1 %2860 }
 0xa9e   :  { %5322 = vrcp.f32 %v2861_v17  ;;  %v5125_v17 = vld [vmem:[#allocation19 + $0x20] sm:$0xff]  }
 0xaa1   :  { %v2855_v23 = vpop.xlane.xlu1 %2854 }
 0xaa7   :  { %v2864_v16 = vpop.xlane.xlu0 %2863 }
 0xaa8   :  { %5324 = vrcp.f32 %v2864_v16 }
 0xaa9   :  { %5326 = vrcp.f32 %v2855_v23  ;;  %v5126_v23 = vld [vmem:[#allocation19 + $0x18] sm:$0xff]  }
 0xaab   :  { %v2873_v18 = vpop.xlane.xlu1 %2872  ;;  %v2858_v4 = vpop.xlane.xlu0 %2857 }
 0xaac   :  { %5328 = vrcp.f32 %v2858_v4  ;;  %v5323_v5 = vpop.eup %5322  ;;  %v5127_v4 = vld [vmem:[#allocation19 + $0x10] sm:$0xff]  }
 0xaad   :  { %5330 = vrcp.f32 %v2873_v18  ;;  %v2911_v3 = vmul.f32 %v5323_v5, %v6513_v7 }
 0xaaf   :  { %v2867_v57 = vpop.xlane.xlu1 %2866 }
 0xab0   :  { %v2876_v36 = vpop.xlane.xlu0 %2875 }
 0xab1   :  { %5332 = vrcp.f32 %v2876_v36 }
 0xab2   :  { %5334 = vrcp.f32 %v2867_v57 }
 0xab3   :  { %v2885_v50 = vpop.xlane.xlu1 %2884 }
 0xab4   :  { %v2870_v45 = vpop.xlane.xlu0 %2869 }
 0xab5   :  { %v5325_v47 = vpop.eup %5324  ;;  %5336 = vrcp.f32 %v2870_v45 }
 0xab6   :  { %v2912_v46 = vmul.f32 %v5325_v47, %v6528_v60  ;;  %5338 = vrcp.f32 %v2885_v50  ;;  %v5327_v11 = vpop.eup %5326  ;;  %v5128_v47 = vld [vmem:[#allocation19 + $0x8] sm:$0xff]  }
 0xab7   :  { %v2879_v30 = vpop.xlane.xlu1 %2878  ;;  %v2909_v56 = vmul.f32 %v5327_v11, %v6520_v15 }
 0xab8   :  { %v2888_v58 = vpop.xlane.xlu0 %2887  ;;  %v2924_v53 = vpack.c.bf16 %v2912_v46, %v2911_v3 }
 0xab9   :  { %5340 = vrcp.f32 %v2888_v58  ;;  %v5329_v39 = vpop.eup %5328 }
 0xaba   :  { %4993 = vmatmul.mubr.msk.bf16.vlgmr.msra.gmra.mxu1 %vm1156_vm7, %v2924_v53  ;;  %5342 = vrcp.f32 %v2879_v30  ;;  %v2910_v12 = vmul.f32 %v5329_v39, %v6532_v13  ;;  %v5331_v7 = vpop.eup %5330  ;;  %v5129_v53 = vld [vmem:[#allocation19] sm:$0xff]  }
 0xabb   :  { %5003 = vmatpush3.bf16.msra.mxu1 %v2316_v28  ;;  %5004 = vmatprep.mubr.msk.bf16.mxu1 %vm5682_vm0, %v5681_v22  ;;  %v2915_v1 = vmul.f32 %v5331_v7, %v6534_v32  ;;  %v2322_v34 = vpop.permute.xlu1 %2321 }
 0xabc   :  { %v2882_v60 = vpop.xlane.xlu0 %2881  ;;  %5014 = vmatprep.subr.bf16.mxu1 %v5681_v22  ;;  %v2923_v26 = vpack.c.bf16 %v2910_v12, %v2909_v56 }
 0xabd   :  { %5344 = vrcp.f32 %v2882_v60 }
 0xabe   :  { %v5333_v44 = vpop.eup %5332  ;;  %4987 = vmatmul.mubr.msk.bf16.vlgmr.msra.gmra.mxu0 %vm1156_vm7, %v2923_v26 }
 0xabf   :  { %v2916_v55 = vmul.f32 %v5333_v44, %v6542_v6  ;;  %v5335_v14 = vpop.eup %5334  ;;  %4997 = vmatpush3.bf16.msra.mxu0 %v6572_v0  ;;  %4998 = vmatprep.mubr.msk.bf16.mxu0 %vm5682_vm0, %v5681_v22 }
 0xac0   :  { %5008 = vmatprep.subr.bf16.mxu0 %v5681_v22  ;;  %v2913_v40 = vmul.f32 %v5335_v14, %v6540_v62  ;;  %v2320_v24 = vpop.permute.xlu0 %2319 }
 0xac1   :  { %v2926_v15 = vpack.c.bf16 %v2916_v55, %v2915_v1 }
 0xac2   :  { %v5337_v13 = vpop.eup %5336 }
 0xac3   :  { %5005 = vmatmul.mubr.msk.bf16.vlgmr.msra.gmra.mxu1 %vm1156_vm7, %v2926_v15  ;;  %v2914_v19 = vmul.f32 %v5337_v13, %v6548_v31  ;;  %v5339_v32 = vpop.eup %5338 }
 0xac4   :  { %5015 = vmatpush3.bf16.msra.mxu1 %v2322_v34  ;;  %5016 = vmatprep.mubr.msk.bf16.mxu1 %vm5682_vm0, %v5681_v22  ;;  %v2919_v28 = vmul.f32 %v5339_v32, %v6550_v41  ;;  %v5122_v41 = vld [vmem:[#allocation19 + $0x38] sm:$0xff]  }
 0xac5   :  { %v2925_v6 = vpack.c.bf16 %v2914_v19, %v2913_v40 }
 0xac6   :  { %v5341_v0 = vpop.eup %5340 }
 0xac7   :  { %4999 = vmatmul.mubr.msk.bf16.vlgmr.msra.gmra.mxu0 %vm1156_vm7, %v2925_v6  ;;  %v2920_v29 = vmul.f32 %v5341_v0, %v6558_v10  ;;  %v5343_v51 = vpop.eup %5342  ;;  %v5123_v10 = vld [vmem:[#allocation19 + $0x30] sm:$0xff]  }
 0xac8   :  { %5009 = vmatpush3.bf16.msra.mxu0 %v2320_v24  ;;  %5010 = vmatprep.mubr.msk.bf16.mxu0 %vm5682_vm0, %v5681_v22  ;;  %v2917_v33 = vmul.f32 %v5343_v51, %v6556_v42 }
 0xac9   :  { %v2928_v62 = vpack.c.bf16 %v2920_v29, %v2919_v28  ;;  %5020 = vmatprep.subr.bf16.mxu0 %v5122_v41 }
 0xaca   :  { %v5345_v31 = vpop.eup %5344 }
 0xacb   :  { %5017 = vmatmul.mubr.msk.bf16.vlgmr.msra.gmra.mxu1 %vm1156_vm7, %v2928_v62  ;;  %v2918_v35 = vmul.f32 %v5345_v31, %v6564_v49 }
 0xacc   :  { %3761 = vmatprep.mubr.bf16.mxu1 %v5686_v9 }
 0xacd   :  { %v2927_v27 = vpack.c.bf16 %v2918_v35, %v2917_v33 }
 0xacf   :  { %5011 = vmatmul.mubr.msk.bf16.vlgmr.msra.gmra.mxu0 %vm1156_vm7, %v2927_v27 }
 0xad0   :  { %5021 = vmatpush3.bf16.msra.mxu0 %v5122_v41 }
 0xad1   :  { %5022 = vmatprep.subr.bf16.mxu0 %v5123_v10 }
 0xad4   :  { %5023 = vmatpush3.bf16.msra.mxu0 %v5123_v10 }
 0xad5   :  { %5024 = vmatprep.subr.bf16.mxu0 %v5124_v52 }
 0xad8   :  { %5025 = vmatpush3.bf16.msra.mxu0 %v5124_v52 }
 0xad9   :  { %5026 = vmatprep.subr.bf16.mxu0 %v5125_v17 }
 0xadc   :  { %5027 = vmatpush3.bf16.msra.mxu0 %v5125_v17 }
 0xadd   :  { %5028 = vmatprep.subr.bf16.mxu0 %v5126_v23 }
 0xae0   :  { %5029 = vmatpush3.bf16.msra.mxu0 %v5126_v23 }
 0xae1   :  { %5030 = vmatprep.subr.bf16.mxu0 %v5127_v4 }
 0xae4   :  { %5031 = vmatpush3.bf16.msra.mxu0 %v5127_v4  ;;  %v5132_v4 = vld [vmem:[#allocation20 + $0xe4] ss:$16 sps:$4 sm:$0xff]  }
 0xae5   :  { %5032 = vmatprep.subr.bf16.mxu0 %v5128_v47  ;;  %3729 = vmatprep.subr.bf16.mxu1 %v5132_v4 }
 0xae8   :  { %5033 = vmatpush3.bf16.msra.mxu0 %v5128_v47 }
 0xae9   :  { %5034 = vmatprep.subr.bf16.mxu0 %v5129_v53 }
 0xaec   :  { %5035 = vmatpush3.bf16.msra.mxu0 %v5129_v53 }
 0xb2a   :  { %v6616_v22 = vpop.f32.mrf.mxu1 }
 0xb2c   :  { %v4982_v61 = vpop.f32.mrf.mxu1 }
 0xb2e   :  { %v6618_v42 = vpop.f32.mrf.mxu0  ;;  %v6620_v49 = vpop.f32.mrf.mxu1 }
 0xb2f   :  { %v3282_v38 = vpack.c.bf16 %v6620_v49, %v6616_v22  ;;  %v4410_v22 = vld [vmem:[%s6727_s13] ss:$0 sm:$0xff] }
 0xb30   :  { %v4976_v48 = vpop.f32.mrf.mxu0  ;;  %v4983_v21 = vpop.f32.mrf.mxu1 }
 0xb32   :  { %v2969_v43 = vpop.f32.mrf.mxu0 }
 0xb33   :  { %v3281_v54 = vpack.c.bf16 %v2969_v43, %v6618_v42 }
 0xb34   :  { %v4977_v20 = vpop.f32.mrf.mxu0 }
 0xb7a   :  { %v3098_v16 = vpop.f32.mrf.mxu1 }
 0xb7c   :  { %v4994_v18 = vpop.f32.mrf.mxu1 }
 0xb7d   :  { %v5130_v18 = vld [vmem:[#allocation20 + $0xe0] ss:$16 sps:$4 sm:$0xff]  }
 0xb7e   :  { %v3101_v57 = vpop.f32.mrf.mxu1  ;;  %v3054_v36 = vpop.f32.mrf.mxu0  ;;  %3730 = vmatpush1.bf16.msra.mxu1 %v5130_v18 }
 0xb7f   :  { %v3284_v5 = vpack.c.bf16 %v3101_v57, %v3098_v16  ;;  %v5133_v57 = vld [vmem:[#allocation20 + $0xe8] ss:$16 sps:$4 sm:$0xff]  }
 0xb80   :  { %v4995_v50 = vpop.f32.mrf.mxu1  ;;  %v4988_v45 = vpop.f32.mrf.mxu0 }
 0xb81   :  { %3293 = vrot.lane.b32.xlu1 %v3284_v5, %s5684_s22 }
 0xb82   :  { %v3057_v3 = vpop.f32.mrf.mxu0 }
 0xb83   :  { %v3186_v46 = vpop.f32.mrf.mxu1  ;;  %v3283_v11 = vpack.c.bf16 %v3057_v3, %v3054_v36  ;;  %v5135_v36 = vld [vmem:[#allocation20 + $0xec] ss:$16 sps:$4 sm:$0xff]  }
 0xb84   :  { %v4989_v30 = vpop.f32.mrf.mxu0  ;;  %3782 = vmatprep.subr.bf16.mxu0 %v5135_v36  ;;  %v4419_v36 = vld [vmem:[%s6730_s16] ss:$0 sm:$0xff] }
 0xb85   :  { %v5006_v58 = vpop.f32.mrf.mxu1  ;;  %3291 = vrot.lane.b32.xlu0 %v3283_v11, %s5684_s22 }
 0xb87   :  { %v3142_v39 = vpop.f32.mrf.mxu0  ;;  %v3189_v56 = vpop.f32.mrf.mxu1 }
 0xb88   :  { %v3286_v12 = vpack.c.bf16 %v3189_v56, %v3186_v46 }
 0xb89   :  { %v5000_v7 = vpop.f32.mrf.mxu0  ;;  %v5007_v60 = vpop.f32.mrf.mxu1 }
 0xb8a   :  { %3299 = vrot.lane.b32.xlu1 %v3286_v12, %s5666_s25  ;;  %v5138_v12 = vld [vmem:[#allocation20 + $0xc4] ss:$16 sps:$4 sm:$0xff]   ;;  %v5141_v7 = vld [vmem:[#allocation20 + $0xcc] ss:$16 sps:$4 sm:$0xff]   ;;  %v5136_v60 = vld [vmem:[#allocation20 + $0xc0] ss:$16 sps:$4 sm:$0xff]  }
 0xb8b   :  { %v3145_v26 = vpop.f32.mrf.mxu0  ;;  %v3274_v44 = vpop.f32.mrf.mxu1  ;;  %3731 = vmatprep.subr.bf16.mxu1 %v5138_v12  ;;  %v5181_v12 = vld [vmem:[#allocation22 + $0xb8] sm:$0xff]  }
 0xb8c   :  { %v3285_v1 = vpack.c.bf16 %v3145_v26, %v3142_v39  ;;  %v5139_v26 = vld [vmem:[#allocation20 + $0xc8] ss:$16 sps:$4 sm:$0xff]   ;;  %3732 = vmatpush1.bf16.msra.mxu1 %v5136_v60  ;;  %v5183_v60 = vld [vmem:[#allocation22 + $0xf0] sm:$0xff]  }
 0xb8d   :  { %v5001_v55 = vpop.f32.mrf.mxu0  ;;  %v5018_v14 = vpop.f32.mrf.mxu1 }
 0xb8e   :  { %3297 = vrot.lane.b32.xlu0 %v3285_v1, %s5666_s25  ;;  %v5147_v1 = vld [vmem:[#allocation20 + $0xac] ss:$16 sps:$4 sm:$0xff]   ;;  %v5142_v55 = vld [vmem:[#allocation20 + $0xa0] ss:$16 sps:$4 sm:$0xff]   ;;  %v5145_v14 = vld [vmem:[#allocation20 + $0xa8] ss:$16 sps:$4 sm:$0xff]  }
 0xb8f   :  { %v3230_v15 = vpop.f32.mrf.mxu0  ;;  %v3277_v13 = vpop.f32.mrf.mxu1 }
 0xb90   :  { %v3288_v34 = vpack.c.bf16 %v3277_v13, %v3274_v44  ;;  %v5144_v44 = vld [vmem:[#allocation20 + $0xa4] ss:$16 sps:$4 sm:$0xff]   ;;  %v5153_v13 = vld [vmem:[#allocation20 + $0x8c] ss:$16 sps:$4 sm:$0xff]  }
 0xb91   :  { %v5012_v40 = vpop.f32.mrf.mxu0  ;;  %v5019_v19 = vpop.f32.mrf.mxu1  ;;  %3733 = vmatprep.subr.bf16.mxu1 %v5144_v44  ;;  %v5185_v44 = vld [vmem:[#allocation22 + $0xb0] sm:$0xff]  }
 0xb92   :  { %3305 = vrot.lane.b32.xlu1 %v3288_v34, %s5683_s12  ;;  %3734 = vmatpush1.bf16.msra.mxu1 %v5142_v55  ;;  %v5148_v34 = vld [vmem:[#allocation20 + $0x80] ss:$16 sps:$4 sm:$0xff]   ;;  %v5151_v40 = vld [vmem:[#allocation20 + $0x88] ss:$16 sps:$4 sm:$0xff]  }
 0xb93   :  { %v3233_v32 = vpop.f32.mrf.mxu0  ;;  %v5154_v19 = vld [vmem:[#allocation20 + $0x60] ss:$16 sps:$4 sm:$0xff]   ;;  %v5187_v55 = vld [vmem:[#allocation22 + $0xe8] sm:$0xff]  }
 0xb94   :  { %v3287_v6 = vpack.c.bf16 %v3233_v32, %v3230_v15  ;;  %v5150_v15 = vld [vmem:[#allocation20 + $0x84] ss:$16 sps:$4 sm:$0xff]  }
 0xb95   :  { %v5013_v0 = vpop.f32.mrf.mxu0  ;;  %3735 = vmatprep.subr.bf16.mxu1 %v5150_v15  ;;  %v5156_v32 = vld [vmem:[#allocation20 + $0x64] ss:$16 sps:$4 sm:$0xff]  }
 0xb96   :  { %3303 = vrot.lane.b32.xlu0 %v3287_v6, %s5683_s12  ;;  %3736 = vmatpush1.bf16.msra.mxu1 %v5148_v34  ;;  %v5157_v6 = vld [vmem:[#allocation20 + $0x68] ss:$16 sps:$4 sm:$0xff]   ;;  %v5159_v0 = vld [vmem:[#allocation20 + $0x6c] ss:$16 sps:$4 sm:$0xff]  }
 0xb97   :  { %3737 = vmatprep.subr.bf16.mxu1 %v5156_v32  ;;  %v5189_v34 = vld [vmem:[#allocation22 + $0xa8] sm:$0xff]   ;;  %v5193_v32 = vld [vmem:[#allocation22 + $0xa0] sm:$0xff]  }
 0xb9a   :  { %3738 = vmatpush1.bf16.msra.mxu1 %v5154_v19  ;;  %v5192_v19 = vld [vmem:[#allocation22 + $0x20] sm:$0xff]  }
 0xbf3   :  { %v3294_v24 = vpop.permute.xlu1 %3293 }
 0xbf4   :  { %v3312_v33 = vsel %vm739_vm1, %v3282_v38, %v3294_v24  ;;  %v5162_v24 = vld [vmem:[#allocation20 + $0x44] ss:$16 sps:$4 sm:$0xff]  }
 0xbf5   :  { %3739 = vmatprep.subr.bf16.mxu1 %v5162_v24  ;;  %v5196_v24 = vld [vmem:[#allocation22 + $0x18] sm:$0xff]  }
 0xbf7   :  { %v3292_v28 = vpop.permute.xlu0 %3291 }
 0xbf8   :  { %v3309_v62 = vsel %vm739_vm1, %v3281_v54, %v3292_v28  ;;  %v5165_v28 = vld [vmem:[#allocation20 + $0x4c] ss:$16 sps:$4 sm:$0xff]  }
 0xbfc   :  { %v3300_v29 = vpop.permute.xlu1 %3299 }
 0xbfd   :  { %v3316_v41 = vsel %vm1725_vm13, %v3312_v33, %v3300_v29  ;;  %v5160_v29 = vld [vmem:[#allocation20 + $0x40] ss:$16 sps:$4 sm:$0xff]  }
 0xbfe   :  { %3740 = vmatpush1.bf16.msra.mxu1 %v5160_v29  ;;  %v5166_v33 = vld [vmem:[#allocation20 + $0x20] ss:$16 sps:$4 sm:$0xff]  }
 0xbff   :  { %v5198_v29 = vld [vmem:[#allocation22 + $0x50] sm:$0xff]  }
 0xc00   :  { %v3298_v51 = vpop.permute.xlu0 %3297 }
 0xc01   :  { %v3314_v35 = vsel %vm1725_vm13, %v3309_v62, %v3298_v51  ;;  %v5163_v51 = vld [vmem:[#allocation20 + $0x48] ss:$16 sps:$4 sm:$0xff]   ;;  %v5168_v62 = vld [vmem:[#allocation20 + $0x24] ss:$16 sps:$4 sm:$0xff]  }
 0xc02   :  { %3741 = vmatprep.subr.bf16.mxu1 %v5168_v62  ;;  %v5200_v62 = vld [vmem:[#allocation22 + $0x10] sm:$0xff]  }
 0xc03   :  { %3742 = vmatpush1.bf16.msra.mxu1 %v5166_v33  ;;  %v5202_v33 = vld [vmem:[#allocation22 + $0x48] sm:$0xff]  }
 0xc04   :  { %v3306_v31 = vpop.permute.xlu1 %3305 }
 0xc05   :  { %v3321_v52 = vsel %vm1730_vm14, %v3316_v41, %v3306_v31  ;;  %v5171_v31 = vld [vmem:[#allocation20 + $0x2c] ss:$16 sps:$4 sm:$0xff]  }
 0xc06   :  { %v5177_v41 = vld [vmem:[#allocation20 + $0xc] ss:$16 sps:$4 sm:$0xff]  }
 0xc08   :  { %v3304_v27 = vpop.permute.xlu0 %3303 }
 0xc09   :  { %v3318_v10 = vsel %vm1730_vm14, %v3314_v35, %v3304_v27  ;;  %v5169_v35 = vld [vmem:[#allocation20 + $0x28] ss:$16 sps:$4 sm:$0xff]   ;;  %v5174_v27 = vld [vmem:[#allocation20 + $0x4] ss:$16 sps:$4 sm:$0xff]  }
 0xc0a   :  { %5036 = vmatprep.mubr.bf16.mxu0 %v3318_v10  ;;  %v5172_v10 = vld [vmem:[#allocation20] ss:$16 sps:$4 sm:$0xff]   ;;  %3743 = vmatprep.subr.bf16.mxu1 %v5174_v27  ;;  %v5204_v27 = vld [vmem:[#allocation22 + $0x8] sm:$0xff]  }
 0xc0b   :  { %5037 = vmatmul.mubr.bf16.vlgmr.msra.gmra.mxu0 %v3321_v52  ;;  %v5175_v52 = vld [vmem:[#allocation20 + $0x8] ss:$16 sps:$4 sm:$0xff]   ;;  %3744 = vmatpush1.bf16.msra.mxu1 %v5172_v10  ;;  %v5206_v10 = vld [vmem:[#allocation22 + $0x40] sm:$0xff]  }
 0xc0c   :  { %3814 = vmatprep.mubr.bf16.mxu0 %v5686_v9  ;;  %3783 = vmatpush1.bf16.msra.mxu0 %v5133_v57 }
 0xc0d   :  { %3784 = vmatprep.subr.bf16.mxu0 %v5141_v7  ;;  %v5182_v7 = vld [vmem:[#allocation22 + $0x70] sm:$0xff]  }
 0xc10   :  { %3785 = vmatpush1.bf16.msra.mxu0 %v5139_v26 }
 0xc11   :  { %3786 = vmatprep.subr.bf16.mxu0 %v5147_v1  ;;  %v5186_v1 = vld [vmem:[#allocation22 + $0x68] sm:$0xff]  }
 0xc14   :  { %3787 = vmatpush1.bf16.msra.mxu0 %v5145_v14 }
 0xc15   :  { %3788 = vmatprep.subr.bf16.mxu0 %v5153_v13  ;;  %v5188_v13 = vld [vmem:[#allocation22 + $0x28] sm:$0xff]  }
 0xc18   :  { %3789 = vmatpush1.bf16.msra.mxu0 %v5151_v40  ;;  %v5191_v40 = vld [vmem:[#allocation22 + $0xe0] sm:$0xff]  }
 0xc19   :  { %3790 = vmatprep.subr.bf16.mxu0 %v5159_v0  ;;  %v5195_v0 = vld [vmem:[#allocation22 + $0xd8] sm:$0xff]  }
 0xc1c   :  { %3791 = vmatpush1.bf16.msra.mxu0 %v5157_v6  ;;  %v5194_v6 = vld [vmem:[#allocation22 + $0x58] sm:$0xff]  }
 0xc1d   :  { %3792 = vmatprep.subr.bf16.mxu0 %v5165_v28  ;;  %v5197_v28 = vld [vmem:[#allocation22 + $0x98] sm:$0xff]  }
 0xc20   :  { %3793 = vmatpush1.bf16.msra.mxu0 %v5163_v51  ;;  %v5199_v51 = vld [vmem:[#allocation22 + $0xd0] sm:$0xff]  }
 0xc21   :  { %3794 = vmatprep.subr.bf16.mxu0 %v5171_v31  ;;  %v5201_v31 = vld [vmem:[#allocation22 + $0x90] sm:$0xff]  }
 0xc24   :  { %3795 = vmatpush1.bf16.msra.mxu0 %v5169_v35  ;;  %v5203_v35 = vld [vmem:[#allocation22 + $0xc8] sm:$0xff]  }
 0xc25   :  { %3796 = vmatprep.subr.bf16.mxu0 %v5177_v41  ;;  %v5205_v41 = vld [vmem:[#allocation22 + $0x88] sm:$0xff]  }
 0xc28   :  { %3797 = vmatpush1.bf16.msra.mxu0 %v5175_v52  ;;  %v5207_v52 = vld [vmem:[#allocation22 + $0xc0] sm:$0xff]  }
 0xccb   :  { %v5038_v61 = vpop.f32.mrf.mxu0 }
 0xccc   :  { %v3437_v48 = vadd.f32 %v5038_v61, %v4410_v22  ;;  %v5178_v61 = vld [vmem:[#allocation22 + $0x78] sm:$0xff]  }
 0xccd   :  { %v3428_v42 = vpop.f32.mrf.mxu0  ;;  %4632 = vmatprep.subr.bf16.mxu1 %v5178_v61  ;;  %v5208_v61 = vld [vmem:[#allocation22] sm:$0xff]  }
 0xcce   :  { %v3429_v49 = vadd.f32 %v4410_v22, %v3428_v42  ;;  %v3445_v20 = vadd.f32 %v3437_v48, %v6299_v37 }
 0xccf   :  { %v5039_v38 = vpop.f32.mrf.mxu0 }
 0xcd0   :  { %v3443_v21 = vadd.f32 %v3429_v49, %v6293_v25  ;;  %v3440_v17 = vadd.f32 %v5039_v38, %v4410_v22 }
 0xcd1   :  { %v3431_v43 = vpop.f32.mrf.mxu0 }
 0xcd2   :  { %v3432_v54 = vadd.f32 %v4410_v22, %v3431_v43  ;;  %3447 = vadd.xlane.f32.xlu0 %v3443_v21  ;;  %v3446_v16 = vadd.f32 %v3440_v17, %v6301_v63  ;;  %v5179_v22 = vld [vmem:[#allocation22 + $0xf8] sm:$0xff]  }
 0xcd3   :  { %4660 = vmatprep.subr.bf16.mxu0 %v5179_v22  ;;  %v5209_v22 = vld [vmem:[#allocation22 + $0x80] sm:$0xff]  }
 0xcd4   :  { %v3444_v23 = vadd.f32 %v3432_v54, %v6295_v59 }
 0xcd6   :  { %3449 = vadd.xlane.f32.xlu1 %v3444_v23  ;;  %3451 = vadd.xlane.f32.xlu0 %v3445_v20 }
 0xcda   :  { %3453 = vadd.xlane.f32.xlu0 %v3446_v16 }
 0xd5b   :  { %v3448_v25 = vpop.xlane.xlu0 %3447 }
 0xd5c   :  { %v3455_v5 = vmul.f32 0.0078125, %v3448_v25 }
 0xd5e   :  { %v6648_v50 = vsub.f32 %v3443_v21, %v3455_v5 }
 0xd5f   :  { %v3450_v37 = vpop.xlane.xlu1 %3449  ;;  %v3452_v45 = vpop.xlane.xlu0 %3451 }
 0xd60   :  { %v3456_v59 = vmul.f32 0.0078125, %v3450_v37  ;;  %v3457_v47 = vmul.f32 0.0078125, %v3452_v45  ;;  %v3463_v63 = vmul.f32 %v6648_v50, %v6648_v50 }
 0xd62   :  { %v6652_v3 = vsub.f32 %v3444_v23, %v3456_v59  ;;  %v6654_v46 = vsub.f32 %v3445_v20, %v3457_v47  ;;  %3467 = vadd.xlane.f32.xlu1 %v3463_v63  ;;  %v4420_v59 = vld [vmem:[%s6731_s17] ss:$0 sm:$0xff] }
 0xd63   :  { %v3454_v11 = vpop.xlane.xlu0 %3453 }
 0xd64   :  { %v3458_v30 = vmul.f32 0.0078125, %v3454_v11  ;;  %v3464_v58 = vmul.f32 %v6652_v3, %v6652_v3  ;;  %v3465_v53 = vmul.f32 %v6654_v46, %v6654_v46 }
 0xd66   :  { %v6660_v39 = vsub.f32 %v3446_v16, %v3458_v30  ;;  %3469 = vadd.xlane.f32.xlu0 %v3464_v58  ;;  %3471 = vadd.xlane.f32.xlu1 %v3465_v53 }
 0xd68   :  { %v3466_v56 = vmul.f32 %v6660_v39, %v6660_v39 }
 0xd6a   :  { %3473 = vadd.xlane.f32.xlu0 %v3466_v56  ;;  %v5180_v56 = vld [vmem:[#allocation22 + $0x38] sm:$0xff]  }
 0xdeb   :  { %v3468_v42 = vpop.xlane.xlu1 %3467 }
 0xdec   :  { %v3475_v49 = vmul.f32 0.0078125, %v3468_v42  ;;  %v3555_v42 = vsub.s32 1, %v5948_v2 }
 0xdee   :  { %v3479_v38 = vadd.f32 1e-05, %v3475_v49  ;;  %v3563_v49 = vsub.s32 3, %v5948_v2 }
 0xdef   :  { %v3472_v48 = vpop.xlane.xlu1 %3471  ;;  %v3470_v21 = vpop.xlane.xlu0 %3469 }
 0xdf0   :  { %5346 = vrsqrt.f32 %v3479_v38  ;;  %v3477_v43 = vmul.f32 0.0078125, %v3472_v48  ;;  %v3476_v54 = vmul.f32 0.0078125, %v3470_v21  ;;  %v3559_v38 = vsub.s32 2, %v5948_v2  ;;  %v3547_v48 = vld [vmem:[%s6735_s21] sm:$0xf] }
 0xdf2   :  { %v3480_v20 = vadd.f32 1e-05, %v3476_v54  ;;  %v3481_v17 = vadd.f32 1e-05, %v3477_v43  ;;  %v3556_v54 = vrot.slane %v3547_v48, %v3555_v42 }
 0xdf3   :  { %v3474_v23 = vpop.xlane.xlu0 %3473 }
 0xdf4   :  { %v3478_v16 = vmul.f32 0.0078125, %v3474_v23  ;;  %5348 = vrsqrt.f32 %v3480_v20  ;;  %v3564_v20 = vrot.slane %v3547_v48, %v3563_v49  ;;  %v3560_v23 = vrot.slane %v3547_v48, %v3559_v38 }
 0xdf5   :  { %5350 = vrsqrt.f32 %v3481_v17  ;;  %v3552_v17 = vrot.slane %v3547_v48, %v5958_v8 }
 0xdf6   :  { %v3482_v18 = vadd.f32 1e-05, %v3478_v16 }
 0xdf8   :  { %5352 = vrsqrt.f32 %v3482_v18 }
 0xdfd   :  { %v5347_v4 = vpop.eup %5346 }
 0xdfe   :  { %v3487_v57 = vmul.f32 %v5347_v4, %v6648_v50 }
 0xe00   :  { %v3498_v37 = vmul.f32 %v4419_v36, %v3487_v57 }
 0xe01   :  { %v5349_v25 = vpop.eup %5348 }
 0xe02   :  { %v3488_v5 = vmul.f32 %v5349_v25, %v6652_v3  ;;  %v5351_v45 = vpop.eup %5350  ;;  %v6673_v30 = vadd.f32 %v4420_v59, %v3498_v37 }
 0xe03   :  { %v3489_v58 = vmul.f32 %v5351_v45, %v6654_v46  ;;  %v5184_v46 = vld [vmem:[#allocation22 + $0x30] sm:$0xff]  }
 0xe04   :  { %v3499_v63 = vmul.f32 %v4419_v36, %v3488_v5 }
 0xe05   :  { %v5353_v47 = vpop.eup %5352  ;;  %v3500_v26 = vmul.f32 %v4419_v36, %v3489_v58 }
 0xe06   :  { %v3490_v11 = vmul.f32 %v5353_v47, %v6660_v39  ;;  %v6675_v50 = vadd.f32 %v4420_v59, %v3499_v63 }
 0xe07   :  { %v6684_v14 = vadd.f32 %v4420_v59, %v3500_v26 }
 0xe08   :  { %v3513_v53 = vpack.c.bf16 %v6675_v50, %v6673_v30  ;;  %v3501_v3 = vmul.f32 %v4419_v36, %v3490_v11 }
 0xe0a   :  { %3762 = vmatmul.mubr.bf16.vlgmr.msra.gmra.mxu1 %v3513_v53  ;;  %3815 = vmatmul.mubr.bf16.vlgmr.msra.gmra.mxu0 %v3513_v53  ;;  %v6682_v39 = vadd.f32 %v4420_v59, %v3501_v3 }
 0xe0b   :  { %3771 = vmatprep.mubr.bf16.mxu1 %v5686_v9  ;;  %3824 = vmatprep.mubr.bf16.mxu0 %v5686_v9  ;;  %v5190_v9 = vld [vmem:[#allocation22 + $0x60] sm:$0xff]  }
 0xe0c   :  { %4633 = vmatpush3.bf16.msra.mxu1 %v5180_v56  ;;  %4661 = vmatpush3.bf16.msra.mxu0 %v5181_v12  ;;  %v3514_v15 = vpack.c.bf16 %v6682_v39, %v6684_v14 }
 0xe0d   :  { %4634 = vmatprep.subr.bf16.mxu1 %v5182_v7  ;;  %4662 = vmatprep.subr.bf16.mxu0 %v5183_v60 }
 0xe10   :  { %4635 = vmatpush3.bf16.msra.mxu1 %v5184_v46  ;;  %4663 = vmatpush3.bf16.msra.mxu0 %v5185_v44 }
 0xe11   :  { %4636 = vmatprep.subr.bf16.mxu1 %v5186_v1  ;;  %4664 = vmatprep.subr.bf16.mxu0 %v5187_v55 }
 0xe12   :  { %3772 = vmatmul.mubr.bf16.gmra.mxu1 %v3514_v15  ;;  %3825 = vmatmul.mubr.bf16.gmra.mxu0 %v3514_v15 }
 0xe14   :  { %4637 = vmatpush3.bf16.msra.mxu1 %v5188_v13  ;;  %4665 = vmatpush3.bf16.msra.mxu0 %v5189_v34 }
 0xe15   :  { %4638 = vmatprep.subr.bf16.mxu1 %v5190_v9  ;;  %4666 = vmatprep.subr.bf16.mxu0 %v5191_v40 }
 0xe18   :  { %4639 = vmatpush3.bf16.msra.mxu1 %v5192_v19  ;;  %4667 = vmatpush3.bf16.msra.mxu0 %v5193_v32 }
 0xe19   :  { %4640 = vmatprep.subr.bf16.mxu1 %v5194_v6  ;;  %4668 = vmatprep.subr.bf16.mxu0 %v5195_v0 }
 0xe1c   :  { %4641 = vmatpush3.bf16.msra.mxu1 %v5196_v24  ;;  %4669 = vmatpush3.bf16.msra.mxu0 %v5197_v28 }
 0xe1d   :  { %4642 = vmatprep.subr.bf16.mxu1 %v5198_v29  ;;  %4670 = vmatprep.subr.bf16.mxu0 %v5199_v51 }
 0xe20   :  { %4643 = vmatpush3.bf16.msra.mxu1 %v5200_v62  ;;  %4671 = vmatpush3.bf16.msra.mxu0 %v5201_v31 }
 0xe21   :  { %4644 = vmatprep.subr.bf16.mxu1 %v5202_v33  ;;  %4672 = vmatprep.subr.bf16.mxu0 %v5203_v35 }
 0xe24   :  { %4645 = vmatpush3.bf16.msra.mxu1 %v5204_v27  ;;  %4673 = vmatpush3.bf16.msra.mxu0 %v5205_v41 }
 0xe25   :  { %4646 = vmatprep.subr.bf16.mxu1 %v5206_v10  ;;  %4674 = vmatprep.subr.bf16.mxu0 %v5207_v52 }
 0xe28   :  { %4647 = vmatpush3.bf16.msra.mxu1 %v5208_v61  ;;  %4675 = vmatpush3.bf16.msra.mxu0 %v5209_v22 }
 0xeca   :  { %v3763_v21 = vpop.f32.mrf.mxu1  ;;  %v3816_v43 = vpop.f32.mrf.mxu0 }
 0xecb   :  { %v3764_v2 = vadd.f32 %v3763_v21, %v3552_v17  ;;  %v3817_v45 = vadd.f32 %v3816_v43, %v3560_v23 }
 0xecc   :  { %v3765_v16 = vpop.f32.mrf.mxu1  ;;  %v3818_v18 = vpop.f32.mrf.mxu0 }
 0xecd   :  { %v3766_v36 = vadd.f32 %v3765_v16, %v3556_v54  ;;  %v3819_v25 = vadd.f32 %v3818_v18, %v3564_v20  ;;  %v3835_v26 = vmax.f32 %v3764_v2, 0.0  ;;  %v3837_v46 = vmax.f32 %v3817_v45, 0.0 }
 0xece   :  { %v3767_v4 = vpop.f32.mrf.mxu1  ;;  %v3820_v57 = vpop.f32.mrf.mxu0 }
 0xecf   :  { %v3768_v5 = vadd.f32 %v3767_v4, %v3552_v17  ;;  %v3821_v37 = vadd.f32 %v3820_v57, %v3560_v23  ;;  %v3836_v8 = vmax.f32 %v3766_v36, 0.0  ;;  %v3838_v12 = vmax.f32 %v3819_v25, 0.0 }
 0xed0   :  { %v3769_v59 = vpop.f32.mrf.mxu1  ;;  %v3822_v47 = vpop.f32.mrf.mxu0 }
 0xed1   :  { %v3770_v63 = vadd.f32 %v3769_v59, %v3556_v54  ;;  %v3823_v11 = vadd.f32 %v3822_v47, %v3564_v20  ;;  %v3839_v58 = vmax.f32 %v3768_v5, 0.0  ;;  %v3841_v53 = vmax.f32 %v3821_v37, 0.0 }
 0xed2   :  { %v3773_v3 = vpop.f32.mrf.mxu1  ;;  %v3826_v56 = vpop.f32.mrf.mxu0 }
 0xed3   :  { %v3840_v7 = vmax.f32 %v3770_v63, 0.0  ;;  %v3842_v60 = vmax.f32 %v3823_v11, 0.0  ;;  %v3851_v13 = vpack.c.bf16 %v3839_v58, %v3835_v26  ;;  %v3853_v34 = vpack.c.bf16 %v3841_v53, %v3837_v46 }
 0xed4   :  { %v3775_v44 = vpop.f32.mrf.mxu1  ;;  %v3828_v1 = vpop.f32.mrf.mxu0  ;;  %v3774_v24 = vadd.f32 %v3773_v3, %v3552_v17  ;;  %v3827_v28 = vadd.f32 %v3826_v56, %v3560_v23 }
 0xed5   :  { %v3852_v55 = vpack.c.bf16 %v3840_v7, %v3836_v8  ;;  %v3854_v15 = vpack.c.bf16 %v3842_v60, %v3838_v12  ;;  %v3776_v9 = vadd.f32 %v3775_v44, %v3556_v54  ;;  %v3829_v32 = vadd.f32 %v3828_v1, %v3564_v20 }
 0xed6   :  { %v3777_v40 = vpop.f32.mrf.mxu1  ;;  %v3830_v19 = vpop.f32.mrf.mxu0  ;;  %v3843_v61 = vmax.f32 %v3774_v24, 0.0  ;;  %v3845_v22 = vmax.f32 %v3827_v28, 0.0 }
 0xed7   :  { %v3778_v6 = vadd.f32 %v3777_v40, %v3552_v17  ;;  %v3831_v0 = vadd.f32 %v3830_v19, %v3560_v23  ;;  %4154 = vmatprep.mubr.bf16.mxu1 %v3852_v55  ;;  %4203 = vmatprep.mubr.bf16.mxu0 %v3854_v15  ;;  %v3844_v27 = vmax.f32 %v3776_v9, 0.0  ;;  %v3846_v41 = vmax.f32 %v3829_v32, 0.0 }
 0xed8   :  { %v3779_v29 = vpop.f32.mrf.mxu1  ;;  %v3832_v51 = vpop.f32.mrf.mxu0  ;;  %4155 = vmatmul.mubr.bf16.vlgmr.msra.gmra.mxu1 %v3851_v13  ;;  %4204 = vmatmul.mubr.bf16.vlgmr.msra.gmra.mxu0 %v3853_v34 }
 0xed9   :  { %v3780_v62 = vadd.f32 %v3779_v29, %v3556_v54  ;;  %v3833_v31 = vadd.f32 %v3832_v51, %v3564_v20  ;;  %v3847_v33 = vmax.f32 %v3778_v6, 0.0  ;;  %v3849_v35 = vmax.f32 %v3831_v0, 0.0  ;;  %v4453_v54 = vld [vmem:[%s6737_s23] ss:$0 sm:$0xff] }
 0xedb   :  { %v3848_v10 = vmax.f32 %v3780_v62, 0.0  ;;  %v3850_v52 = vmax.f32 %v3833_v31, 0.0  ;;  %v3855_v38 = vpack.c.bf16 %v3847_v33, %v3843_v61  ;;  %v3857_v48 = vpack.c.bf16 %v3849_v35, %v3845_v22 }
 0xedd   :  { %v3856_v42 = vpack.c.bf16 %v3848_v10, %v3844_v27  ;;  %v3858_v49 = vpack.c.bf16 %v3850_v52, %v3846_v41 }
 0xedf   :  { %4162 = vmatprep.mubr.bf16.mxu1 %v3856_v42  ;;  %4211 = vmatprep.mubr.bf16.mxu0 %v3858_v49 }
 0xee0   :  { %4163 = vmatmul.mubr.bf16.gmra.mxu1 %v3855_v38  ;;  %4212 = vmatmul.mubr.bf16.gmra.mxu0 %v3857_v48 }
 0xf98   :  { %v4648_v21 = vpop.f32.mrf.mxu1  ;;  %v4676_v43 = vpop.f32.mrf.mxu0 }
 0xf9a   :  { %v4649_v20 = vpop.f32.mrf.mxu1  ;;  %v4677_v17 = vpop.f32.mrf.mxu0 }
 0xf9b   :  { %v4650_v23 = vadd.f32 %v4649_v20, %v4648_v21  ;;  %v4678_v57 = vadd.f32 %v4677_v17, %v4676_v43  ;;  %v4487_v17 = vld [vmem:[%s6733_s19] ss:$0 sm:$0xff] }
 0xf9c   :  { %v4651_v16 = vpop.f32.mrf.mxu1  ;;  %v4679_v18 = vpop.f32.mrf.mxu0 }
 0xf9d   :  { %v4157_v4 = vadd.f32 %v4650_v23, %v4453_v54 }
 0xf9e   :  { %v4652_v36 = vpop.f32.mrf.mxu1  ;;  %v4680_v25 = vpop.f32.mrf.mxu0 }
 0xf9f   :  { %v4206_v5 = vadd.f32 %v4678_v57, %v4157_v4  ;;  %v4653_v37 = vadd.f32 %v4652_v36, %v4651_v16  ;;  %v4681_v47 = vadd.f32 %v4680_v25, %v4679_v18 }
 0xfa0   :  { %v4654_v2 = vpop.f32.mrf.mxu1  ;;  %v4682_v45 = vpop.f32.mrf.mxu0 }
 0xfa1   :  { %v4160_v59 = vadd.f32 %v4653_v37, %v4453_v54  ;;  %v4220_v63 = vadd.f32 %v4206_v5, %v6673_v30 }
 0xfa2   :  { %v4655_v11 = vpop.f32.mrf.mxu1  ;;  %v4683_v58 = vpop.f32.mrf.mxu0 }
 0xfa3   :  { %v4209_v53 = vadd.f32 %v4681_v47, %v4160_v59  ;;  %v4656_v3 = vadd.f32 %v4655_v11, %v4654_v2  ;;  %4224 = vadd.xlane.f32.xlu1 %v4220_v63  ;;  %v4684_v7 = vadd.f32 %v4683_v58, %v4682_v45 }
 0xfa4   :  { %v4657_v56 = vpop.f32.mrf.mxu1  ;;  %v4685_v8 = vpop.f32.mrf.mxu0 }
 0xfa5   :  { %v4165_v12 = vadd.f32 %v4656_v3, %v4453_v54  ;;  %v4221_v60 = vadd.f32 %v4209_v53, %v6675_v50 }
 0xfa6   :  { %v4658_v26 = vpop.f32.mrf.mxu1  ;;  %v4686_v46 = vpop.f32.mrf.mxu0 }
 0xfa7   :  { %v4214_v44 = vadd.f32 %v4684_v7, %v4165_v12  ;;  %v4659_v1 = vadd.f32 %v4658_v26, %v4657_v56  ;;  %4226 = vadd.xlane.f32.xlu0 %v4221_v60  ;;  %v4687_v15 = vadd.f32 %v4686_v46, %v4685_v8 }
 0xfa9   :  { %v4168_v55 = vadd.f32 %v4659_v1, %v4453_v54  ;;  %v4222_v30 = vadd.f32 %v4214_v44, %v6684_v14  ;;  %v4486_v54 = vld [vmem:[%s6732_s18] ss:$0 sm:$0xff]  ;;  %s5687_s18 = smov [#allocation23]  }
 0xfaa   :  { %s4299_s12 = sshll.u32 %s5687_s18, 4  ;;  %s4300_s12 = int_to_ptr.vmem [resolvable:$true] %s4299_s12 }
 0xfab   :  { %v4217_v13 = vadd.f32 %v4687_v15, %v4168_v55  ;;  %4228 = vadd.xlane.f32.xlu1 %v4222_v30  ;;  %s5626_s19 = scalar_lea.vmem %s4300_s12, 512  ;;  %p5631_p10 = scmp.lt.s32.totalorder %s4300_s12, %s4300_s12 }
 0xfac   :  { %p5627_p9 = scmp.ne.s32.totalorder %s4300_s12, %s5626_s19  ;;  %p5632_p11 = scmp.lt.s32.totalorder %s5626_s19, %s5626_s19 }
 0xfad   :  { %v4223_v34 = vadd.f32 %v4217_v13, %v6682_v39 }
 0xfae   :  { %p5633_p12 = por %p5632_p11, %p5631_p10 }
 0xfaf   :  { %4230 = vadd.xlane.f32.xlu0 %v4223_v34 }
 0xfb0   :  { %p5634_p13 = pnand %p5633_p12, %p5627_p9 }
0x102c   :  { %v4225_v9 = vpop.xlane.xlu1 %4224 }
0x102d   :  { %v4232_v40 = vmul.f32 0.0078125, %v4225_v9 }
0x102f   :  { %v4236_v19 = vsub.f32 %v4220_v63, %v4232_v40 }
0x1030   :  { %v4227_v32 = vpop.xlane.xlu0 %4226 }
0x1031   :  { %v4233_v6 = vmul.f32 0.0078125, %v4227_v32  ;;  %v4240_v50 = vmul.f32 %v4236_v19, %v4236_v19 }
0x1033   :  { %v4237_v0 = vsub.f32 %v4221_v60, %v4233_v6  ;;  %4244 = vadd.xlane.f32.xlu1 %v4240_v50 }
0x1034   :  { %v4229_v24 = vpop.xlane.xlu1 %4228 }
0x1035   :  { %v4234_v28 = vmul.f32 0.0078125, %v4229_v24  ;;  %v4241_v29 = vmul.f32 %v4237_v0, %v4237_v0 }
0x1037   :  { %v4238_v51 = vsub.f32 %v4222_v30, %v4234_v28  ;;  %4246 = vadd.xlane.f32.xlu0 %v4241_v29 }
0x1038   :  { %v4231_v62 = vpop.xlane.xlu0 %4230 }
0x1039   :  { %v4235_v14 = vmul.f32 0.0078125, %v4231_v62  ;;  %v4242_v31 = vmul.f32 %v4238_v51, %v4238_v51 }
0x103b   :  { %v4239_v33 = vsub.f32 %v4223_v34, %v4235_v14  ;;  %4248 = vadd.xlane.f32.xlu1 %v4242_v31 }
0x103d   :  { %v4243_v39 = vmul.f32 %v4239_v33, %v4239_v33 }
0x103f   :  { %4250 = vadd.xlane.f32.xlu0 %v4243_v39 }
0x10bc   :  { %v4245_v35 = vpop.xlane.xlu1 %4244 }
0x10bd   :  { %v4252_v27 = vmul.f32 0.0078125, %v4245_v35 }
0x10bf   :  { %v4256_v41 = vadd.f32 1e-05, %v4252_v27 }
0x10c0   :  { %v4247_v10 = vpop.xlane.xlu0 %4246 }
0x10c1   :  { %5354 = vrsqrt.f32 %v4256_v41  ;;  %v4253_v52 = vmul.f32 0.0078125, %v4247_v10 }
0x10c3   :  { %v4257_v61 = vadd.f32 1e-05, %v4253_v52 }
0x10c4   :  { %v4249_v22 = vpop.xlane.xlu1 %4248 }
0x10c5   :  { %5356 = vrsqrt.f32 %v4257_v61  ;;  %v4254_v42 = vmul.f32 0.0078125, %v4249_v22 }
0x10c7   :  { %v4258_v49 = vadd.f32 1e-05, %v4254_v42 }
0x10c8   :  { %v4251_v38 = vpop.xlane.xlu0 %4250 }
0x10c9   :  { %5358 = vrsqrt.f32 %v4258_v49  ;;  %v4255_v48 = vmul.f32 0.0078125, %v4251_v38 }
0x10cb   :  { %v4259_v21 = vadd.f32 1e-05, %v4255_v48 }
0x10cd   :  { %5360 = vrsqrt.f32 %v4259_v21 }
0x10ce   :  { %v5355_v43 = vpop.eup %5354 }
0x10cf   :  { %v4264_v20 = vmul.f32 %v5355_v43, %v4236_v19 }
0x10d1   :  { %v4275_v23 = vmul.f32 %v4486_v54, %v4264_v20 }
0x10d2   :  { %v5357_v16 = vpop.eup %5356 }
0x10d3   :  { %v4265_v18 = vmul.f32 %v5357_v16, %v4237_v0  ;;  %v4286_v4 = vadd.f32 %v4487_v17, %v4275_v23 }
0x10d5   :  { %v4276_v57 = vmul.f32 %v4486_v54, %v4265_v18  ;;  %4290 = vst [vmem:[#allocation23] sm:$0xff] %v4286_v4 }
0x10d6   :  { %v5359_v36 = vpop.eup %5358 }
0x10d7   :  { %v4266_v25 = vmul.f32 %v5359_v36, %v4238_v51  ;;  %v4287_v5 = vadd.f32 %v4487_v17, %v4276_v57 }
0x10d9   :  { %v4277_v37 = vmul.f32 %v4486_v54, %v4266_v25  ;;  %4291 = vst [vmem:[#allocation23 + $0x8] sm:$0xff] %v4287_v5 }
0x10da   :  { %v5361_v2 = vpop.eup %5360 }
0x10db   :  { %v4267_v45 = vmul.f32 %v5361_v2, %v4239_v33  ;;  %v4288_v59 = vadd.f32 %v4487_v17, %v4277_v37 }
0x10dd   :  { %v4278_v47 = vmul.f32 %v4486_v54, %v4267_v45  ;;  %4292 = vst [vmem:[#allocation23 + $0x10] sm:$0xff] %v4288_v59 }
0x10df   :  { %v4289_v63 = vadd.f32 %v4487_v17, %v4278_v47 }
0x10e1   :  { %4293 = vst [vmem:[#allocation23 + $0x18] sm:$0xff] %v4289_v63 }
0x10e2   :  { %5637 = shalt.err (!%p5634_p13)
}
0x10e3   :  { %4305 = dma.vmem_to_hbm [thread:$0]  %s4300_s12, 512, %s6738_s24, [#allocation4], %s6753_s0, %s6753_s0, %s5665_s29  }
0x10e4   :  { %5660 = dma.done.wait [#allocation4], 512  }
0x10e5   :  { %5661 = vsyncadd [#allocation4], 4294966784 }
0x10e6   :  { %4309 = vsyncpa [#allocation3], 1 }
0x10e7   :  { %4310 = vsyncpa [#allocation6], 1 }
0x10e8   :  { %4311 = vsyncpa [#allocation9], 1 }
0x10e9   :  { %4312 = vsyncpa [#allocation12], 1 }
0x10ea   :  { %4313 = vsyncpa [#allocation15], 1 }
0x10eb   :  { %4314 = vsyncpa [#allocation18], 1 }
0x10ec   :  { %4315 = vsyncpa [#allocation21], 1 }
0x10ed   :  { %4316 = vsyncpa [#allocation4], 1 }

</bundles_post_ra>
